<compile_context>
chip_gen: v5e
topology: v5e:2x2
jax: 0.10.0
libtpu: 0.0.40
codegen_flags: <defaults>
</compile_context>

<pallas_src>
import functools
import math

import jax
import jax.numpy as jnp
from jax.experimental import pallas as pl
from jax.experimental.pallas import tpu as pltpu


# ----------------------------------------------------------------------------
# Init-time weight fake-quantization (UniformAffineQuantizer, per-tensor).
# Hoisted out of the kernels: weights are constants at inference time.
# ----------------------------------------------------------------------------
def fake_quant_per_tensor(w, n_bits=8):
    # NOTE: per-tensor min/max, zero_point unclamped — matches the previous
    # version / brecq's default (channel_wise=False) UniformAffineQuantizer.
    levels = float(2 ** n_bits - 1)
    wmax = jnp.max(w)
    wmin = jnp.min(w)
    delta = jnp.maximum((wmax - wmin) / levels, 1e-8)
    zero_point = jnp.round(-wmin / delta)
    wq = jnp.clip(jnp.round(w / delta) + zero_point, 0.0, levels)
    return (wq - zero_point) * delta


# ----------------------------------------------------------------------------
# Pallas kernels
# ----------------------------------------------------------------------------
def _conv3x3_accum(x_ref, w_ref, H, W):
    """3x3 'same' conv as 9 shifted matmuls accumulated in fp32.

    x_ref: (1, H+2, W+2, Cin) bf16 padded NHWC tile (one batch element).
    w_ref: (9, Cin, Cout) bf16 pre-fake-quantized taps (tap = kh*3+kw).
    returns acc: (H*W, Cout) fp32.
    """
    C = x_ref.shape[-1]
    OC = w_ref.shape[-1]
    xp = x_ref[0]                                   # (H+2, W+2, Cin) bf16
    acc = jnp.zeros((H * W, OC), jnp.float32)
    for kh in range(3):
        for kw in range(3):
            # Static window slice; (H, W, C) -> (H*W, C) is a tile-preserving
            # collapse (W is a multiple of the sublane tile), i.e. ~free.
            win = xp[kh:kh + H, kw:kw + W, :].reshape(H * W, C)
            acc = acc + jnp.dot(win, w_ref[kh * 3 + kw],
                                preferred_element_type=jnp.float32)
    return acc


def conv_in_kernel(x_ref, w_ref, b_ref, tsin_ref, w1_ref, b1_ref, w2_ref,
                   b2_ref, o_ref, *, H, W):
    """QuantModule Conv2d(conv_in) with the full epilogue fused:
       out = SiLU( conv3x3(x, fq(W)) + b + temb_mlp(t) )
    where temb_mlp = QuantLinear2( SiLU( QuantLinear1( sin_emb(t) ) ) ) is the
    two tiny time-embedding Linears, fused here instead of separate launches.
    """
    acc = _conv3x3_accum(x_ref, w_ref, H, W)                 # (H*W, OC) f32

    # --- fused time-embedding MLP for this batch element (MXU, M=1) ---------
    te = tsin_ref[0]                                          # (1, temb_dim) bf16
    h1 = jnp.dot(te, w1_ref[...],
                 preferred_element_type=jnp.float32) + b1_ref[...]
    h1 = h1 * jax.nn.sigmoid(h1)                              # SiLU (fp32, EUP)
    temb = jnp.dot(h1.astype(jnp.bfloat16), w2_ref[...],
                   preferred_element_type=jnp.float32) + b2_ref[...]  # (1, OC)

    # --- epilogue: bias + temb broadcast + SiLU (VPU/EUP, fp32) -------------
    acc = acc + b_ref[...] + temb
    acc = acc * jax.nn.sigmoid(acc)
    o_ref[0] = acc.astype(o_ref.dtype)


def conv_out_kernel(x_ref, w_ref, b_ref, o_ref, *, H, W):
    """QuantModule Conv2d(conv_out): conv3x3 + bias (no activation)."""
    acc = _conv3x3_accum(x_ref, w_ref, H, W) + b_ref[...]
    # TODO(synk): per-tensor activation fake-quant (act_quant=False by default)
    # would need calibrated global delta/zero_point scalars passed in (a
    # per-tile min/max here would silently change numerics).
    o_ref[0] = acc.astype(o_ref.dtype)


# ----------------------------------------------------------------------------
# pallas_call wrappers
# ----------------------------------------------------------------------------
_VMEM_LIMIT = 32 * 1024 * 1024  # safe on v5e/v6e/v7x; re-derive tile sizes vs
                                # the 64 MiB v7x budget if tiles are enlarged.


def _full_spec(shape):
    n = len(shape)
    return pl.BlockSpec(shape, lambda *_: (0,) * n)


def quant_conv_in_call(x_pad, w9, bias, tsin, w1, b1, w2, b2, *, H, W,
                       out_dtype=jnp.bfloat16):
    B, Hp, Wp, C = x_pad.shape
    OC = w9.shape[-1]
    kernel = functools.partial(conv_in_kernel, H=H, W=W)
    return pl.pallas_call(
        kernel,
        out_shape=jax.ShapeDtypeStruct((B, H * W, OC), out_dtype),
        grid=(B,),
        in_specs=[
            pl.BlockSpec((1, Hp, Wp, C), lambda b: (b, 0, 0, 0)),
            _full_spec(w9.shape),
            _full_spec(bias.shape),
            pl.BlockSpec((1, 1, tsin.shape[-1]), lambda b: (b, 0, 0)),
            _full_spec(w1.shape),
            _full_spec(b1.shape),
            _full_spec(w2.shape),
            _full_spec(b2.shape),
        ],
        out_specs=pl.BlockSpec((1, H * W, OC), lambda b: (b, 0, 0)),
        compiler_params=pltpu.CompilerParams(
            dimension_semantics=("parallel",),
            vmem_limit_bytes=_VMEM_LIMIT,
        ),
    )(x_pad, w9, bias, tsin, w1, b1, w2, b2)


def quant_conv_call(x_pad, w9, bias, *, H, W, out_dtype=jnp.float32):
    B, Hp, Wp, C = x_pad.shape
    OC = w9.shape[-1]
    kernel = functools.partial(conv_out_kernel, H=H, W=W)
    return pl.pallas_call(
        kernel,
        out_shape=jax.ShapeDtypeStruct((B, H * W, OC), out_dtype),
        grid=(B,),
        in_specs=[
            pl.BlockSpec((1, Hp, Wp, C), lambda b: (b, 0, 0, 0)),
            _full_spec(w9.shape),
            _full_spec(bias.shape),
        ],
        out_specs=pl.BlockSpec((1, H * W, OC), lambda b: (b, 0, 0)),
        compiler_params=pltpu.CompilerParams(
            dimension_semantics=("parallel",),
            vmem_limit_bytes=_VMEM_LIMIT,
        ),
    )(x_pad, w9, bias)


# ----------------------------------------------------------------------------
# Synthetic DDIM-style model wrapped by QuantModel
# ----------------------------------------------------------------------------
def timestep_embedding(t, dim):
    """Standard DDIM sinusoidal timestep embedding, t: (B,) -> (B, dim)."""
    half = dim // 2
    freqs = jnp.exp(-math.log(10000.0) *
                    jnp.arange(half, dtype=jnp.float32) / half)
    args = t.astype(jnp.float32)[:, None] * freqs[None, :]
    return jnp.concatenate([jnp.sin(args), jnp.cos(args)], axis=-1)


def init_params(key, c_in=4, c_hidden=8, temb_dim=32, temb_hidden=64):
    ks = jax.random.split(key, 8)

    def lin(kw, kb, fan_in, fan_out):
        bound = 1.0 / math.sqrt(fan_in)
        return (jax.random.uniform(kw, (fan_out, fan_in), jnp.float32, -bound, bound),
                jax.random.uniform(kb, (fan_out,), jnp.float32, -bound, bound))

    def conv(kw, kb, ic, oc):
        fan_in = ic * 9
        bound = 1.0 / math.sqrt(fan_in)
        return (jax.random.uniform(kw, (oc, ic, 3, 3), jnp.float32, -bound, bound),
                jax.random.uniform(kb, (oc,), jnp.float32, -bound, bound))

    p = {}
    p["temb_fc1_w"], p["temb_fc1_b"] = lin(ks[0], ks[1], temb_dim, temb_hidden)
    p["temb_fc2_w"], p["temb_fc2_b"] = lin(ks[2], ks[3], temb_hidden, c_hidden)
    p["conv_in_w"], p["conv_in_b"] = conv(ks[4], ks[5], c_in, c_hidden)
    p["conv_out_w"], p["conv_out_b"] = conv(ks[6], ks[7], c_hidden, c_in)
    return p


def prepare_quant_params(params, *, weight_quant=True, n_bits_w=8):
    """Equivalent of set_quant_state(weight_quant=True) done once at init:
    fake-quantize every QuantModule weight, pre-transpose to MXU-friendly
    (K, N) / (9, Cin, Cout) layouts and cast to bf16 feed dtype."""
    fq = (lambda w: fake_quant_per_tensor(w, n_bits_w)) if weight_quant else (lambda w: w)

    def conv_prep(w):                      # (OC, IC, 3, 3) -> (9, IC, OC) bf16
        oc, ic = w.shape[0], w.shape[1]
        return fq(w).transpose(2, 3, 1, 0).reshape(9, ic, oc).astype(jnp.bfloat16)

    qp = {}
    qp["temb_fc1_wq"] = fq(params["temb_fc1_w"]).T.astype(jnp.bfloat16)   # (in, out)
    qp["temb_fc1_b"] = params["temb_fc1_b"].reshape(1, -1).astype(jnp.float32)
    qp["temb_fc2_wq"] = fq(params["temb_fc2_w"]).T.astype(jnp.bfloat16)
    qp["temb_fc2_b"] = params["temb_fc2_b"].reshape(1, -1).astype(jnp.float32)
    qp["conv_in_wq"] = conv_prep(params["conv_in_w"])
    qp["conv_in_b"] = params["conv_in_b"].reshape(1, -1).astype(jnp.float32)
    qp["conv_out_wq"] = conv_prep(params["conv_out_w"])
    qp["conv_out_b"] = params["conv_out_b"].reshape(1, -1).astype(jnp.float32)
    return qp


def quant_model_forward(qparams, image, t):
    """QuantModel.forward(image, t) with weight-quantized Conv2d / Linear layers.
    image: (B, C, H, W) NCHW fp32 (PyTorch convention); returns same layout."""
    B, C, H, W = image.shape

    # Sinusoidal timestep embedding (plain model code, not a QuantModule).
    temb_dim = qparams["temb_fc1_wq"].shape[0]
    tsin = timestep_embedding(t, temb_dim).astype(jnp.bfloat16)
    tsin = tsin.reshape(B, 1, temb_dim)

    # One NCHW -> NHWC transpose at the boundary; activations stay NHWC/bf16.
    x = image.transpose(0, 2, 3, 1).astype(jnp.bfloat16)
    x_pad = jnp.pad(x, ((0, 0), (1, 1), (1, 1), (0, 0)))

    # conv_in + bias + temb-MLP + temb-add + SiLU, all fused in one kernel.
    h = quant_conv_in_call(
        x_pad, qparams["conv_in_wq"], qparams["conv_in_b"],
        tsin, qparams["temb_fc1_wq"], qparams["temb_fc1_b"],
        qparams["temb_fc2_wq"], qparams["temb_fc2_b"],
        H=H, W=W, out_dtype=jnp.bfloat16)                    # (B, H*W, Chid)

    c_hidden = h.shape[-1]
    h = h.reshape(B, H, W, c_hidden)                         # free reshape
    h_pad = jnp.pad(h, ((0, 0), (1, 1), (1, 1), (0, 0)))

    # conv_out + bias.
    out = quant_conv_call(h_pad, qparams["conv_out_wq"], qparams["conv_out_b"],
                          H=H, W=W, out_dtype=jnp.float32)   # (B, H*W, C)

    # Single NHWC -> NCHW transpose back at the boundary.
    return out.reshape(B, H, W, C).transpose(0, 3, 1, 2)


if __name__ == "__main__":
    key = jax.random.PRNGKey(0)
    k_param, k_img, k_t = jax.random.split(key, 3)

    B, C, H, W = 2, 4, 16, 16
    image = jax.random.normal(k_img, (B, C, H, W), jnp.float32)
    t = jax.random.randint(k_t, (B,), 0, 1000)

    params = init_params(k_param, c_in=C)
    # set_quant_state(weight_quant=True, act_quant=False), done once at init.
    qparams = prepare_quant_params(params, weight_quant=True)

    fwd = jax.jit(quant_model_forward)
    out = fwd(qparams, image, t)
    out = jax.block_until_ready(out)

    assert out.shape == (B, C, H, W)
    assert bool(jnp.all(jnp.isfinite(out)))
    print("KERNEL_OK")
</pallas_src>

<mosaic_0001>
module attributes {stable_mosaic.version = 11 : i64} {
  func.func @conv_in_kernel(%arg0: i32, %arg1: memref<1x18x18x4xbf16, #tpu.memory_space<vmem>>, %arg2: memref<9x4x8xbf16, #tpu.memory_space<vmem>>, %arg3: memref<1x8xf32, #tpu.memory_space<vmem>>, %arg4: memref<1x1x32xbf16, #tpu.memory_space<vmem>>, %arg5: memref<32x64xbf16, #tpu.memory_space<vmem>>, %arg6: memref<1x64xf32, #tpu.memory_space<vmem>>, %arg7: memref<64x8xbf16, #tpu.memory_space<vmem>>, %arg8: memref<1x8xf32, #tpu.memory_space<vmem>>, %arg9: memref<1x256x8xbf16, #tpu.memory_space<vmem>>) attributes {dimension_semantics = [#tpu.dimension_semantics<parallel>], iteration_bounds = array<i64: 2>, scalar_prefetch = 0 : i64, scratch_operands = 0 : i64, tpu.core_type = #tpu.core_type<tc>, window_params = [{transform_indices = @transform_0, window_bounds = array<i64: 1, 18, 18, 4>}, {pipeline_mode = #tpu.pipeline_mode<synchronous>, transform_indices = @transform_1, window_bounds = array<i64: 9, 4, 8>}, {pipeline_mode = #tpu.pipeline_mode<synchronous>, transform_indices = @transform_2, window_bounds = array<i64: 1, 8>}, {transform_indices = @transform_3, window_bounds = array<i64: 1, 1, 32>}, {pipeline_mode = #tpu.pipeline_mode<synchronous>, transform_indices = @transform_4, window_bounds = array<i64: 32, 64>}, {pipeline_mode = #tpu.pipeline_mode<synchronous>, transform_indices = @transform_5, window_bounds = array<i64: 1, 64>}, {pipeline_mode = #tpu.pipeline_mode<synchronous>, transform_indices = @transform_6, window_bounds = array<i64: 64, 8>}, {pipeline_mode = #tpu.pipeline_mode<synchronous>, transform_indices = @transform_7, window_bounds = array<i64: 1, 8>}, {transform_indices = @transform_8, window_bounds = array<i64: 1, 256, 8>}]} {
    %c0 = arith.constant 0 : index
    %c0_0 = arith.constant 0 : index
    %c0_1 = arith.constant 0 : index
    %c0_2 = arith.constant 0 : index
    %0 = vector.load %arg1[%c0, %c0_0, %c0_1, %c0_2] : memref<1x18x18x4xbf16, #tpu.memory_space<vmem>>, vector<1x18x18x4xbf16>
    %1 = vector.shape_cast %0 : vector<1x18x18x4xbf16> to vector<18x18x4xbf16>
    %cst = arith.constant 0.000000e+00 : f32
    %2 = vector.broadcast %cst : f32 to vector<256x8xf32>
    %3 = vector.extract_strided_slice %1 {offsets = [0, 0, 0], sizes = [16, 16, 4], strides = [1, 1, 1]} : vector<18x18x4xbf16> to vector<16x16x4xbf16>
    %4 = vector.shape_cast %3 : vector<16x16x4xbf16> to vector<256x4xbf16>
    %c0_3 = arith.constant 0 : index
    %c0_4 = arith.constant 0 : index
    %c0_5 = arith.constant 0 : index
    %5 = vector.load %arg2[%c0_3, %c0_4, %c0_5] : memref<9x4x8xbf16, #tpu.memory_space<vmem>>, vector<1x4x8xbf16>
    %6 = vector.shape_cast %5 : vector<1x4x8xbf16> to vector<4x8xbf16>
    %cst_6 = arith.constant dense<0.000000e+00> : vector<256x8xf32>
    %7 = tpu.matmul %4, %6, %cst_6 {dimension_numbers = #tpu.dot_dimension_numbers<[1], [0], [0], [1], [0, 0, 1, 1], [], []>} : vector<256x4xbf16>, vector<4x8xbf16>, vector<256x8xf32> -> vector<256x8xf32>
    %8 = arith.addf %2, %7 : vector<256x8xf32>
    %9 = vector.extract_strided_slice %1 {offsets = [0, 1, 0], sizes = [16, 16, 4], strides = [1, 1, 1]} : vector<18x18x4xbf16> to vector<16x16x4xbf16>
    %10 = vector.shape_cast %9 : vector<16x16x4xbf16> to vector<256x4xbf16>
    %c1 = arith.constant 1 : index
    %c0_7 = arith.constant 0 : index
    %c0_8 = arith.constant 0 : index
    %11 = vector.load %arg2[%c1, %c0_7, %c0_8] : memref<9x4x8xbf16, #tpu.memory_space<vmem>>, vector<1x4x8xbf16>
    %12 = vector.shape_cast %11 : vector<1x4x8xbf16> to vector<4x8xbf16>
    %cst_9 = arith.constant dense<0.000000e+00> : vector<256x8xf32>
    %13 = tpu.matmul %10, %12, %cst_9 {dimension_numbers = #tpu.dot_dimension_numbers<[1], [0], [0], [1], [0, 0, 1, 1], [], []>} : vector<256x4xbf16>, vector<4x8xbf16>, vector<256x8xf32> -> vector<256x8xf32>
    %14 = arith.addf %8, %13 : vector<256x8xf32>
    %15 = vector.extract_strided_slice %1 {offsets = [0, 2, 0], sizes = [16, 16, 4], strides = [1, 1, 1]} : vector<18x18x4xbf16> to vector<16x16x4xbf16>
    %16 = vector.shape_cast %15 : vector<16x16x4xbf16> to vector<256x4xbf16>
    %c2 = arith.constant 2 : index
    %c0_10 = arith.constant 0 : index
    %c0_11 = arith.constant 0 : index
    %17 = vector.load %arg2[%c2, %c0_10, %c0_11] : memref<9x4x8xbf16, #tpu.memory_space<vmem>>, vector<1x4x8xbf16>
    %18 = vector.shape_cast %17 : vector<1x4x8xbf16> to vector<4x8xbf16>
    %cst_12 = arith.constant dense<0.000000e+00> : vector<256x8xf32>
    %19 = tpu.matmul %16, %18, %cst_12 {dimension_numbers = #tpu.dot_dimension_numbers<[1], [0], [0], [1], [0, 0, 1, 1], [], []>} : vector<256x4xbf16>, vector<4x8xbf16>, vector<256x8xf32> -> vector<256x8xf32>
    %20 = arith.addf %14, %19 : vector<256x8xf32>
    %21 = vector.extract_strided_slice %1 {offsets = [1, 0, 0], sizes = [16, 16, 4], strides = [1, 1, 1]} : vector<18x18x4xbf16> to vector<16x16x4xbf16>
    %22 = vector.shape_cast %21 : vector<16x16x4xbf16> to vector<256x4xbf16>
    %c3 = arith.constant 3 : index
    %c0_13 = arith.constant 0 : index
    %c0_14 = arith.constant 0 : index
    %23 = vector.load %arg2[%c3, %c0_13, %c0_14] : memref<9x4x8xbf16, #tpu.memory_space<vmem>>, vector<1x4x8xbf16>
    %24 = vector.shape_cast %23 : vector<1x4x8xbf16> to vector<4x8xbf16>
    %cst_15 = arith.constant dense<0.000000e+00> : vector<256x8xf32>
    %25 = tpu.matmul %22, %24, %cst_15 {dimension_numbers = #tpu.dot_dimension_numbers<[1], [0], [0], [1], [0, 0, 1, 1], [], []>} : vector<256x4xbf16>, vector<4x8xbf16>, vector<256x8xf32> -> vector<256x8xf32>
    %26 = arith.addf %20, %25 : vector<256x8xf32>
    %27 = vector.extract_strided_slice %1 {offsets = [1, 1, 0], sizes = [16, 16, 4], strides = [1, 1, 1]} : vector<18x18x4xbf16> to vector<16x16x4xbf16>
    %28 = vector.shape_cast %27 : vector<16x16x4xbf16> to vector<256x4xbf16>
    %c4 = arith.constant 4 : index
    %c0_16 = arith.constant 0 : index
    %c0_17 = arith.constant 0 : index
    %29 = vector.load %arg2[%c4, %c0_16, %c0_17] : memref<9x4x8xbf16, #tpu.memory_space<vmem>>, vector<1x4x8xbf16>
    %30 = vector.shape_cast %29 : vector<1x4x8xbf16> to vector<4x8xbf16>
    %cst_18 = arith.constant dense<0.000000e+00> : vector<256x8xf32>
    %31 = tpu.matmul %28, %30, %cst_18 {dimension_numbers = #tpu.dot_dimension_numbers<[1], [0], [0], [1], [0, 0, 1, 1], [], []>} : vector<256x4xbf16>, vector<4x8xbf16>, vector<256x8xf32> -> vector<256x8xf32>
    %32 = arith.addf %26, %31 : vector<256x8xf32>
    %33 = vector.extract_strided_slice %1 {offsets = [1, 2, 0], sizes = [16, 16, 4], strides = [1, 1, 1]} : vector<18x18x4xbf16> to vector<16x16x4xbf16>
    %34 = vector.shape_cast %33 : vector<16x16x4xbf16> to vector<256x4xbf16>
    %c5 = arith.constant 5 : index
    %c0_19 = arith.constant 0 : index
    %c0_20 = arith.constant 0 : index
    %35 = vector.load %arg2[%c5, %c0_19, %c0_20] : memref<9x4x8xbf16, #tpu.memory_space<vmem>>, vector<1x4x8xbf16>
    %36 = vector.shape_cast %35 : vector<1x4x8xbf16> to vector<4x8xbf16>
    %cst_21 = arith.constant dense<0.000000e+00> : vector<256x8xf32>
    %37 = tpu.matmul %34, %36, %cst_21 {dimension_numbers = #tpu.dot_dimension_numbers<[1], [0], [0], [1], [0, 0, 1, 1], [], []>} : vector<256x4xbf16>, vector<4x8xbf16>, vector<256x8xf32> -> vector<256x8xf32>
    %38 = arith.addf %32, %37 : vector<256x8xf32>
    %39 = vector.extract_strided_slice %1 {offsets = [2, 0, 0], sizes = [16, 16, 4], strides = [1, 1, 1]} : vector<18x18x4xbf16> to vector<16x16x4xbf16>
    %40 = vector.shape_cast %39 : vector<16x16x4xbf16> to vector<256x4xbf16>
    %c6 = arith.constant 6 : index
    %c0_22 = arith.constant 0 : index
    %c0_23 = arith.constant 0 : index
    %41 = vector.load %arg2[%c6, %c0_22, %c0_23] : memref<9x4x8xbf16, #tpu.memory_space<vmem>>, vector<1x4x8xbf16>
    %42 = vector.shape_cast %41 : vector<1x4x8xbf16> to vector<4x8xbf16>
    %cst_24 = arith.constant dense<0.000000e+00> : vector<256x8xf32>
    %43 = tpu.matmul %40, %42, %cst_24 {dimension_numbers = #tpu.dot_dimension_numbers<[1], [0], [0], [1], [0, 0, 1, 1], [], []>} : vector<256x4xbf16>, vector<4x8xbf16>, vector<256x8xf32> -> vector<256x8xf32>
    %44 = arith.addf %38, %43 : vector<256x8xf32>
    %45 = vector.extract_strided_slice %1 {offsets = [2, 1, 0], sizes = [16, 16, 4], strides = [1, 1, 1]} : vector<18x18x4xbf16> to vector<16x16x4xbf16>
    %46 = vector.shape_cast %45 : vector<16x16x4xbf16> to vector<256x4xbf16>
    %c7 = arith.constant 7 : index
    %c0_25 = arith.constant 0 : index
    %c0_26 = arith.constant 0 : index
    %47 = vector.load %arg2[%c7, %c0_25, %c0_26] : memref<9x4x8xbf16, #tpu.memory_space<vmem>>, vector<1x4x8xbf16>
    %48 = vector.shape_cast %47 : vector<1x4x8xbf16> to vector<4x8xbf16>
    %cst_27 = arith.constant dense<0.000000e+00> : vector<256x8xf32>
    %49 = tpu.matmul %46, %48, %cst_27 {dimension_numbers = #tpu.dot_dimension_numbers<[1], [0], [0], [1], [0, 0, 1, 1], [], []>} : vector<256x4xbf16>, vector<4x8xbf16>, vector<256x8xf32> -> vector<256x8xf32>
    %50 = arith.addf %44, %49 : vector<256x8xf32>
    %51 = vector.extract_strided_slice %1 {offsets = [2, 2, 0], sizes = [16, 16, 4], strides = [1, 1, 1]} : vector<18x18x4xbf16> to vector<16x16x4xbf16>
    %52 = vector.shape_cast %51 : vector<16x16x4xbf16> to vector<256x4xbf16>
    %c8 = arith.constant 8 : index
    %c0_28 = arith.constant 0 : index
    %c0_29 = arith.constant 0 : index
    %53 = vector.load %arg2[%c8, %c0_28, %c0_29] : memref<9x4x8xbf16, #tpu.memory_space<vmem>>, vector<1x4x8xbf16>
    %54 = vector.shape_cast %53 : vector<1x4x8xbf16> to vector<4x8xbf16>
    %cst_30 = arith.constant dense<0.000000e+00> : vector<256x8xf32>
    %55 = tpu.matmul %52, %54, %cst_30 {dimension_numbers = #tpu.dot_dimension_numbers<[1], [0], [0], [1], [0, 0, 1, 1], [], []>} : vector<256x4xbf16>, vector<4x8xbf16>, vector<256x8xf32> -> vector<256x8xf32>
    %56 = arith.addf %50, %55 : vector<256x8xf32>
    %c0_31 = arith.constant 0 : index
    %c0_32 = arith.constant 0 : index
    %c0_33 = arith.constant 0 : index
    %57 = vector.load %arg4[%c0_31, %c0_32, %c0_33] : memref<1x1x32xbf16, #tpu.memory_space<vmem>>, vector<1x1x32xbf16>
    %58 = vector.shape_cast %57 : vector<1x1x32xbf16> to vector<1x32xbf16>
    %c0_34 = arith.constant 0 : index
    %c0_35 = arith.constant 0 : index
    %59 = vector.load %arg5[%c0_34, %c0_35] : memref<32x64xbf16, #tpu.memory_space<vmem>>, vector<32x64xbf16>
    %cst_36 = arith.constant dense<0.000000e+00> : vector<1x64xf32>
    %60 = tpu.matmul %58, %59, %cst_36 {dimension_numbers = #tpu.dot_dimension_numbers<[1], [0], [0], [1], [0, 0, 1, 1], [], []>} : vector<1x32xbf16>, vector<32x64xbf16>, vector<1x64xf32> -> vector<1x64xf32>
    %c0_37 = arith.constant 0 : index
    %c0_38 = arith.constant 0 : index
    %61 = vector.load %arg6[%c0_37, %c0_38] : memref<1x64xf32, #tpu.memory_space<vmem>>, vector<1x64xf32>
    %62 = arith.addf %60, %61 : vector<1x64xf32>
    %63 = arith.negf %62 : vector<1x64xf32>
    %64 = math.exp %63 : vector<1x64xf32>
    %cst_39 = arith.constant 1.000000e+00 : f32
    %65 = vector.broadcast %cst_39 : f32 to vector<1x64xf32>
    %66 = arith.addf %65, %64 : vector<1x64xf32>
    %67 = arith.divf %65, %66 : vector<1x64xf32>
    %68 = arith.mulf %62, %67 : vector<1x64xf32>
    %69 = arith.truncf %68 : vector<1x64xf32> to vector<1x64xbf16>
    %c0_40 = arith.constant 0 : index
    %c0_41 = arith.constant 0 : index
    %70 = vector.load %arg7[%c0_40, %c0_41] : memref<64x8xbf16, #tpu.memory_space<vmem>>, vector<64x8xbf16>
    %cst_42 = arith.constant dense<0.000000e+00> : vector<1x8xf32>
    %71 = tpu.matmul %69, %70, %cst_42 {dimension_numbers = #tpu.dot_dimension_numbers<[1], [0], [0], [1], [0, 0, 1, 1], [], []>} : vector<1x64xbf16>, vector<64x8xbf16>, vector<1x8xf32> -> vector<1x8xf32>
    %c0_43 = arith.constant 0 : index
    %c0_44 = arith.constant 0 : index
    %72 = vector.load %arg8[%c0_43, %c0_44] : memref<1x8xf32, #tpu.memory_space<vmem>>, vector<1x8xf32>
    %73 = arith.addf %71, %72 : vector<1x8xf32>
    %c0_45 = arith.constant 0 : index
    %c0_46 = arith.constant 0 : index
    %74 = vector.load %arg3[%c0_45, %c0_46] : memref<1x8xf32, #tpu.memory_space<vmem>>, vector<1x8xf32>
    %75 = vector.broadcast %74 : vector<1x8xf32> to vector<256x8xf32>
    %76 = arith.addf %56, %75 : vector<256x8xf32>
    %77 = vector.broadcast %73 : vector<1x8xf32> to vector<256x8xf32>
    %78 = arith.addf %76, %77 : vector<256x8xf32>
    %79 = arith.negf %78 : vector<256x8xf32>
    %80 = math.exp %79 : vector<256x8xf32>
    %cst_47 = arith.constant 1.000000e+00 : f32
    %81 = vector.broadcast %cst_47 : f32 to vector<256x8xf32>
    %82 = arith.addf %81, %80 : vector<256x8xf32>
    %83 = arith.divf %81, %82 : vector<256x8xf32>
    %84 = arith.mulf %78, %83 : vector<256x8xf32>
    %85 = arith.truncf %84 : vector<256x8xf32> to vector<256x8xbf16>
    %c0_48 = arith.constant 0 : index
    %c0_49 = arith.constant 0 : index
    %c0_50 = arith.constant 0 : index
    %86 = vector.load %arg9[%c0_48, %c0_49, %c0_50] : memref<1x256x8xbf16, #tpu.memory_space<vmem>>, vector<1x256x8xbf16>
    %87 = vector.shape_cast %86 : vector<1x256x8xbf16> to vector<256x8xbf16>
    %88 = vector.shape_cast %85 : vector<256x8xbf16> to vector<1x256x8xbf16>
    tpu.vector_store %arg9[%c0_48, %c0_49, %c0_50], %88 {strides = array<i32>} : memref<1x256x8xbf16, #tpu.memory_space<vmem>>, vector<1x256x8xbf16>,
    return
  }
  func.func @transform_0(%arg0: i32) -> (i32, i32, i32, i32) {
    %c0_i32 = arith.constant 0 : i32
    %c0_i32_0 = arith.constant 0 : i32
    %c0_i32_1 = arith.constant 0 : i32
    %c0_i32_2 = arith.constant 0 : i32
    return %arg0, %c0_i32, %c0_i32_0, %c0_i32_1 : i32, i32, i32, i32
  }
  func.func @transform_1(%arg0: i32) -> (i32, i32, i32) {
    %c0_i32 = arith.constant 0 : i32
    %c0_i32_0 = arith.constant 0 : i32
    %c0_i32_1 = arith.constant 0 : i32
    %c0_i32_2 = arith.constant 0 : i32
    return %c0_i32, %c0_i32_0, %c0_i32_1 : i32, i32, i32
  }
  func.func @transform_2(%arg0: i32) -> (i32, i32) {
    %c0_i32 = arith.constant 0 : i32
    %c0_i32_0 = arith.constant 0 : i32
    %c0_i32_1 = arith.constant 0 : i32
    return %c0_i32, %c0_i32_0 : i32, i32
  }
  func.func @transform_3(%arg0: i32) -> (i32, i32, i32) {
    %c0_i32 = arith.constant 0 : i32
    %c0_i32_0 = arith.constant 0 : i32
    %c0_i32_1 = arith.constant 0 : i32
    return %arg0, %c0_i32, %c0_i32_0 : i32, i32, i32
  }
  func.func @transform_4(%arg0: i32) -> (i32, i32) {
    %c0_i32 = arith.constant 0 : i32
    %c0_i32_0 = arith.constant 0 : i32
    %c0_i32_1 = arith.constant 0 : i32
    return %c0_i32, %c0_i32_0 : i32, i32
  }
  func.func @transform_5(%arg0: i32) -> (i32, i32) {
    %c0_i32 = arith.constant 0 : i32
    %c0_i32_0 = arith.constant 0 : i32
    %c0_i32_1 = arith.constant 0 : i32
    return %c0_i32, %c0_i32_0 : i32, i32
  }
  func.func @transform_6(%arg0: i32) -> (i32, i32) {
    %c0_i32 = arith.constant 0 : i32
    %c0_i32_0 = arith.constant 0 : i32
    %c0_i32_1 = arith.constant 0 : i32
    return %c0_i32, %c0_i32_0 : i32, i32
  }
  func.func @transform_7(%arg0: i32) -> (i32, i32) {
    %c0_i32 = arith.constant 0 : i32
    %c0_i32_0 = arith.constant 0 : i32
    %c0_i32_1 = arith.constant 0 : i32
    return %c0_i32, %c0_i32_0 : i32, i32
  }
  func.func @transform_8(%arg0: i32) -> (i32, i32, i32) {
    %c0_i32 = arith.constant 0 : i32
    %c0_i32_0 = arith.constant 0 : i32
    %c0_i32_1 = arith.constant 0 : i32
    return %arg0, %c0_i32, %c0_i32_0 : i32, i32, i32
  }
}

module attributes {stable_mosaic.version = 11 : i64} {
  func.func @conv_out_kernel(%arg0: i32, %arg1: memref<1x18x18x8xbf16, #tpu.memory_space<vmem>>, %arg2: memref<9x8x4xbf16, #tpu.memory_space<vmem>>, %arg3: memref<1x4xf32, #tpu.memory_space<vmem>>, %arg4: memref<1x256x4xf32, #tpu.memory_space<vmem>>) attributes {dimension_semantics = [#tpu.dimension_semantics<parallel>], iteration_bounds = array<i64: 2>, scalar_prefetch = 0 : i64, scratch_operands = 0 : i64, tpu.core_type = #tpu.core_type<tc>, window_params = [{transform_indices = @transform_0, window_bounds = array<i64: 1, 18, 18, 8>}, {pipeline_mode = #tpu.pipeline_mode<synchronous>, transform_indices = @transform_1, window_bounds = array<i64: 9, 8, 4>}, {pipeline_mode = #tpu.pipeline_mode<synchronous>, transform_indices = @transform_2, window_bounds = array<i64: 1, 4>}, {transform_indices = @transform_3, window_bounds = array<i64: 1, 256, 4>}]} {
    %c0 = arith.constant 0 : index
    %c0_0 = arith.constant 0 : index
    %c0_1 = arith.constant 0 : index
    %c0_2 = arith.constant 0 : index
    %0 = vector.load %arg1[%c0, %c0_0, %c0_1, %c0_2] : memref<1x18x18x8xbf16, #tpu.memory_space<vmem>>, vector<1x18x18x8xbf16>
    %1 = vector.shape_cast %0 : vector<1x18x18x8xbf16> to vector<18x18x8xbf16>
    %cst = arith.constant 0.000000e+00 : f32
    %2 = vector.broadcast %cst : f32 to vector<256x4xf32>
    %3 = vector.extract_strided_slice %1 {offsets = [0, 0, 0], sizes = [16, 16, 8], strides = [1, 1, 1]} : vector<18x18x8xbf16> to vector<16x16x8xbf16>
    %4 = vector.shape_cast %3 : vector<16x16x8xbf16> to vector<256x8xbf16>
    %c0_3 = arith.constant 0 : index
    %c0_4 = arith.constant 0 : index
    %c0_5 = arith.constant 0 : index
    %5 = vector.load %arg2[%c0_3, %c0_4, %c0_5] : memref<9x8x4xbf16, #tpu.memory_space<vmem>>, vector<1x8x4xbf16>
    %6 = vector.shape_cast %5 : vector<1x8x4xbf16> to vector<8x4xbf16>
    %cst_6 = arith.constant dense<0.000000e+00> : vector<256x4xf32>
    %7 = tpu.matmul %4, %6, %cst_6 {dimension_numbers = #tpu.dot_dimension_numbers<[1], [0], [0], [1], [0, 0, 1, 1], [], []>} : vector<256x8xbf16>, vector<8x4xbf16>, vector<256x4xf32> -> vector<256x4xf32>
    %8 = arith.addf %2, %7 : vector<256x4xf32>
    %9 = vector.extract_strided_slice %1 {offsets = [0, 1, 0], sizes = [16, 16, 8], strides = [1, 1, 1]} : vector<18x18x8xbf16> to vector<16x16x8xbf16>
    %10 = vector.shape_cast %9 : vector<16x16x8xbf16> to vector<256x8xbf16>
    %c1 = arith.constant 1 : index
    %c0_7 = arith.constant 0 : index
    %c0_8 = arith.constant 0 : index
    %11 = vector.load %arg2[%c1, %c0_7, %c0_8] : memref<9x8x4xbf16, #tpu.memory_space<vmem>>, vector<1x8x4xbf16>
    %12 = vector.shape_cast %11 : vector<1x8x4xbf16> to vector<8x4xbf16>
    %cst_9 = arith.constant dense<0.000000e+00> : vector<256x4xf32>
    %13 = tpu.matmul %10, %12, %cst_9 {dimension_numbers = #tpu.dot_dimension_numbers<[1], [0], [0], [1], [0, 0, 1, 1], [], []>} : vector<256x8xbf16>, vector<8x4xbf16>, vector<256x4xf32> -> vector<256x4xf32>
    %14 = arith.addf %8, %13 : vector<256x4xf32>
    %15 = vector.extract_strided_slice %1 {offsets = [0, 2, 0], sizes = [16, 16, 8], strides = [1, 1, 1]} : vector<18x18x8xbf16> to vector<16x16x8xbf16>
    %16 = vector.shape_cast %15 : vector<16x16x8xbf16> to vector<256x8xbf16>
    %c2 = arith.constant 2 : index
    %c0_10 = arith.constant 0 : index
    %c0_11 = arith.constant 0 : index
    %17 = vector.load %arg2[%c2, %c0_10, %c0_11] : memref<9x8x4xbf16, #tpu.memory_space<vmem>>, vector<1x8x4xbf16>
    %18 = vector.shape_cast %17 : vector<1x8x4xbf16> to vector<8x4xbf16>
    %cst_12 = arith.constant dense<0.000000e+00> : vector<256x4xf32>
    %19 = tpu.matmul %16, %18, %cst_12 {dimension_numbers = #tpu.dot_dimension_numbers<[1], [0], [0], [1], [0, 0, 1, 1], [], []>} : vector<256x8xbf16>, vector<8x4xbf16>, vector<256x4xf32> -> vector<256x4xf32>
    %20 = arith.addf %14, %19 : vector<256x4xf32>
    %21 = vector.extract_strided_slice %1 {offsets = [1, 0, 0], sizes = [16, 16, 8], strides = [1, 1, 1]} : vector<18x18x8xbf16> to vector<16x16x8xbf16>
    %22 = vector.shape_cast %21 : vector<16x16x8xbf16> to vector<256x8xbf16>
    %c3 = arith.constant 3 : index
    %c0_13 = arith.constant 0 : index
    %c0_14 = arith.constant 0 : index
    %23 = vector.load %arg2[%c3, %c0_13, %c0_14] : memref<9x8x4xbf16, #tpu.memory_space<vmem>>, vector<1x8x4xbf16>
    %24 = vector.shape_cast %23 : vector<1x8x4xbf16> to vector<8x4xbf16>
    %cst_15 = arith.constant dense<0.000000e+00> : vector<256x4xf32>
    %25 = tpu.matmul %22, %24, %cst_15 {dimension_numbers = #tpu.dot_dimension_numbers<[1], [0], [0], [1], [0, 0, 1, 1], [], []>} : vector<256x8xbf16>, vector<8x4xbf16>, vector<256x4xf32> -> vector<256x4xf32>
    %26 = arith.addf %20, %25 : vector<256x4xf32>
    %27 = vector.extract_strided_slice %1 {offsets = [1, 1, 0], sizes = [16, 16, 8], strides = [1, 1, 1]} : vector<18x18x8xbf16> to vector<16x16x8xbf16>
    %28 = vector.shape_cast %27 : vector<16x16x8xbf16> to vector<256x8xbf16>
    %c4 = arith.constant 4 : index
    %c0_16 = arith.constant 0 : index
    %c0_17 = arith.constant 0 : index
    %29 = vector.load %arg2[%c4, %c0_16, %c0_17] : memref<9x8x4xbf16, #tpu.memory_space<vmem>>, vector<1x8x4xbf16>
    %30 = vector.shape_cast %29 : vector<1x8x4xbf16> to vector<8x4xbf16>
    %cst_18 = arith.constant dense<0.000000e+00> : vector<256x4xf32>
    %31 = tpu.matmul %28, %30, %cst_18 {dimension_numbers = #tpu.dot_dimension_numbers<[1], [0], [0], [1], [0, 0, 1, 1], [], []>} : vector<256x8xbf16>, vector<8x4xbf16>, vector<256x4xf32> -> vector<256x4xf32>
    %32 = arith.addf %26, %31 : vector<256x4xf32>
    %33 = vector.extract_strided_slice %1 {offsets = [1, 2, 0], sizes = [16, 16, 8], strides = [1, 1, 1]} : vector<18x18x8xbf16> to vector<16x16x8xbf16>
    %34 = vector.shape_cast %33 : vector<16x16x8xbf16> to vector<256x8xbf16>
    %c5 = arith.constant 5 : index
    %c0_19 = arith.constant 0 : index
    %c0_20 = arith.constant 0 : index
    %35 = vector.load %arg2[%c5, %c0_19, %c0_20] : memref<9x8x4xbf16, #tpu.memory_space<vmem>>, vector<1x8x4xbf16>
    %36 = vector.shape_cast %35 : vector<1x8x4xbf16> to vector<8x4xbf16>
    %cst_21 = arith.constant dense<0.000000e+00> : vector<256x4xf32>
    %37 = tpu.matmul %34, %36, %cst_21 {dimension_numbers = #tpu.dot_dimension_numbers<[1], [0], [0], [1], [0, 0, 1, 1], [], []>} : vector<256x8xbf16>, vector<8x4xbf16>, vector<256x4xf32> -> vector<256x4xf32>
    %38 = arith.addf %32, %37 : vector<256x4xf32>
    %39 = vector.extract_strided_slice %1 {offsets = [2, 0, 0], sizes = [16, 16, 8], strides = [1, 1, 1]} : vector<18x18x8xbf16> to vector<16x16x8xbf16>
    %40 = vector.shape_cast %39 : vector<16x16x8xbf16> to vector<256x8xbf16>
    %c6 = arith.constant 6 : index
    %c0_22 = arith.constant 0 : index
    %c0_23 = arith.constant 0 : index
    %41 = vector.load %arg2[%c6, %c0_22, %c0_23] : memref<9x8x4xbf16, #tpu.memory_space<vmem>>, vector<1x8x4xbf16>
    %42 = vector.shape_cast %41 : vector<1x8x4xbf16> to vector<8x4xbf16>
    %cst_24 = arith.constant dense<0.000000e+00> : vector<256x4xf32>
    %43 = tpu.matmul %40, %42, %cst_24 {dimension_numbers = #tpu.dot_dimension_numbers<[1], [0], [0], [1], [0, 0, 1, 1], [], []>} : vector<256x8xbf16>, vector<8x4xbf16>, vector<256x4xf32> -> vector<256x4xf32>
    %44 = arith.addf %38, %43 : vector<256x4xf32>
    %45 = vector.extract_strided_slice %1 {offsets = [2, 1, 0], sizes = [16, 16, 8], strides = [1, 1, 1]} : vector<18x18x8xbf16> to vector<16x16x8xbf16>
    %46 = vector.shape_cast %45 : vector<16x16x8xbf16> to vector<256x8xbf16>
    %c7 = arith.constant 7 : index
    %c0_25 = arith.constant 0 : index
    %c0_26 = arith.constant 0 : index
    %47 = vector.load %arg2[%c7, %c0_25, %c0_26] : memref<9x8x4xbf16, #tpu.memory_space<vmem>>, vector<1x8x4xbf16>
    %48 = vector.shape_cast %47 : vector<1x8x4xbf16> to vector<8x4xbf16>
    %cst_27 = arith.constant dense<0.000000e+00> : vector<256x4xf32>
    %49 = tpu.matmul %46, %48, %cst_27 {dimension_numbers = #tpu.dot_dimension_numbers<[1], [0], [0], [1], [0, 0, 1, 1], [], []>} : vector<256x8xbf16>, vector<8x4xbf16>, vector<256x4xf32> -> vector<256x4xf32>
    %50 = arith.addf %44, %49 : vector<256x4xf32>
    %51 = vector.extract_strided_slice %1 {offsets = [2, 2, 0], sizes = [16, 16, 8], strides = [1, 1, 1]} : vector<18x18x8xbf16> to vector<16x16x8xbf16>
    %52 = vector.shape_cast %51 : vector<16x16x8xbf16> to vector<256x8xbf16>
    %c8 = arith.constant 8 : index
    %c0_28 = arith.constant 0 : index
    %c0_29 = arith.constant 0 : index
    %53 = vector.load %arg2[%c8, %c0_28, %c0_29] : memref<9x8x4xbf16, #tpu.memory_space<vmem>>, vector<1x8x4xbf16>
    %54 = vector.shape_cast %53 : vector<1x8x4xbf16> to vector<8x4xbf16>
    %cst_30 = arith.constant dense<0.000000e+00> : vector<256x4xf32>
    %55 = tpu.matmul %52, %54, %cst_30 {dimension_numbers = #tpu.dot_dimension_numbers<[1], [0], [0], [1], [0, 0, 1, 1], [], []>} : vector<256x8xbf16>, vector<8x4xbf16>, vector<256x4xf32> -> vector<256x4xf32>
    %56 = arith.addf %50, %55 : vector<256x4xf32>
    %c0_31 = arith.constant 0 : index
    %c0_32 = arith.constant 0 : index
    %57 = vector.load %arg3[%c0_31, %c0_32] : memref<1x4xf32, #tpu.memory_space<vmem>>, vector<1x4xf32>
    %58 = vector.broadcast %57 : vector<1x4xf32> to vector<256x4xf32>
    %59 = arith.addf %56, %58 : vector<256x4xf32>
    %c0_33 = arith.constant 0 : index
    %c0_34 = arith.constant 0 : index
    %c0_35 = arith.constant 0 : index
    %60 = vector.load %arg4[%c0_33, %c0_34, %c0_35] : memref<1x256x4xf32, #tpu.memory_space<vmem>>, vector<1x256x4xf32>
    %61 = vector.shape_cast %60 : vector<1x256x4xf32> to vector<256x4xf32>
    %62 = vector.shape_cast %59 : vector<256x4xf32> to vector<1x256x4xf32>
    tpu.vector_store %arg4[%c0_33, %c0_34, %c0_35], %62 {strides = array<i32>} : memref<1x256x4xf32, #tpu.memory_space<vmem>>, vector<1x256x4xf32>,
    return
  }
  func.func @transform_0(%arg0: i32) -> (i32, i32, i32, i32) {
    %c0_i32 = arith.constant 0 : i32
    %c0_i32_0 = arith.constant 0 : i32
    %c0_i32_1 = arith.constant 0 : i32
    %c0_i32_2 = arith.constant 0 : i32
    return %arg0, %c0_i32, %c0_i32_0, %c0_i32_1 : i32, i32, i32, i32
  }
  func.func @transform_1(%arg0: i32) -> (i32, i32, i32) {
    %c0_i32 = arith.constant 0 : i32
    %c0_i32_0 = arith.constant 0 : i32
    %c0_i32_1 = arith.constant 0 : i32
    %c0_i32_2 = arith.constant 0 : i32
    return %c0_i32, %c0_i32_0, %c0_i32_1 : i32, i32, i32
  }
  func.func @transform_2(%arg0: i32) -> (i32, i32) {
    %c0_i32 = arith.constant 0 : i32
    %c0_i32_0 = arith.constant 0 : i32
    %c0_i32_1 = arith.constant 0 : i32
    return %c0_i32, %c0_i32_0 : i32, i32
  }
  func.func @transform_3(%arg0: i32) -> (i32, i32, i32) {
    %c0_i32 = arith.constant 0 : i32
    %c0_i32_0 = arith.constant 0 : i32
    %c0_i32_1 = arith.constant 0 : i32
    return %arg0, %c0_i32, %c0_i32_0 : i32, i32, i32
  }
}

</mosaic_0001>

<bundles_post_ra>
// kernel: quant_model_forward.3
= control target key start
LH: loop header
LB: loop body
LE: loop exit
PB: predicated region body
PF: predicated region fallthrough
CT: control target
= control target key end

     0   :  { %s2683_s12 = smov 0   ;;  %s3852_s0 = inlined_call_operand.vmem [shape: bf16[2,18,18,8], index: 0, kind: input, shape index: {}]   ;;  %s3853_s1 = inlined_call_operand.vmem [shape: bf16[9,8,4], index: 1, kind: input, shape index: {}]   ;;  %s3854_s2 = inlined_call_operand.vmem [shape: f32[1,4], index: 2, kind: input, shape index: {}]   ;;  %s3855_s3 = inlined_call_operand.vmem [shape: f32[2,256,4], index: 3, kind: output, shape index: {}]  }
   0x1 LB: > { %s2363_s13 = sadd.s32 4294967295, %s2661_s12   ;;  %p2367_p0 = scmp.ge.s32.totalorder %s2661_s12, 1  ;;  %s2661_s12 = sphi %s2683_s12, %s13_s12  }
   0x2   : > { %p137_p1 = scmp.lt.s32.totalorder %s2661_s12, 3 }
   0x4   : > { %p138_p2 = pnand %p2367_p0, %p137_p1 }
   0x6   : > { %141 = sbr.rel (%p138_p2) target bundleno = 756 (0x2f4), region = 32 }
   0xb   : > { %v2371_v0 = vld [vmem:[%s3853_s1 + $0x4] sm:$0xf]  ;;  %vm713_vm0 = vcmask 1043456   ;;  %p161_p3 = scmp.lt.s32.totalorder %s2363_s13, 1  ;;  %v2484_v2 = vld [vmem:[%s3853_s1 + $0x8] sm:$0xf] }
   0xc   : > { %v715_v1 = vsel %vm713_vm0, %v2371_v0, 0  ;;  %v1256_v3 = vsel %vm713_vm0, %v2484_v2, 0  ;;  %v2501_v4 = vld [vmem:[%s3853_s1 + $0xc] sm:$0xf]  ;;  %v226_v5 = vld [vmem:[%s3853_s1] sm:$0xf] }
   0xd   : > { %2634 = vmatpush.bf16.msra.mxu1 %v715_v1  ;;  %2635 = vmatpush.bf16.msra.mxu2 %v715_v1  ;;  %s3995_s13 = smov (!%p161_p3, %s2363_s13), 1  ;;  %v2522_v6 = vld [vmem:[%s3853_s1 + $0x10] sm:$0xf]  ;;  %v1390_v7 = vsel %vm713_vm0, %v2501_v4, 0  ;;  %v935_v8 = vsel %vm713_vm0, %v226_v5, 0  ;;  %vm664_vm4 = vcmask 64512  }
   0xe   : > { %2636 = vmatpush.bf16.msra.mxu3 %v715_v1  ;;  %724 = vmatpush.bf16.msra.mxu0 %v715_v1  ;;  %s2637_s24 = smul.u32 216, %s3995_s13  ;;  %v1546_v9 = vsel %vm713_vm0, %v2522_v6, 0  ;;  %vm227_vm1 = vsmask.f32 3328  ;;  %vm228_vm2 = vsmask.f32 7440 }
   0xf   : > { %vm2744_vm3 = vmor %vm227_vm1, %vm228_vm2  ;;  %vm1042_vm5 = vcmask 1042432   ;;  %vm1043_vm6 = vcmask 1046532   ;;  %s2615_s9 = sshll.u32 %s3995_s13, 8  ;;  %vm2275_vm8 = vcmask 31744  }
  0x10   : > { %s2717_s27 = scalar_lea.vmem %s3852_s0, %s2637_s24  ;;  %vm3047_vm7 = vmor %vm1042_vm5, %vm1043_vm6  ;;  %s3643_s13 = scalar_lea.vmem %s3855_s3, %s2615_s9 }
  0x11   : > { %1265 = vmatpush.bf16.msrb.mxu2 %v1256_v3  ;;  %944 = vmatpush.bf16.msrb.mxu1 %v935_v8  ;;  %v2720_v10 = vld [vmem:[%s2717_s27 + $0x30] sm:$0xf]  ;;  %v2723_v11 = vld [vmem:[%s2717_s27 + $0x34] sm:$0xf]  ;;  %v2726_v12 = vld [vmem:[%s2717_s27 + $0x38] sm:$0x1] }
  0x12   : > { %1399 = vmatpush.bf16.msrb.mxu3 %v1390_v7  ;;  %1555 = vmatpush.bf16.msrb.mxu0 %v1546_v9  ;;  %v327_v13 = vshrl.u32 %v2720_v10, 16  ;;  %v330_v14 = vshll.u32 %v2720_v10, 16  ;;  %v336_v15 = vshll.u32 %v2723_v11, 16  ;;  %v340_v16 = vshrl.u32 %v2723_v11, 16  ;;  %v196_v17 = vld [vmem:[%s2717_s27 + $0x60] sm:$0xf] }
  0x13   : > { %v346_v18 = vshll.u32 %v2726_v12, 16  ;;  %v2735_v19 = vld [vmem:[%s2717_s27 + $0x64] sm:$0xf]  ;;  %v198_v20 = vld [vmem:[%s2717_s27 + $0x68] sm:$0x1]  ;;  %v423_v21 = vshrl.u32 %v196_v17, 16 }
  0x14   : > { %v329_v22 = vrot.slane %v327_v13, 4  ;;  %v332_v23 = vrot.slane %v330_v14, 5  ;;  %v338_v24 = vrot.slane %v336_v15, 5  ;;  %v342_v25 = vrot.slane %v340_v16, 4  ;;  %v208_v26 = vld [vmem:[%s2717_s27 + $0x90] sm:$0xf] }
  0x15   : > { %v348_v27 = vrot.slane %v346_v18, 5  ;;  %v425_v28 = vrot.slane %v423_v21, 4  ;;  %v426_v29 = vshll.u32 %v196_v17, 16  ;;  %v432_v30 = vshll.u32 %v2735_v19, 16  ;;  %v209_v35 = vld [vmem:[%s2717_s27 + $0x94] sm:$0xf] }
  0x16   : > { %v333_v31 = vor.u32 %v332_v23, %v329_v22  ;;  %v343_v32 = vor.u32 %v342_v25, %v338_v24  ;;  %v436_v33 = vshrl.u32 %v2735_v19, 16  ;;  %v442_v34 = vshll.u32 %v198_v20, 16  ;;  %v210_v45 = vld [vmem:[%s2717_s27 + $0x98] sm:$0x1]  ;;  %v2754_v61 = vld [vmem:[%s2717_s27] sm:$0xf] }
  0x17   : > { %v428_v37 = vrot.slane %v426_v29, 5  ;;  %v434_v38 = vrot.slane %v432_v30, 5  ;;  %v519_v39 = vshrl.u32 %v208_v26, 16  ;;  %v522_v47 = vshll.u32 %v208_v26, 16  ;;  %v2761_v1 = vld [vmem:[%s2717_s27 + $0x4] sm:$0xf] }
  0x18   : > { %v334_v40 = vrot.slane %v333_v31, 4  ;;  %v344_v41 = vrot.slane %v343_v32, 4  ;;  %v438_v42 = vrot.slane %v436_v33, 4  ;;  %v444_v43 = vrot.slane %v442_v34, 5  ;;  %v2764_v2 = vld [vmem:[%s2717_s27 + $0x8] sm:$0x1] }
  0x19   : > { %v429_v44 = vor.u32 %v428_v37, %v425_v28  ;;  %v521_v46 = vrot.slane %v519_v39, 4  ;;  %v528_v48 = vshll.u32 %v209_v35, 16  ;;  %v532_v52 = vshrl.u32 %v209_v35, 16  ;;  %v2780_v23 = vld [vmem:[%s2717_s27 + $0x3c] sm:$0xf] }
  0x1a   : > { %v339_v49 = vsel %vm2744_vm3, %v334_v40, %v338_v24  ;;  %v349_v50 = vsel %vm2744_vm3, %v344_v41, %v348_v27  ;;  %v439_v51 = vor.u32 %v438_v42, %v434_v38  ;;  %v524_v56 = vrot.slane %v522_v47, 5  ;;  %v2783_v24 = vld [vmem:[%s2717_s27 + $0x40] sm:$0xf]  ;;  %v2788_v29 = vld [vmem:[%s2717_s27 + $0x44] sm:$0x1] }
  0x1b   : > { %v624_v53 = vunpack.c.l.b16 %v339_v49  ;;  %v625_v54 = vunpack.c.l.b16 %v349_v50  ;;  %v430_v55 = vrot.slane %v429_v44, 4  ;;  %v530_v58 = vrot.slane %v528_v48, 5  ;;  %v2803_v47 = vld [vmem:[%s2717_s27 + $0x70] sm:$0xf] }
  0x1c   : > { %v440_v57 = vrot.slane %v439_v51, 4  ;;  %v534_v59 = vrot.slane %v532_v52, 4  ;;  %v538_v60 = vshll.u32 %v210_v45, 16  ;;  %v525_v0 = vor.u32 %v524_v56, %v521_v46  ;;  %v2810_v51 = vld [vmem:[%s2717_s27 + $0x74] sm:$0x1] }
  0x1d   : > { %v2756_v62 = vpack.c.b16 %v625_v54, %v624_v53  ;;  %v435_v63 = vsel %vm2744_vm3, %v430_v55, %v434_v38  ;;  %v231_v9 = vshrl.u32 %v2754_v61, 16  ;;  %v234_v13 = vshll.u32 %v2754_v61, 16  ;;  %v2796_v38 = vld [vmem:[%s2717_s27 + $0x6c] sm:$0xf] }
  0x1e   : > { %v445_v3 = vsel %vm2744_vm3, %v440_v57, %v444_v43  ;;  %v632_v4 = vunpack.c.l.b16 %v435_v63  ;;  %v535_v5 = vor.u32 %v534_v59, %v530_v58  ;;  %v540_v6 = vrot.slane %v538_v60, 5 }
  0x1f   : > { %2376 = vmatmul.msk.bf16.vlgmr.msra.gmra.mxu1 %vm664_vm4, %v2756_v62  ;;  %v633_v7 = vunpack.c.l.b16 %v445_v3  ;;  %v526_v8 = vrot.slane %v525_v0, 4  ;;  %v240_v15 = vshll.u32 %v2761_v1, 16  ;;  %v244_v16 = vshrl.u32 %v2761_v1, 16 }
  0x20   : > { %v536_v14 = vrot.slane %v535_v5, 4  ;;  %v250_v17 = vshll.u32 %v2764_v2, 16  ;;  %v233_v21 = vrot.slane %v231_v9, 4  ;;  %v236_v22 = vrot.slane %v234_v13, 5  ;;  %v211_v5 = vld [vmem:[%s2717_s27 + $0x9c] sm:$0xf] }
  0x21   : > { %v2775_v18 = vpack.c.b16 %v633_v7, %v632_v4  ;;  %v531_v20 = vsel %vm2744_vm3, %v526_v8, %v530_v58  ;;  %v242_v27 = vrot.slane %v240_v15, 5  ;;  %v246_v28 = vrot.slane %v244_v16, 4  ;;  %v212_v9 = vld [vmem:[%s2717_s27 + $0xa0] sm:$0xf] }
  0x22   : > { %v541_v25 = vsel %vm2744_vm3, %v536_v14, %v540_v6  ;;  %v640_v26 = vunpack.c.l.b16 %v531_v20  ;;  %v237_v31 = vor.u32 %v236_v22, %v233_v21  ;;  %v252_v32 = vrot.slane %v250_v17, 5  ;;  %v213_v17 = vld [vmem:[%s2717_s27 + $0xa4] sm:$0x1] }
  0x23   : > { %3898 = vst [vmem:[#allocation2_spill] sm:$0xff] %v2775_v18  ;;  %2380 = vmatmul.msk.bf16.vlgmr.msra.gmra.mxu2 %vm664_vm4, %v2775_v18  ;;  %v641_v30 = vunpack.c.l.b16 %v541_v25  ;;  %v247_v33 = vor.u32 %v246_v28, %v242_v27  ;;  %v351_v34 = vshrl.u32 %v2780_v23, 16  ;;  %v354_v35 = vshll.u32 %v2780_v23, 16 }
  0x24   : > { %v360_v37 = vshll.u32 %v2783_v24, 16  ;;  %v238_v40 = vrot.slane %v237_v31, 4  ;;  %v364_v41 = vshrl.u32 %v2783_v24, 16  ;;  %v370_v42 = vshll.u32 %v2788_v29, 16 }
  0x25   : > { %v2798_v39 = vpack.c.b16 %v641_v30, %v640_v26  ;;  %v248_v43 = vrot.slane %v247_v33, 4  ;;  %v353_v44 = vrot.slane %v351_v34, 4  ;;  %v356_v45 = vrot.slane %v354_v35, 5  ;;  %v2828_v35 = vld [vmem:[%s2717_s27 + $0xc] sm:$0xf] }
  0x26   : > { %v362_v46 = vrot.slane %v360_v37, 5  ;;  %v243_v48 = vsel %vm2744_vm3, %v238_v40, %v242_v27  ;;  %v366_v49 = vrot.slane %v364_v41, 4  ;;  %v372_v50 = vrot.slane %v370_v42, 5 }
  0x27   : > { %3899 = vst [vmem:[#allocation3_spill] sm:$0xff] %v2798_v39  ;;  %2384 = vmatmul.msk.bf16.vlgmr.msra.gmra.mxu3 %vm664_vm4, %v2798_v39  ;;  %v447_v52 = vshrl.u32 %v2796_v38, 16  ;;  %v253_v53 = vsel %vm2744_vm3, %v248_v43, %v252_v32  ;;  %v616_v54 = vunpack.c.l.b16 %v243_v48  ;;  %v357_v55 = vor.u32 %v356_v45, %v353_v44  ;;  %v2835_v43 = vld [vmem:[%s2717_s27 + $0x10] sm:$0xf]  ;;  %v2838_v48 = vld [vmem:[%s2717_s27 + $0x14] sm:$0x1] }
  0x28   : > { %v450_v56 = vshll.u32 %v2796_v38, 16  ;;  %v617_v57 = vunpack.c.l.b16 %v253_v53  ;;  %v367_v58 = vor.u32 %v366_v49, %v362_v46  ;;  %v456_v60 = vshll.u32 %v2803_v47, 16  ;;  %v3015_v39 = vld [vmem:[%s2717_s27 + $0x2c] sm:$0x1] }
  0x29   : > { %v449_v59 = vrot.slane %v447_v52, 4  ;;  %v358_v63 = vrot.slane %v357_v55, 4  ;;  %v460_v3 = vshrl.u32 %v2803_v47, 16  ;;  %v466_v4 = vshll.u32 %v2810_v51, 16 }
  0x2a   : > { %v452_v0 = vrot.slane %v450_v56, 5  ;;  %v648_v6 = vpack.c.b16 %v617_v57, %v616_v54  ;;  %v368_v7 = vrot.slane %v367_v58, 4  ;;  %v458_v8 = vrot.slane %v456_v60, 5  ;;  %v2848_v58 = vld [vmem:[%s2717_s27 + $0x48] sm:$0xf] }
  0x2b   : > { %v363_v13 = vsel %vm2744_vm3, %v358_v63, %v362_v46  ;;  %v462_v15 = vrot.slane %v460_v3, 4  ;;  %v468_v16 = vrot.slane %v466_v4, 5  ;;  %v543_v22 = vshrl.u32 %v211_v5, 16  ;;  %v2853_v3 = vld [vmem:[%s2717_s27 + $0x4c] sm:$0xf] }
  0x2c   : > { %v453_v14 = vor.u32 %v452_v0, %v449_v59  ;;  %2372 = vmatmul.msk.bf16.vlgmr.msra.gmra.mxu0 %vm664_vm4, %v648_v6  ;;  %v373_v20 = vsel %vm2744_vm3, %v368_v7, %v372_v50  ;;  %v626_v21 = vunpack.c.l.b16 %v363_v13  ;;  %v546_v25 = vshll.u32 %v211_v5, 16 }
  0x2d   : > { %v627_v26 = vunpack.c.l.b16 %v373_v20  ;;  %v463_v28 = vor.u32 %v462_v15, %v458_v8  ;;  %v552_v30 = vshll.u32 %v212_v9, 16  ;;  %v545_v31 = vrot.slane %v543_v22, 4  ;;  %v2860_v15 = vld [vmem:[%s2717_s27 + $0x50] sm:$0x1] }
  0x2e   : > { %v454_v27 = vrot.slane %v453_v14, 4  ;;  %v548_v32 = vrot.slane %v546_v25, 5  ;;  %v556_v33 = vshrl.u32 %v212_v9, 16  ;;  %v562_v34 = vshll.u32 %v213_v17, 16 }
  0x2f   : > { %v2830_v37 = vpack.c.b16 %v627_v26, %v626_v21  ;;  %v464_v41 = vrot.slane %v463_v28, 4  ;;  %v554_v42 = vrot.slane %v552_v30, 5  ;;  %v255_v52 = vshrl.u32 %v2828_v35, 16  ;;  %v2871_v28 = vld [vmem:[%s2717_s27 + $0x78] sm:$0xf] }
  0x30   : > { %v459_v40 = vsel %vm2744_vm3, %v454_v27, %v458_v8  ;;  %v549_v45 = vor.u32 %v548_v32, %v545_v31  ;;  %v558_v46 = vrot.slane %v556_v33, 4  ;;  %v564_v50 = vrot.slane %v562_v34, 5  ;;  %v2875_v34 = vld [vmem:[%s2717_s27 + $0x7c] sm:$0xf] }
  0x31   : > { %v634_v44 = vunpack.c.l.b16 %v459_v40  ;;  %2377 = vmatmul.msk.bf16.gmra.mxu1 %vm664_vm4, %v2830_v37  ;;  %v469_v49 = vsel %vm2744_vm3, %v464_v41, %v468_v16  ;;  %v258_v53 = vshll.u32 %v2828_v35, 16  ;;  %v264_v57 = vshll.u32 %v2835_v43, 16 }
  0x32   : > { %v635_v54 = vunpack.c.l.b16 %v469_v49  ;;  %v550_v55 = vrot.slane %v549_v45, 4  ;;  %v559_v56 = vor.u32 %v558_v46, %v554_v42  ;;  %v257_v59 = vrot.slane %v255_v52, 4 }
  0x33   : > { %v260_v60 = vrot.slane %v258_v53, 5  ;;  %v268_v63 = vshrl.u32 %v2835_v43, 16  ;;  %v274_v0 = vshll.u32 %v2838_v48, 16  ;;  %v266_v7 = vrot.slane %v264_v57, 5 }
  0x34   : > { %v2855_v4 = vpack.c.b16 %v635_v54, %v634_v44  ;;  %v555_v5 = vsel %vm2744_vm3, %v550_v55, %v554_v42  ;;  %v560_v6 = vrot.slane %v559_v56, 4  ;;  %v375_v17 = vshrl.u32 %v2848_v58, 16 }
  0x35   : > { %v642_v8 = vunpack.c.l.b16 %v555_v5  ;;  %v261_v9 = vor.u32 %v260_v60, %v257_v59  ;;  %v270_v13 = vrot.slane %v268_v63, 4  ;;  %v276_v14 = vrot.slane %v274_v0, 5 }
  0x36   : > { %2381 = vmatmul.msk.bf16.gmra.mxu2 %vm664_vm4, %v2855_v4  ;;  %v565_v16 = vsel %vm2744_vm3, %v560_v6, %v564_v50  ;;  %v378_v20 = vshll.u32 %v2848_v58, 16  ;;  %v384_v21 = vshll.u32 %v2853_v3, 16  ;;  %v388_v27 = vshrl.u32 %v2853_v3, 16  ;;  %v2882_v50 = vld [vmem:[%s2717_s27 + $0x80] sm:$0x1] }
  0x37   : > { %v643_v22 = vunpack.c.l.b16 %v565_v16  ;;  %v262_v25 = vrot.slane %v261_v9, 4  ;;  %v271_v26 = vor.u32 %v270_v13, %v266_v7  ;;  %v377_v30 = vrot.slane %v375_v17, 4  ;;  %v2901_v16 = vld [vmem:[%s2717_s27 + $0xac] sm:$0xf]  ;;  %v2904_v17 = vld [vmem:[%s2717_s27 + $0xb0] sm:$0x1] }
  0x38   : > { %v380_v31 = vrot.slane %v378_v20, 5  ;;  %v386_v32 = vrot.slane %v384_v21, 5  ;;  %v394_v33 = vshll.u32 %v2860_v15, 16  ;;  %v390_v44 = vrot.slane %v388_v27, 4  ;;  %3902 = vst [vmem:[#allocation6_spill] sm:$0xff] %v2901_v16 }
  0x39   : > { %v2877_v40 = vpack.c.b16 %v643_v22, %v642_v8  ;;  %v267_v41 = vsel %vm2744_vm3, %v262_v25, %v266_v7  ;;  %v272_v42 = vrot.slane %v271_v26, 4  ;;  %v471_v52 = vshrl.u32 %v2871_v28, 16  ;;  %v2894_v8 = vld [vmem:[%s2717_s27 + $0xa8] sm:$0xf]  ;;  %3903 = vst [vmem:[#allocation7_spill] sm:$0xff] %v2904_v17 }
  0x3a   : > { %v618_v45 = vunpack.c.l.b16 %v267_v41  ;;  %v381_v46 = vor.u32 %v380_v31, %v377_v30  ;;  %v396_v49 = vrot.slane %v394_v33, 5  ;;  %v391_v54 = vor.u32 %v390_v44, %v386_v32  ;;  %3901 = vst [vmem:[#allocation5_spill] sm:$0xff] %v2894_v8 }
  0x3b   : > { %3900 = vst [vmem:[#allocation4_spill] sm:$0xff] %v2877_v40  ;;  %2385 = vmatmul.msk.bf16.gmra.mxu3 %vm664_vm4, %v2877_v40  ;;  %v277_v53 = vsel %vm2744_vm3, %v272_v42, %v276_v14  ;;  %v474_v55 = vshll.u32 %v2871_v28, 16  ;;  %v480_v56 = vshll.u32 %v2875_v34, 16  ;;  %v473_v60 = vrot.slane %v471_v52, 4  ;;  %v2918_v52 = vld [vmem:[%s2717_s27 + $0x18] sm:$0xf] }
  0x3c   : > { %v619_v57 = vunpack.c.l.b16 %v277_v53  ;;  %v382_v59 = vrot.slane %v381_v46, 4  ;;  %v484_v63 = vshrl.u32 %v2875_v34, 16  ;;  %v392_v0 = vrot.slane %v391_v54, 4  ;;  %v3004_v40 = vld [vmem:[%s2717_s27 + $0x24] sm:$0xf] }
  0x3d   : > { %v476_v5 = vrot.slane %v474_v55, 5  ;;  %v482_v6 = vrot.slane %v480_v56, 5  ;;  %v490_v7 = vshll.u32 %v2882_v50, 16  ;;  %v567_v30 = vshrl.u32 %v2894_v8, 16  ;;  %v2923_v56 = vld [vmem:[%s2717_s27 + $0x1c] sm:$0xf] }
  0x3e   : > { %v2896_v9 = vpack.c.b16 %v619_v57, %v618_v45  ;;  %v387_v13 = vsel %vm2744_vm3, %v382_v59, %v386_v32  ;;  %v486_v14 = vrot.slane %v484_v63, 4  ;;  %v397_v20 = vsel %vm2744_vm3, %v392_v0, %v396_v49  ;;  %v2926_v57 = vld [vmem:[%s2717_s27 + $0x20] sm:$0x1] }
  0x3f   : > { %v628_v21 = vunpack.c.l.b16 %v387_v13  ;;  %v477_v22 = vor.u32 %v476_v5, %v473_v60  ;;  %v492_v25 = vrot.slane %v490_v7, 5  ;;  %v629_v26 = vunpack.c.l.b16 %v397_v20 }
  0x40   : > { %2373 = vmatmul.msk.bf16.gmra.mxu0 %vm664_vm4, %v2896_v9  ;;  %v487_v27 = vor.u32 %v486_v14, %v482_v6  ;;  %v570_v31 = vshll.u32 %v2894_v8, 16  ;;  %v576_v33 = vshll.u32 %v2901_v16, 16  ;;  %v580_v41 = vshrl.u32 %v2901_v16, 16 }
  0x41   : > { %v478_v32 = vrot.slane %v477_v22, 4  ;;  %v586_v42 = vshll.u32 %v2904_v17, 16  ;;  %v2915_v44 = vpack.c.b16 %v629_v26, %v628_v21  ;;  %v569_v46 = vrot.slane %v567_v30, 4  ;;  %v2938_v26 = vld [vmem:[%s2717_s27 + $0x54] sm:$0xf] }
  0x42   : > { %v488_v45 = vrot.slane %v487_v27, 4  ;;  %v572_v49 = vrot.slane %v570_v31, 5  ;;  %v578_v54 = vrot.slane %v576_v33, 5  ;;  %v582_v55 = vrot.slane %v580_v41, 4  ;;  %v2982_v17 = vld [vmem:[%s2717_s27 + $0xb4] sm:$0xf] }
  0x43   : > { %3904 = vst [vmem:[#allocation8_spill] sm:$0xff] %v2915_v44  ;;  %v483_v53 = vsel %vm2744_vm3, %v478_v32, %v482_v6  ;;  %2378 = vmatmul.msk.bf16.gmra.mxu1 %vm664_vm4, %v2915_v44  ;;  %v588_v0 = vrot.slane %v586_v42, 5  ;;  %v279_v6 = vshrl.u32 %v2918_v52, 16  ;;  %v282_v13 = vshll.u32 %v2918_v52, 16  ;;  %v2943_v32 = vld [vmem:[%s2717_s27 + $0x58] sm:$0xf] }
  0x44   : > { %v493_v59 = vsel %vm2744_vm3, %v488_v45, %v492_v25  ;;  %v636_v60 = vunpack.c.l.b16 %v483_v53  ;;  %v573_v63 = vor.u32 %v572_v49, %v569_v46  ;;  %v583_v7 = vor.u32 %v582_v55, %v578_v54  ;;  %v2948_v46 = vld [vmem:[%s2717_s27 + $0x5c] sm:$0x1]  ;;  %3907 = vst [vmem:[#allocation11_spill] sm:$0xff] %v2982_v17 }
  0x45   : > { %v637_v5 = vunpack.c.l.b16 %v493_v59  ;;  %v288_v20 = vshll.u32 %v2923_v56, 16  ;;  %v292_v21 = vshrl.u32 %v2923_v56, 16  ;;  %v298_v22 = vshll.u32 %v2926_v57, 16 }
  0x46   : > { %v574_v14 = vrot.slane %v573_v63, 4  ;;  %v584_v27 = vrot.slane %v583_v7, 4  ;;  %v281_v30 = vrot.slane %v279_v6, 4  ;;  %v284_v31 = vrot.slane %v282_v13, 5  ;;  %v2958_v7 = vld [vmem:[%s2717_s27 + $0x84] sm:$0xf] }
  0x47   : > { %v2940_v25 = vpack.c.b16 %v637_v5, %v636_v60  ;;  %v290_v41 = vrot.slane %v288_v20, 5  ;;  %v294_v42 = vrot.slane %v292_v21, 4  ;;  %v300_v45 = vrot.slane %v298_v22, 5  ;;  %3905 = vst [vmem:[#allocation9_spill] sm:$0xff] %v2958_v7 }
  0x48   : > { %v579_v33 = vsel %vm2744_vm3, %v574_v14, %v578_v54  ;;  %v589_v49 = vsel %vm2744_vm3, %v584_v27, %v588_v0  ;;  %v285_v55 = vor.u32 %v284_v31, %v281_v30  ;;  %v399_v59 = vshrl.u32 %v2938_v26, 16  ;;  %v2965_v30 = vld [vmem:[%s2717_s27 + $0x88] sm:$0xf] }
  0x49   : > { %2382 = vmatmul.msk.bf16.gmra.mxu2 %vm664_vm4, %v2940_v25  ;;  %v644_v53 = vunpack.c.l.b16 %v579_v33  ;;  %v645_v60 = vunpack.c.l.b16 %v589_v49  ;;  %v295_v63 = vor.u32 %v294_v42, %v290_v41  ;;  %v402_v54 = vshll.u32 %v2938_v26, 16  ;;  %v2970_v49 = vld [vmem:[%s2717_s27 + $0x8c] sm:$0x1] }
  0x4a   : > { %v408_v5 = vshll.u32 %v2943_v32, 16  ;;  %v286_v6 = vrot.slane %v285_v55, 4  ;;  %v401_v13 = vrot.slane %v399_v59, 4  ;;  %v412_v14 = vshrl.u32 %v2943_v32, 16 }
  0x4b   : > { %v418_v0 = vshll.u32 %v2948_v46, 16  ;;  %v2962_v20 = vpack.c.b16 %v645_v60, %v644_v53  ;;  %v296_v21 = vrot.slane %v295_v63, 4  ;;  %v404_v22 = vrot.slane %v402_v54, 5 }
  0x4c   : > { %v410_v27 = vrot.slane %v408_v5, 5  ;;  %v291_v31 = vsel %vm2744_vm3, %v286_v6, %v290_v41  ;;  %v414_v33 = vrot.slane %v412_v14, 4  ;;  %v495_v55 = vshrl.u32 %v2958_v7, 16 }
  0x4d   : > { %3906 = vst [vmem:[#allocation10_spill] sm:$0xff] %v2962_v20  ;;  %v420_v42 = vrot.slane %v418_v0, 5  ;;  %2386 = vmatmul.msk.bf16.gmra.mxu3 %vm664_vm4, %v2962_v20  ;;  %v301_v53 = vsel %vm2744_vm3, %v296_v21, %v300_v45  ;;  %v620_v59 = vunpack.c.l.b16 %v291_v31  ;;  %v405_v60 = vor.u32 %v404_v22, %v401_v13  ;;  %v2987_v22 = vld [vmem:[%s2717_s27 + $0xb8] sm:$0xf] }
  0x4e   : > { %v498_v63 = vshll.u32 %v2958_v7, 16  ;;  %v621_v54 = vunpack.c.l.b16 %v301_v53  ;;  %v415_v41 = vor.u32 %v414_v33, %v410_v27  ;;  %v497_v5 = vrot.slane %v495_v55, 4  ;;  %3908 = vst [vmem:[#allocation12_spill] sm:$0xff] %v2987_v22 }
  0x4f   : > { %v504_v6 = vshll.u32 %v2965_v30, 16  ;;  %v406_v14 = vrot.slane %v405_v60, 4  ;;  %v508_v8 = vshrl.u32 %v2965_v30, 16  ;;  %v514_v20 = vshll.u32 %v2970_v49, 16  ;;  %v2992_v60 = vld [vmem:[%s2717_s27 + $0xbc] sm:$0x1] }
  0x50   : > { %v500_v0 = vrot.slane %v498_v63, 5  ;;  %v2984_v45 = vpack.c.b16 %v621_v54, %v620_v59  ;;  %v416_v21 = vrot.slane %v415_v41, 4  ;;  %3909 = vst [vmem:[#allocation13_spill] sm:$0xff] %v2992_v60  ;;  %v591_v54 = vshrl.u32 %v2982_v17, 16 }
  0x51   : > { %v506_v13 = vrot.slane %v504_v6, 5  ;;  %v411_v31 = vsel %vm2744_vm3, %v406_v14, %v410_v27  ;;  %v510_v55 = vrot.slane %v508_v8, 4  ;;  %v516_v53 = vrot.slane %v514_v20, 5 }
  0x52   : > { %v501_v33 = vor.u32 %v500_v0, %v497_v5  ;;  %2374 = vmatmul.msk.bf16.gmra.mxu0 %vm664_vm4, %v2984_v45  ;;  %v421_v59 = vsel %vm2744_vm3, %v416_v21, %v420_v42  ;;  %v630_v63 = vunpack.c.l.b16 %v411_v31  ;;  %v594_v41 = vshll.u32 %v2982_v17, 16 }
  0x53   : > { %v631_v6 = vunpack.c.l.b16 %v421_v59  ;;  %v511_v5 = vor.u32 %v510_v55, %v506_v13  ;;  %v600_v8 = vshll.u32 %v2987_v22, 16  ;;  %v593_v20 = vrot.slane %v591_v54, 4 }
  0x54   : > { %v502_v27 = vrot.slane %v501_v33, 4  ;;  %v596_v14 = vrot.slane %v594_v41, 5  ;;  %v604_v0 = vshrl.u32 %v2987_v22, 16  ;;  %v610_v16 = vshll.u32 %v2992_v60, 16  ;;  %v3011_v33 = vld [vmem:[%s2717_s27 + $0x28] sm:$0xf] }
  0x55   : > { %v3006_v42 = vpack.c.b16 %v631_v6, %v630_v63  ;;  %v512_v31 = vrot.slane %v511_v5, 4  ;;  %v602_v59 = vrot.slane %v600_v8, 5  ;;  %v1050_v55 = vrot.slane %v2764_v2, 5 }
  0x56   : > { %v507_v21 = vsel %vm2744_vm3, %v502_v27, %v506_v13  ;;  %v597_v54 = vor.u32 %v596_v14, %v593_v20  ;;  %v606_v41 = vrot.slane %v604_v0, 4  ;;  %v612_v6 = vrot.slane %v610_v16, 5 }
  0x57   : > { %3910 = vst [vmem:[#allocation14_spill] sm:$0xff] %v3006_v42  ;;  %v638_v17 = vunpack.c.l.b16 %v507_v21  ;;  %2379 = vmatmul.msk.bf16.gmra.mxu1 %vm664_vm4, %v3006_v42  ;;  %v517_v63 = vsel %vm2744_vm3, %v512_v31, %v516_v53  ;;  %v303_v13 = vshrl.u32 %v3004_v40, 16  ;;  %v306_v27 = vshll.u32 %v3004_v40, 16 }
  0x58   : > { %v639_v5 = vunpack.c.l.b16 %v517_v63  ;;  %v598_v8 = vrot.slane %v597_v54, 4  ;;  %v607_v60 = vor.u32 %v606_v41, %v602_v59  ;;  %v312_v2 = vshll.u32 %v3011_v33, 16  ;;  %v2557_v54 = vld [vmem:[%s3853_s1 + $0x18] sm:$0xf]  ;;  %v2578_v41 = vld [vmem:[%s3853_s1 + $0x1c] sm:$0xf] }
  0x59   : > { %v305_v20 = vrot.slane %v303_v13, 4  ;;  %v308_v14 = vrot.slane %v306_v27, 5  ;;  %v316_v0 = vshrl.u32 %v3011_v33, 16  ;;  %v322_v21 = vshll.u32 %v3015_v39, 16 }
  0x5a   : > { %v3026_v22 = vpack.c.b16 %v639_v5, %v638_v17  ;;  %v603_v16 = vsel %vm2744_vm3, %v598_v8, %v602_v59  ;;  %v608_v53 = vrot.slane %v607_v60, 4  ;;  %v314_v31 = vrot.slane %v312_v2, 5  ;;  %v2540_v17 = vld [vmem:[%s3853_s1 + $0x14] sm:$0xf]  ;;  %v2596_v60 = vld [vmem:[%s3853_s1 + $0x20] sm:$0xf] }
  0x5b   : > { %v646_v63 = vunpack.c.l.b16 %v603_v16  ;;  %v309_v13 = vor.u32 %v308_v14, %v305_v20  ;;  %v318_v27 = vrot.slane %v316_v0, 4  ;;  %v324_v7 = vrot.slane %v322_v21, 5 }
  0x5c   : > { %3911 = vst [vmem:[#allocation15_spill] sm:$0xff] %v3026_v22  ;;  %2383 = vmatmul.msk.bf16.gmra.mxu2 %vm664_vm4, %v3026_v22  ;;  %v613_v59 = vsel %vm2744_vm3, %v608_v53, %v612_v6  ;;  %v2468_v5 = vrot.slane %v2754_v61, 9  ;;  %v1047_v0 = vrot.slane %v2761_v1, 5  ;;  %v1820_v21 = vsel %vm713_vm0, %v2557_v54, 0 }
  0x5d   : > { %v647_v8 = vunpack.c.l.b16 %v613_v59  ;;  %v310_v2 = vrot.slane %v309_v13, 4  ;;  %v319_v20 = vor.u32 %v318_v27, %v314_v31  ;;  %v1976_v16 = vsel %vm713_vm0, %v2578_v41, 0  ;;  %1829 = vmatpush.bf16.msra.mxu2 %v1820_v21  ;;  %v2617_v21 = vld [vmem:[%s2717_s27 + $0xc] sm:$0xff] }
  0x5e   : > { %v1686_v22 = vsel %vm713_vm0, %v2540_v17, 0  ;;  %v2116_v6 = vsel %vm713_vm0, %v2596_v60, 0  ;;  %v1048_v27 = vsel %vm3047_vm7, %v2468_v5, %v1047_v0  ;;  %1985 = vmatpush.bf16.msra.mxu3 %v1976_v16  ;;  %v1049_v54 = vrot.slane %v1047_v0, 4 }
  0x5f   : > { %v3056_v53 = vpack.c.b16 %v647_v8, %v646_v63  ;;  %v315_v61 = vsel %vm2744_vm3, %v310_v2, %v314_v31  ;;  %v320_v13 = vrot.slane %v319_v20, 4  ;;  %1695 = vmatpush.bf16.msra.mxu1 %v1686_v22  ;;  %2125 = vmatpush.bf16.msra.mxu0 %v2116_v6  ;;  %v2469_v41 = vrot.slane %v2828_v35, 9  ;;  %v2616_v22 = vld [vmem:[%s2717_s27] sm:$0xff]  ;;  %v3093_v6 = vld [vmem:[%s2717_s27 + $0x18] sm:$0xff] }
  0x60   : > { %v622_v1 = vunpack.c.l.b16 %v315_v61  ;;  %v1159_v31 = vunpack.c.l.b16 %v1048_v27  ;;  %v1054_v17 = vrot.slane %v2835_v43, 5  ;;  %v1057_v60 = vrot.slane %v2838_v48, 5 }
  0x61   : > { %2387 = vmatmul.msk.bf16.gmra.mxu3 %vm664_vm4, %v3056_v53  ;;  %v325_v63 = vsel %vm2744_vm3, %v320_v13, %v324_v7  ;;  %v1051_v5 = vsel %vm3047_vm7, %v1049_v54, %v1050_v55  ;;  %v1061_v16 = vrot.slane %v2923_v56, 5  ;;  %v2470_v61 = vrot.slane %v2918_v52, 9 }
  0x62   : > { %v623_v59 = vunpack.c.l.b16 %v325_v63  ;;  %v1160_v8 = vunpack.c.l.b16 %v1051_v5  ;;  %v1055_v35 = vsel %vm3047_vm7, %v2469_v41, %v1054_v17  ;;  %v1056_v2 = vrot.slane %v1054_v17, 4  ;;  %v3113_v41 = vld [vmem:[%s2717_s27 + $0x24] sm:$0xff] }
  0x63   : > { %v1161_v7 = vunpack.c.l.b16 %v1055_v35  ;;  %v1063_v13 = vrot.slane %v1061_v16, 4  ;;  %v1064_v27 = vrot.slane %v2926_v57, 5  ;;  %v1068_v57 = vrot.slane %v3011_v33, 5 }
  0x64   : > { %v3074_v20 = vpack.c.b16 %v623_v59, %v622_v1  ;;  %v1191_v0 = vpack.c.b16 %v1160_v8, %v1159_v31  ;;  %v1058_v43 = vsel %vm3047_vm7, %v1056_v2, %v1057_v60  ;;  %v2471_v63 = vrot.slane %v3004_v40, 9  ;;  %v3135_v8 = vld [vmem:[%s2717_s27 + $0x30] sm:$0xff] }
  0x65   : > { %v1162_v48 = vunpack.c.l.b16 %v1058_v43  ;;  %v1065_v56 = vsel %vm3047_vm7, %v1063_v13, %v1064_v27  ;;  %v1070_v31 = vrot.slane %v1068_v57, 4  ;;  %v1071_v17 = vrot.slane %v3015_v39, 5  ;;  %v3163_v27 = vld [vmem:[%s2717_s27 + $0x3c] sm:$0xff] }
  0x66   : > { %2375 = vmatmul.msk.bf16.gmra.mxu0 %vm664_vm4, %v3074_v20  ;;  %v1164_v54 = vunpack.c.l.b16 %v1065_v56  ;;  %v1069_v60 = vsel %vm3047_vm7, %v2471_v63, %v1068_v57  ;;  %v1075_v39 = vrot.slane %v2723_v11, 5  ;;  %v2472_v35 = vrot.slane %v2720_v10, 9 }
  0x67   : > { %2452 = vmatmul.msk.bf16.vlgmr.msrb.gmra.mxu1 %vm664_vm4, %v2616_v22  ;;  %v3081_v55 = vpack.c.b16 %v1162_v48, %v1161_v7  ;;  %v1072_v33 = vsel %vm3047_vm7, %v1070_v31, %v1071_v17  ;;  %v1165_v59 = vunpack.c.l.b16 %v1069_v60  ;;  %v1078_v7 = vrot.slane %v2726_v12, 5 }
  0x68   : > { %v1166_v5 = vunpack.c.l.b16 %v1072_v33  ;;  %v1077_v2 = vrot.slane %v1075_v39, 4  ;;  %v1082_v13 = vrot.slane %v2783_v24, 5  ;;  %v2473_v56 = vrot.slane %v2780_v23, 9 }
  0x6a   : > { %v3127_v40 = vpack.c.b16 %v1166_v5, %v1165_v59  ;;  %v1079_v11 = vsel %vm3047_vm7, %v1077_v2, %v1078_v7  ;;  %v1083_v24 = vsel %vm3047_vm7, %v2473_v56, %v1082_v13  ;;  %v1089_v5 = vrot.slane %v2853_v3, 5 }
  0x6b   : > { %v1169_v23 = vunpack.c.l.b16 %v1083_v24  ;;  %v2474_v7 = vrot.slane %v2848_v58, 9  ;;  %v1096_v24 = vrot.slane %v2943_v32, 5 }
  0x6c   : > { %2485 = vmatmul.msk.bf16.vlgmr.msrb.gmra.mxu2 %vm664_vm4, %v1191_v0  ;;  %v1076_v0 = vsel %vm3047_vm7, %v2472_v35, %v1075_v39  ;;  %v3197_v35 = vld [vmem:[%s2717_s27 + $0x48] sm:$0xff] }
  0x6d   : > { %v1167_v48 = vunpack.c.l.b16 %v1076_v0  ;;  %3916 = vst [vmem:[#allocation18_spill] sm:$0xff] %v3197_v35  ;;  %v1091_v0 = vrot.slane %v1089_v5, 4 }
  0x71   : > { %2506 = vmatmul.msk.bf16.vlgmr.msrb.gmra.mxu3 %vm664_vm4, %v2617_v21 }
  0x76   : > { %2523 = vmatmul.msk.bf16.vlgmr.msrb.gmra.mxu0 %vm664_vm4, %v2896_v9  ;;  %v1062_v9 = vsel %vm3047_vm7, %v2470_v61, %v1061_v16 }
  0x77   : > { %2453 = vmatmul.msk.bf16.gmra.mxu1 %vm664_vm4, %v2617_v21  ;;  %v1163_v1 = vunpack.c.l.b16 %v1062_v9  ;;  %v1168_v21 = vunpack.c.l.b16 %v1079_v11  ;;  %v1092_v11 = vrot.slane %v2860_v15, 5 }
  0x79   : > { %v3107_v52 = vpack.c.b16 %v1164_v54, %v1163_v1  ;;  %v3155_v12 = vpack.c.b16 %v1168_v21, %v1167_v48  ;;  %v1084_v1 = vrot.slane %v1082_v13, 4  ;;  %v1085_v54 = vrot.slane %v2788_v29, 5 }
  0x7a   : > { %v1090_v21 = vsel %vm3047_vm7, %v2474_v7, %v1089_v5  ;;  %v1093_v13 = vsel %vm3047_vm7, %v1091_v0, %v1092_v11  ;;  %v2475_v5 = vrot.slane %v2938_v26, 9  ;;  %v1098_v7 = vrot.slane %v1096_v24, 4 }
  0x7b   : > { %v1086_v63 = vsel %vm3047_vm7, %v1084_v1, %v1085_v54  ;;  %v1171_v56 = vunpack.c.l.b16 %v1090_v21  ;;  %v1172_v1 = vunpack.c.l.b16 %v1093_v13  ;;  %v1099_v0 = vrot.slane %v2948_v46, 5 }
  0x7c   : > { %2486 = vmatmul.msk.bf16.gmra.mxu2 %vm664_vm4, %v3081_v55  ;;  %v1170_v60 = vunpack.c.l.b16 %v1086_v63  ;;  %v1097_v32 = vsel %vm3047_vm7, %v2475_v5, %v1096_v24  ;;  %v1103_v5 = vrot.slane %v2735_v19, 5 }
  0x7d   : > { %v3221_v54 = vpack.c.b16 %v1172_v1, %v1171_v56  ;;  %v1100_v13 = vsel %vm3047_vm7, %v1098_v7, %v1099_v0  ;;  %v1173_v56 = vunpack.c.l.b16 %v1097_v32  ;;  %v2647_v32 = vld [vmem:[%s2717_s27 + $0x68] sm:$0x1] }
  0x7e   : > { %v3187_v33 = vpack.c.b16 %v1170_v60, %v1169_v23  ;;  %v3231_v60 = vld [vmem:[%s2717_s27 + $0x54] sm:$0xff]  ;;  %v1174_v46 = vunpack.c.l.b16 %v1100_v13  ;;  %v1106_v13 = vrot.slane %v2647_v32, 5 }
  0x7f   : > { %3919 = vst [vmem:[#allocation21_spill] sm:$0xff] %v3221_v54 }
  0x80   : > { %3920 = vst [vmem:[#allocation22_spill] sm:$0xff] %v3231_v60 }
  0x81   : > { %2507 = vmatmul.msk.bf16.gmra.mxu3 %vm664_vm4, %v3093_v6 }
  0x86   : > { %2524 = vmatmul.msk.bf16.gmra.mxu0 %vm664_vm4, %v2984_v45 }
  0x87   : > { %2454 = vmatmul.msk.bf16.gmra.mxu1 %vm664_vm4, %v3093_v6 }
  0x8c   : > { %2487 = vmatmul.msk.bf16.gmra.mxu2 %vm664_vm4, %v3107_v52 }
  0x91   : > { %2508 = vmatmul.msk.bf16.gmra.mxu3 %vm664_vm4, %v3113_v41 }
  0x96   : > { %2525 = vmatmul.msk.bf16.gmra.mxu0 %vm664_vm4, %v3074_v20 }
  0x97   : > { %2455 = vmatmul.msk.bf16.gmra.mxu1 %vm664_vm4, %v3113_v41 }
  0x9c   : > { %v3130_v22 = vpop.f32.mrf.mxu1  ;;  %2488 = vmatmul.msk.bf16.gmra.mxu2 %vm664_vm4, %v3127_v40 }
  0xa1   : > { %2509 = vmatmul.msk.bf16.gmra.mxu3 %vm664_vm4, %v3135_v8 }
  0xa4   : > { %v3145_v43 = vpop.f32.mrf.mxu1 }
  0xa6   : > { %v3147_v16 = vpop.f32.mrf.mxu2  ;;  %2526 = vmatmul.msk.bf16.gmra.mxu0 %vm664_vm4, %v2756_v62 }
  0xa7   : > { %2456 = vmatmul.msk.bf16.gmra.mxu1 %vm664_vm4, %v3135_v8 }
  0xa9   : > { %v3153_v10 = vpop.f32.mrf.mxu0 }
  0xaa   : > { %v3157_v61 = vpop.f32.mrf.mxu3 }
  0xab   : > { %3914 = vst [vmem:[#allocation16_spill] sm:$0xff] %v3157_v61 }
  0xac   : > { %2489 = vmatmul.msk.bf16.gmra.mxu2 %vm664_vm4, %v3155_v12 }
  0xae   : > { %v3165_v9 = vpop.f32.mrf.mxu1  ;;  %v3169_v57 = vpop.f32.mrf.mxu2 }
  0xb1   : > { %2510 = vmatmul.msk.bf16.gmra.mxu3 %vm664_vm4, %v3163_v27  ;;  %v3177_v31 = vpop.f32.mrf.mxu0 }
  0xb2   : > { %v3179_v17 = vpop.f32.mrf.mxu3 }
  0xb3   : > { %3915 = vst [vmem:[#allocation17_spill] sm:$0xff] %v3179_v17 }
  0xb6   : > { %2527 = vmatmul.msk.bf16.gmra.mxu0 %vm664_vm4, %v2830_v37  ;;  %v3183_v29 = vpop.f32.mrf.mxu1 }
  0xb7   : > { %2457 = vmatmul.msk.bf16.gmra.mxu1 %vm664_vm4, %v3163_v27 }
  0xb9   : > { %v3189_v59 = vpop.f32.mrf.mxu2 }
  0xbc   : > { %2490 = vmatmul.msk.bf16.gmra.mxu2 %vm664_vm4, %v3187_v33 }
  0xbd   : > { %v3192_v39 = vpop.f32.mrf.mxu0 }
  0xbe   : > { %v3199_v2 = vpop.f32.mrf.mxu3 }
  0xbf   : > { %3917 = vst [vmem:[#allocation19_spill] sm:$0xff] %v3199_v2 }
  0xc0   : > { %v3203_v48 = vpop.f32.mrf.mxu1 }
  0xc1   : > { %2511 = vmatmul.msk.bf16.gmra.mxu3 %vm664_vm4, %v3197_v35  ;;  %v3207_v3 = vpop.f32.mrf.mxu2 }
  0xc5   : > { %v3213_v58 = vpop.f32.mrf.mxu0 }
  0xc6   : > { %2528 = vmatmul.msk.bf16.gmra.mxu0 %vm664_vm4, %v2915_v44  ;;  %v3217_v15 = vpop.f32.mrf.mxu3 }
  0xc7   : > { %3918 = vst [vmem:[#allocation20_spill] sm:$0xff] %v3217_v15  ;;  %2458 = vmatmul.msk.bf16.gmra.mxu1 %vm664_vm4, %v3197_v35  ;;  %v3266_v15 = vld [vmem:[%s2717_s27 + $0x60] sm:$0xff] }
  0xc8   : > { %v3224_v63 = vpop.f32.mrf.mxu1  ;;  %3924 = vst [vmem:[#allocation26_spill] sm:$0xff] %v3266_v15 }
  0xcc   : > { %v3226_v23 = vpop.f32.mrf.mxu2  ;;  %2491 = vmatmul.msk.bf16.gmra.mxu2 %vm664_vm4, %v3221_v54 }
  0xcf   : > { %v3235_v11 = vpop.f32.mrf.mxu0 }
  0xd0   : > { %v3237_v21 = vpop.f32.mrf.mxu3 }
  0xd1   : > { %3921 = vst [vmem:[#allocation23_spill] sm:$0xff] %v3237_v21  ;;  %2512 = vmatmul.msk.bf16.gmra.mxu3 %vm664_vm4, %v3231_v60  ;;  %v3253_v21 = vpack.c.b16 %v1174_v46, %v1173_v56 }
  0xd3   : > { %3922 = vst [vmem:[#allocation24_spill] sm:$0xff] %v3253_v21 }
  0xd4   : > { %v3245_v26 = vpop.f32.mrf.mxu1  ;;  %v3247_v1 = vpop.f32.mrf.mxu2 }
  0xd6   : > { %2529 = vmatmul.msk.bf16.gmra.mxu0 %vm664_vm4, %v3006_v42  ;;  %v2648_v42 = vld [vmem:[%s2717_s27 + $0x60] sm:$0xf] }
  0xd7   : > { %2459 = vmatmul.msk.bf16.gmra.mxu1 %vm664_vm4, %v3231_v60  ;;  %v3255_v24 = vpop.f32.mrf.mxu0  ;;  %v2476_v2 = vrot.slane %v2648_v42, 9  ;;  %v1105_v60 = vrot.slane %v1103_v5, 4 }
  0xd8   : > { %v3258_v7 = vpop.f32.mrf.mxu3 }
  0xd9   : > { %3923 = vst [vmem:[#allocation25_spill] sm:$0xff] %v3258_v7  ;;  %v1104_v19 = vsel %vm3047_vm7, %v2476_v2, %v1103_v5  ;;  %v1107_v46 = vsel %vm3047_vm7, %v1105_v60, %v1106_v13  ;;  %v1110_v60 = vrot.slane %v2803_v47, 5 }
  0xda   : > { %v1175_v17 = vunpack.c.l.b16 %v1104_v19  ;;  %v1176_v42 = vunpack.c.l.b16 %v1107_v46  ;;  %v3299_v19 = vld [vmem:[%s2717_s27 + $0x6c] sm:$0xff] }
  0xdc   : > { %2492 = vmatmul.msk.bf16.gmra.mxu2 %vm664_vm4, %v3253_v21  ;;  %v3262_v0 = vpop.f32.mrf.mxu1  ;;  %v3288_v2 = vpack.c.b16 %v1176_v42, %v1175_v17  ;;  %v1112_v17 = vrot.slane %v1110_v60, 4 }
  0xde   : > { %3926 = vst [vmem:[#allocation28_spill] sm:$0xff] %v3288_v2 }
  0xdf   : > { %v3269_v56 = vpop.f32.mrf.mxu2 }
  0xe1   : > { %2513 = vmatmul.msk.bf16.gmra.mxu3 %vm664_vm4, %v3266_v15 }
  0xe3   : > { %v3277_v7 = vpop.f32.mrf.mxu0 }
  0xe4   : > { %v3279_v32 = vpop.f32.mrf.mxu3  ;;  %v946_v21 = vpop.f32.mrf.mxu1 }
  0xe5   : > { %3925 = vst [vmem:[#allocation27_spill] sm:$0xff] %v3279_v32  ;;  %v947_v54 = vadd.f32 %v946_v21, %v3153_v10  ;;  %v1113_v21 = vrot.slane %v2810_v51, 5  ;;  %v2477_v32 = vrot.slane %v2796_v38, 9 }
  0xe6   : > { %2530 = vmatmul.msk.bf16.gmra.mxu0 %vm664_vm4, %v2775_v18 }
  0xe7   : > { %v3284_v44 = vpop.f32.mrf.mxu2  ;;  %2460 = vmatmul.msk.bf16.gmra.mxu1 %vm664_vm4, %v3266_v15  ;;  %v1111_v47 = vsel %vm3047_vm7, %v2477_v32, %v1110_v60 }
  0xe8   : > { %v1177_v61 = vunpack.c.l.b16 %v1111_v47 }
  0xeb   : > { %v3291_v5 = vpop.f32.mrf.mxu0 }
  0xec   : > { %v3293_v13 = vpop.f32.mrf.mxu3  ;;  %2493 = vmatmul.msk.bf16.gmra.mxu2 %vm664_vm4, %v3288_v2  ;;  %v948_v10 = vpop.f32.mrf.mxu1 }
  0xed   : > { %3927 = vst [vmem:[#allocation29_spill] sm:$0xff] %v3293_v13  ;;  %v949_v46 = vadd.f32 %v948_v10, %v3177_v31  ;;  %v1114_v13 = vsel %vm3047_vm7, %v1112_v17, %v1113_v21  ;;  %v1117_v21 = vrot.slane %v2875_v34, 5 }
  0xee   : > { %v1178_v35 = vunpack.c.l.b16 %v1114_v13  ;;  %v1120_v13 = vrot.slane %v2882_v50, 5 }
  0xef   : > { %v1267_v42 = vpop.f32.mrf.mxu2 }
  0xf0   : > { %v1347_v18 = vadd.f32 %v1267_v42, %v947_v54  ;;  %v3316_v10 = vpack.c.b16 %v1178_v35, %v1177_v61  ;;  %v3323_v42 = vld [vmem:[%s2717_s27 + $0x78] sm:$0xff] }
  0xf1   : > { %2514 = vmatmul.msk.bf16.gmra.mxu3 %vm664_vm4, %v3299_v19 }
  0xf3   : > { %v1557_v2 = vpop.f32.mrf.mxu0 }
  0xf4   : > { %v1401_v51 = vpop.f32.mrf.mxu3  ;;  %v951_v15 = vpop.f32.mrf.mxu1 }
  0xf5   : > { %v1481_v31 = vadd.f32 %v1401_v51, %v1347_v18  ;;  %v952_v38 = vadd.f32 %v951_v15, %v3192_v39 }
  0xf6   : > { %2531 = vmatmul.msk.bf16.gmra.mxu0 %vm664_vm4, %v2855_v4 }
  0xf7   : > { %v1269_v54 = vpop.f32.mrf.mxu2  ;;  %2461 = vmatmul.msk.bf16.gmra.mxu1 %vm664_vm4, %v3299_v19  ;;  %v3314_v32 = vadd.f32 %v1557_v2, %v1481_v31  ;;  %v2478_v2 = vrot.slane %v2871_v28, 9 }
  0xf8   : > { %v1348_v60 = vadd.f32 %v1269_v54, %v949_v46  ;;  %v1119_v46 = vrot.slane %v1117_v21, 4 }
  0xf9   : > { %v1118_v50 = vsel %vm3047_vm7, %v2478_v2, %v1117_v21 }
  0xfa   : > { %v1121_v51 = vsel %vm3047_vm7, %v1119_v46, %v1120_v13  ;;  %v1127_v46 = vrot.slane %v2970_v49, 5 }
  0xfb   : > { %v1559_v17 = vpop.f32.mrf.mxu0 }
  0xfc   : > { %v1403_v18 = vpop.f32.mrf.mxu3  ;;  %2494 = vmatmul.msk.bf16.gmra.mxu2 %vm664_vm4, %v3316_v10  ;;  %v953_v39 = vpop.f32.mrf.mxu1 }
  0xfd   : > { %v1482_v15 = vadd.f32 %v1403_v18, %v1348_v60  ;;  %v954_v47 = vadd.f32 %v953_v39, %v3213_v58  ;;  %v1179_v58 = vunpack.c.l.b16 %v1118_v50  ;;  %v1180_v18 = vunpack.c.l.b16 %v1121_v51  ;;  %v3349_v50 = vld [vmem:[%s2717_s27 + $0x84] sm:$0xff] }
  0xff   : > { %v1272_v61 = vpop.f32.mrf.mxu2  ;;  %v3327_v35 = vadd.f32 %v1559_v17, %v1482_v15  ;;  %v3342_v13 = vpack.c.b16 %v1180_v18, %v1179_v58  ;;  %v1124_v15 = vrot.slane %v2965_v30, 5 }
 0x100   : > { %v1349_v34 = vadd.f32 %v1272_v61, %v952_v38 }
 0x101   : > { %2515 = vmatmul.msk.bf16.gmra.mxu3 %vm664_vm4, %v3323_v42 }
 0x103   : > { %v1562_v31 = vpop.f32.mrf.mxu0 }
 0x104   : > { %v1406_v54 = vpop.f32.mrf.mxu3  ;;  %v956_v60 = vpop.f32.mrf.mxu1 }
 0x105   : > { %v1483_v28 = vadd.f32 %v1406_v54, %v1349_v34  ;;  %v957_v17 = vadd.f32 %v956_v60, %v3235_v11 }
 0x106   : > { %2532 = vmatmul.msk.bf16.gmra.mxu0 %vm664_vm4, %v2940_v25 }
 0x107   : > { %v1274_v38 = vpop.f32.mrf.mxu2  ;;  %2462 = vmatmul.msk.bf16.gmra.mxu1 %vm664_vm4, %v3323_v42  ;;  %v3340_v21 = vadd.f32 %v1562_v31, %v1483_v28  ;;  %v3928_v31 = vld [vmem:[#allocation9_spill] sm:$0xff] }
 0x108   : > { %v1350_v39 = vadd.f32 %v1274_v38, %v954_v47  ;;  %v2479_v54 = vrot.slane %v3928_v31, 9  ;;  %v1126_v47 = vrot.slane %v1124_v15, 4 }
 0x10a   : > { %v1125_v49 = vsel %vm3047_vm7, %v2479_v54, %v1124_v15  ;;  %v1128_v18 = vsel %vm3047_vm7, %v1126_v47, %v1127_v46  ;;  %v2649_v54 = vld [vmem:[%s2717_s27 + $0x94] sm:$0xf] }
 0x10b   : > { %v1564_v2 = vpop.f32.mrf.mxu0  ;;  %v1131_v47 = vrot.slane %v2649_v54, 5 }
 0x10c   : > { %v1408_v61 = vpop.f32.mrf.mxu3  ;;  %2495 = vmatmul.msk.bf16.gmra.mxu2 %vm664_vm4, %v3342_v13  ;;  %v958_v11 = vpop.f32.mrf.mxu1 }
 0x10d   : > { %v1484_v34 = vadd.f32 %v1408_v61, %v1350_v39  ;;  %v959_v51 = vadd.f32 %v958_v11, %v3255_v24  ;;  %v1181_v39 = vunpack.c.l.b16 %v1125_v49  ;;  %v1182_v61 = vunpack.c.l.b16 %v1128_v18 }
 0x10f   : > { %v1277_v60 = vpop.f32.mrf.mxu2  ;;  %v3353_v58 = vadd.f32 %v1564_v2, %v1484_v34  ;;  %v3368_v31 = vpack.c.b16 %v1182_v61, %v1181_v39 }
 0x110   : > { %v1351_v30 = vadd.f32 %v1277_v60, %v957_v17  ;;  %v3930_v17 = vld [vmem:[#allocation15_spill] sm:$0xff] }
 0x111   : > { %3929 = vst [vmem:[#allocation9_spill] sm:$0xff] %v3353_v58  ;;  %2516 = vmatmul.msk.bf16.gmra.mxu3 %vm664_vm4, %v3349_v50 }
 0x112   : > { %3932 = vst [vmem:[#allocation31_spill] sm:$0xff] %v3368_v31 }
 0x113   : > { %v1567_v28 = vpop.f32.mrf.mxu0 }
 0x114   : > { %v1411_v24 = vpop.f32.mrf.mxu3  ;;  %v961_v38 = vpop.f32.mrf.mxu1 }
 0x115   : > { %v1485_v11 = vadd.f32 %v1411_v24, %v1351_v30  ;;  %v962_v2 = vadd.f32 %v961_v38, %v3277_v7  ;;  %v2650_v30 = vld [vmem:[%s2717_s27 + $0x98] sm:$0x1]  ;;  %v3375_v38 = vld [vmem:[%s2717_s27 + $0x90] sm:$0xff] }
 0x116   : > { %2533 = vmatmul.msk.bf16.gmra.mxu0 %vm664_vm4, %v3930_v17  ;;  %v1134_v49 = vrot.slane %v2650_v30, 5  ;;  %3933 = vst [vmem:[#allocation32_spill] sm:$0xff] %v3375_v38 }
 0x117   : > { %v1279_v34 = vpop.f32.mrf.mxu2  ;;  %2463 = vmatmul.msk.bf16.gmra.mxu1 %vm664_vm4, %v3349_v50  ;;  %v3366_v15 = vadd.f32 %v1567_v28, %v1485_v11  ;;  %v2651_v28 = vld [vmem:[%s2717_s27 + $0x90] sm:$0xf] }
 0x118   : > { %v1352_v46 = vadd.f32 %v1279_v34, %v959_v51  ;;  %v2480_v11 = vrot.slane %v2651_v28, 9  ;;  %v1133_v51 = vrot.slane %v1131_v47, 4 }
 0x119   : > { %3931 = vst [vmem:[#allocation30_spill] sm:$0xff] %v3366_v15 }
 0x11a   : > { %v1132_v54 = vsel %vm3047_vm7, %v2480_v11, %v1131_v47  ;;  %v2652_v11 = vld [vmem:[%s2717_s27 + $0xa0] sm:$0xf] }
 0x11b   : > { %v1569_v60 = vpop.f32.mrf.mxu0 }
 0x11c   : > { %v1413_v7 = vpop.f32.mrf.mxu3  ;;  %2496 = vmatmul.msk.bf16.gmra.mxu2 %vm664_vm4, %v3368_v31  ;;  %v963_v18 = vpop.f32.mrf.mxu1  ;;  %v2654_v31 = vld [vmem:[%s2717_s27 + $0x9c] sm:$0xf] }
 0x11d   : > { %v1486_v24 = vadd.f32 %v1413_v7, %v1352_v46  ;;  %v964_v58 = vadd.f32 %v963_v18, %v3291_v5  ;;  %v1135_v46 = vsel %vm3047_vm7, %v1133_v51, %v1134_v49  ;;  %v1183_v18 = vunpack.c.l.b16 %v1132_v54 }
 0x11e   : > { %v1184_v28 = vunpack.c.l.b16 %v1135_v46  ;;  %v1138_v51 = vrot.slane %v2652_v11, 5  ;;  %v2653_v46 = vld [vmem:[%s2717_s27 + $0xa4] sm:$0x1] }
 0x11f   : > { %v1282_v39 = vpop.f32.mrf.mxu2  ;;  %v3379_v61 = vadd.f32 %v1569_v60, %v1486_v24  ;;  %v3935_v60 = vld [vmem:[#allocation3_spill] sm:$0xff] }
 0x120   : > { %v1353_v34 = vadd.f32 %v1282_v39, %v962_v2  ;;  %v3393_v49 = vpack.c.b16 %v1184_v28, %v1183_v18 }
 0x121   : > { %3934 = vst [vmem:[#allocation33_spill] sm:$0xff] %v3379_v61  ;;  %2517 = vmatmul.msk.bf16.gmra.mxu3 %vm664_vm4, %v3375_v38 }
 0x122   : > { %3937 = vst [vmem:[#allocation35_spill] sm:$0xff] %v3393_v49 }
 0x123   : > { %v1572_v30 = vpop.f32.mrf.mxu0 }
 0x124   : > { %v1416_v7 = vpop.f32.mrf.mxu3  ;;  %v966_v5 = vpop.f32.mrf.mxu1 }
 0x125   : > { %v1487_v15 = vadd.f32 %v1416_v7, %v1353_v34  ;;  %v1141_v7 = vrot.slane %v2653_v46, 5 }
 0x126   : > { %2534 = vmatmul.msk.bf16.gmra.mxu0 %vm664_vm4, %v3935_v60  ;;  %v3400_v60 = vld [vmem:[%s2717_s27 + $0x9c] sm:$0xff] }
 0x127   : > { %v1284_v2 = vpop.f32.mrf.mxu2  ;;  %2464 = vmatmul.msk.bf16.gmra.mxu1 %vm664_vm4, %v3375_v38  ;;  %v3391_v47 = vadd.f32 %v1572_v30, %v1487_v15  ;;  %3938 = vst [vmem:[#allocation36_spill] sm:$0xff] %v3400_v60  ;;  %v2481_v38 = vrot.slane %v2654_v31, 9  ;;  %v1140_v15 = vrot.slane %v1138_v51, 4 }
 0x128   : > { %v1354_v24 = vadd.f32 %v1284_v2, %v964_v58  ;;  %v967_v58 = vadd.f32 %v966_v5, %v3130_v22  ;;  %v3940_v5 = vld [vmem:[#allocation4_spill] sm:$0xff] }
 0x129   : > { %3936 = vst [vmem:[#allocation34_spill] sm:$0xff] %v3391_v47  ;;  %v1139_v2 = vsel %vm3047_vm7, %v2481_v38, %v1138_v51 }
 0x12a   : > { %v1185_v31 = vunpack.c.l.b16 %v1139_v2 }
 0x12b   : > { %v1574_v39 = vpop.f32.mrf.mxu0 }
 0x12c   : > { %v1418_v54 = vpop.f32.mrf.mxu3  ;;  %2497 = vmatmul.msk.bf16.gmra.mxu2 %vm664_vm4, %v3393_v49  ;;  %v968_v34 = vpop.f32.mrf.mxu1 }
 0x12d   : > { %v1488_v61 = vadd.f32 %v1418_v54, %v1354_v24  ;;  %v1142_v24 = vsel %vm3047_vm7, %v1140_v15, %v1141_v7  ;;  %v3943_v15 = vld [vmem:[#allocation6_spill] sm:$0xff] }
 0x12e   : > { %v1186_v47 = vunpack.c.l.b16 %v1142_v24  ;;  %v3944_v24 = vld [vmem:[#allocation7_spill] sm:$0xff] }
 0x12f   : > { %v1287_v30 = vpop.f32.mrf.mxu2  ;;  %v3404_v18 = vadd.f32 %v1574_v39, %v1488_v61  ;;  %v969_v61 = vadd.f32 %v968_v34, %v3145_v43  ;;  %v3426_v34 = vld [vmem:[%s2717_s27 + $0xa8] sm:$0xff] }
 0x130   : > { %v1355_v28 = vadd.f32 %v1287_v30, %v967_v58  ;;  %v3419_v7 = vpack.c.b16 %v1186_v47, %v1185_v31  ;;  %v1145_v58 = vrot.slane %v3943_v15, 5  ;;  %3945 = vst [vmem:[#allocation6_spill] sm:$0xff] %v3426_v34 }
 0x131   : > { %3939 = vst [vmem:[#allocation37_spill] sm:$0xff] %v3404_v18  ;;  %2518 = vmatmul.msk.bf16.gmra.mxu3 %vm664_vm4, %v3400_v60  ;;  %v3946_v18 = vld [vmem:[#allocation5_spill] sm:$0xff] }
 0x132   : > { %3942 = vst [vmem:[#allocation39_spill] sm:$0xff] %v3419_v7 }
 0x133   : > { %v1577_v11 = vpop.f32.mrf.mxu0 }
 0x134   : > { %v1421_v54 = vpop.f32.mrf.mxu3  ;;  %v971_v46 = vpop.f32.mrf.mxu1 }
 0x135   : > { %v1489_v22 = vadd.f32 %v1421_v54, %v1355_v28  ;;  %v1148_v54 = vrot.slane %v3944_v24, 5 }
 0x136   : > { %2535 = vmatmul.msk.bf16.gmra.mxu0 %vm664_vm4, %v3940_v5  ;;  %v2482_v5 = vrot.slane %v3946_v18, 9 }
 0x137   : > { %v1289_v39 = vpop.f32.mrf.mxu2  ;;  %2465 = vmatmul.msk.bf16.gmra.mxu1 %vm664_vm4, %v3400_v60  ;;  %v3417_v38 = vadd.f32 %v1577_v11, %v1489_v22  ;;  %v1147_v11 = vrot.slane %v1145_v58, 4  ;;  %v972_v22 = vadd.f32 %v971_v46, %v3165_v9 }
 0x138   : > { %v1356_v51 = vadd.f32 %v1289_v39, %v969_v61  ;;  %v1146_v39 = vsel %vm3047_vm7, %v2482_v5, %v1145_v58  ;;  %v3444_v5 = vld [vmem:[%s2717_s27 + $0xc0] sm:$0xf] }
 0x139   : > { %3941 = vst [vmem:[#allocation38_spill] sm:$0xff] %v3417_v38  ;;  %v1187_v24 = vunpack.c.l.b16 %v1146_v39  ;;  %v3948_v38 = vld [vmem:[#allocation10_spill] sm:$0xff]  ;;  %v1514_v39 = vshrl.u32 %v3444_v5, 16 }
 0x13a   : > { %3949 = vst [vmem:[#allocation5_spill] sm:$0xff] %v3444_v5 }
 0x13b   : > { %v1579_v30 = vpop.f32.mrf.mxu0 }
 0x13c   : > { %v1423_v2 = vpop.f32.mrf.mxu3  ;;  %2498 = vmatmul.msk.bf16.gmra.mxu2 %vm664_vm4, %v3419_v7  ;;  %v973_v28 = vpop.f32.mrf.mxu1 }
 0x13d   : > { %v1490_v43 = vadd.f32 %v1423_v2, %v1356_v51  ;;  %v1149_v51 = vsel %vm3047_vm7, %v1147_v11, %v1148_v54 }
 0x13e   : > { %v1188_v9 = vunpack.c.l.b16 %v1149_v51 }
 0x13f   : > { %v1292_v47 = vpop.f32.mrf.mxu2  ;;  %v3430_v31 = vadd.f32 %v1579_v30, %v1490_v43  ;;  %v974_v30 = vadd.f32 %v973_v28, %v3183_v29  ;;  %v1517_v29 = vshll.u32 %v3444_v5, 16 }
 0x140   : > { %v1357_v61 = vadd.f32 %v1292_v47, %v972_v22  ;;  %v3448_v11 = vpack.c.b16 %v1188_v9, %v1187_v24  ;;  %v3451_v22 = vld [vmem:[%s2717_s27 + $0xc4] sm:$0xf]  ;;  %v3953_v47 = vld [vmem:[#allocation12_spill] sm:$0xff]  ;;  %v3954_v24 = vld [vmem:[#allocation13_spill] sm:$0xff] }
 0x141   : > { %3947 = vst [vmem:[#allocation7_spill] sm:$0xff] %v3430_v31  ;;  %2519 = vmatmul.msk.bf16.gmra.mxu3 %vm664_vm4, %v3426_v34  ;;  %v1523_v28 = vshll.u32 %v3451_v22, 16  ;;  %v1155_v9 = vrot.slane %v3954_v24, 5  ;;  %v1519_v7 = vrot.slane %v1517_v29, 5 }
 0x142   : > { %3951 = vst [vmem:[#allocation41_spill] sm:$0xff] %v3448_v11 }
 0x143   : > { %v1582_v15 = vpop.f32.mrf.mxu0  ;;  %3952 = vst [vmem:[#allocation42_spill] sm:$0xff] %v3451_v22 }
 0x144   : > { %v1426_v18 = vpop.f32.mrf.mxu3  ;;  %v976_v2 = vpop.f32.mrf.mxu1 }
 0x145   : > { %v1491_v46 = vadd.f32 %v1426_v18, %v1357_v61  ;;  %v1152_v61 = vrot.slane %v3953_v47, 5  ;;  %v1527_v18 = vshrl.u32 %v3451_v22, 16  ;;  %v977_v5 = vadd.f32 %v976_v2, %v3203_v48 }
 0x146   : > { %2536 = vmatmul.msk.bf16.gmra.mxu0 %vm664_vm4, %v3948_v38  ;;  %v1516_v38 = vrot.slane %v1514_v39, 4  ;;  %v1525_v22 = vrot.slane %v1523_v28, 5 }
 0x147   : > { %v1294_v43 = vpop.f32.mrf.mxu2  ;;  %2466 = vmatmul.msk.bf16.gmra.mxu1 %vm664_vm4, %v3426_v34  ;;  %v3446_v58 = vadd.f32 %v1582_v15, %v1491_v46  ;;  %v1529_v60 = vrot.slane %v1527_v18, 4 }
 0x148   : > { %v1358_v54 = vadd.f32 %v1294_v43, %v974_v30  ;;  %v3462_v30 = vld [vmem:[%s2717_s27 + $0xb4] sm:$0xff]  ;;  %v3955_v43 = vld [vmem:[#allocation11_spill] sm:$0xff]  ;;  %v1520_v2 = vor.u32 %v1519_v7, %v1516_v38 }
 0x149   : > { %3950 = vst [vmem:[#allocation40_spill] sm:$0xff] %v3446_v58  ;;  %v2483_v47 = vrot.slane %v3955_v43, 9  ;;  %v1154_v58 = vrot.slane %v1152_v61, 4  ;;  %v1530_v39 = vor.u32 %v1529_v60, %v1525_v22 }
 0x14b   : > { %v1584_v51 = vpop.f32.mrf.mxu0  ;;  %v1531_v38 = vrot.slane %v1530_v39, 4 }
 0x14c   : > { %v1428_v31 = vpop.f32.mrf.mxu3  ;;  %2499 = vmatmul.msk.bf16.gmra.mxu2 %vm664_vm4, %v3448_v11  ;;  %v978_v15 = vpop.f32.mrf.mxu1  ;;  %v3469_v11 = vld [vmem:[%s2717_s27 + $0xc8] sm:$0x1] }
 0x14d   : > { %v1492_v46 = vadd.f32 %v1428_v31, %v1358_v54  ;;  %v1153_v31 = vsel %vm3047_vm7, %v2483_v47, %v1152_v61  ;;  %v1156_v54 = vsel %vm3047_vm7, %v1154_v58, %v1155_v9  ;;  %v1533_v29 = vshll.u32 %v3469_v11, 16 }
 0x14e   : > { %v1189_v18 = vunpack.c.l.b16 %v1153_v31  ;;  %v979_v24 = vadd.f32 %v978_v15, %v3224_v63  ;;  %v1521_v58 = vrot.slane %v1520_v2, 4 }
 0x14f   : > { %v1297_v34 = vpop.f32.mrf.mxu2  ;;  %v3466_v49 = vadd.f32 %v1584_v51, %v1492_v46  ;;  %v1535_v60 = vrot.slane %v1533_v29, 5 }
 0x150   : > { %v1359_v17 = vadd.f32 %v1297_v34, %v977_v5  ;;  %v1190_v34 = vunpack.c.l.b16 %v1156_v54  ;;  %v3494_v54 = vld [vmem:[%s2717_s27 + $0xc0] sm:$0xff] }
 0x151   : > { %2520 = vmatmul.msk.bf16.gmra.mxu3 %vm664_vm4, %v3462_v30  ;;  %v1536_v63 = vsel %vm2744_vm3, %v1531_v38, %v1535_v60 }
 0x152   : > { %v3485_v46 = vpack.c.b16 %v1190_v34, %v1189_v18  ;;  %v1540_v39 = vunpack.c.l.b16 %v1536_v63 }
 0x153   : > { %v1587_v48 = vpop.f32.mrf.mxu0 }
 0x154   : > { %v1431_v28 = vpop.f32.mrf.mxu3  ;;  %v981_v51 = vpop.f32.mrf.mxu1 }
 0x155   : > { %v1493_v5 = vadd.f32 %v1431_v28, %v1359_v17  ;;  %v1526_v17 = vsel %vm2744_vm3, %v1521_v58, %v1525_v22 }
 0x156   : > { %2537 = vmatmul.msk.bf16.gmra.mxu0 %vm664_vm4, %v3056_v53  ;;  %v1539_v2 = vunpack.c.l.b16 %v1526_v17 }
 0x157   : > { %v1299_v61 = vpop.f32.mrf.mxu2  ;;  %2467 = vmatmul.msk.bf16.gmra.mxu1 %vm664_vm4, %v3462_v30  ;;  %v3483_v7 = vadd.f32 %v1587_v48, %v1493_v5  ;;  %v982_v48 = vadd.f32 %v981_v51, %v3245_v26 }
 0x158   : > { %v1360_v9 = vadd.f32 %v1299_v61, %v979_v24  ;;  %v3501_v22 = vpack.c.b16 %v1540_v39, %v1539_v2 }
 0x15b   : > { %v1589_v43 = vpop.f32.mrf.mxu0 }
 0x15c   : > { %v1433_v15 = vpop.f32.mrf.mxu3  ;;  %2500 = vmatmul.msk.bf16.gmra.mxu2 %vm664_vm4, %v3485_v46  ;;  %v983_v47 = vpop.f32.mrf.mxu1 }
 0x15d   : > { %v1494_v31 = vadd.f32 %v1433_v15, %v1360_v9  ;;  %v984_v26 = vadd.f32 %v983_v47, %v3262_v0 }
 0x15f   : > { %v1302_v29 = vpop.f32.mrf.mxu2  ;;  %v3497_v28 = vadd.f32 %v1589_v43, %v1494_v31 }
 0x160   : > { %v1361_v18 = vadd.f32 %v1302_v29, %v982_v48 }
 0x161   : > { %2521 = vmatmul.msk.bf16.gmra.mxu3 %vm664_vm4, %v3494_v54 }
 0x163   : > { %v1592_v34 = vpop.f32.mrf.mxu0 }
 0x164   : > { %v1436_v5 = vpop.f32.mrf.mxu3  ;;  %v986_v24 = vpop.f32.mrf.mxu1 }
 0x165   : > { %v1495_v61 = vadd.f32 %v1436_v5, %v1361_v18  ;;  %v987_v63 = vadd.f32 %v986_v24, %v3147_v16 }
 0x166   : > { %2538 = vmatmul.msk.bf16.gmra.mxu0 %vm664_vm4, %v3501_v22 }
 0x167   : > { %v1304_v51 = vpop.f32.mrf.mxu2  ;;  %2541 = vmatmul.msk.bf16.vlgmr.msra.gmra.mxu1 %vm664_vm4, %v3081_v55  ;;  %v3508_v58 = vadd.f32 %v1592_v34, %v1495_v61 }
 0x168   : > { %v1362_v38 = vadd.f32 %v1304_v51, %v984_v26 }
 0x16b   : > { %v1594_v60 = vpop.f32.mrf.mxu0 }
 0x16c   : > { %v1438_v9 = vpop.f32.mrf.mxu3  ;;  %2562 = vmatmul.msk.bf16.vlgmr.msra.gmra.mxu2 %vm664_vm4, %v3093_v6  ;;  %v988_v43 = vpop.f32.mrf.mxu1 }
 0x16d   : > { %v1496_v17 = vadd.f32 %v1438_v9, %v1362_v38  ;;  %v989_v6 = vadd.f32 %v988_v43, %v3169_v57 }
 0x16f   : > { %v1307_v15 = vpop.f32.mrf.mxu2  ;;  %v3513_v31 = vadd.f32 %v1594_v60, %v1496_v17 }
 0x170   : > { %v1363_v0 = vadd.f32 %v1307_v15, %v987_v63 }
 0x171   : > { %2579 = vmatmul.msk.bf16.vlgmr.msra.gmra.mxu3 %vm664_vm4, %v2984_v45 }
 0x173   : > { %v1597_v55 = vpop.f32.mrf.mxu0 }
 0x174   : > { %v1441_v47 = vpop.f32.mrf.mxu3  ;;  %v991_v48 = vpop.f32.mrf.mxu1 }
 0x175   : > { %v1497_v2 = vadd.f32 %v1441_v47, %v1363_v0  ;;  %v992_v24 = vadd.f32 %v991_v48, %v3189_v59 }
 0x176   : > { %2597 = vmatmul.msk.bf16.vlgmr.msra.gmra.mxu0 %vm664_vm4, %v3107_v52 }
 0x177   : > { %v1309_v39 = vpop.f32.mrf.mxu2  ;;  %2542 = vmatmul.msk.bf16.gmra.mxu1 %vm664_vm4, %v3107_v52  ;;  %v3522_v16 = vadd.f32 %v1597_v55, %v1497_v2 }
 0x178   : > { %v1364_v29 = vadd.f32 %v1309_v39, %v989_v6 }
 0x17b   : > { %v1599_v18 = vpop.f32.mrf.mxu0 }
 0x17c   : > { %v1443_v34 = vpop.f32.mrf.mxu3  ;;  %2563 = vmatmul.msk.bf16.gmra.mxu2 %vm664_vm4, %v3113_v41  ;;  %v993_v45 = vpop.f32.mrf.mxu1 }
 0x17d   : > { %v1498_v5 = vadd.f32 %v1443_v34, %v1364_v29  ;;  %v994_v41 = vadd.f32 %v993_v45, %v3207_v3 }
 0x17f   : > { %v1312_v61 = vpop.f32.mrf.mxu2  ;;  %v3527_v26 = vadd.f32 %v1599_v18, %v1498_v5 }
 0x180   : > { %v1365_v57 = vadd.f32 %v1312_v61, %v992_v24 }
 0x181   : > { %2580 = vmatmul.msk.bf16.gmra.mxu3 %vm664_vm4, %v3074_v20 }
 0x183   : > { %v1602_v52 = vpop.f32.mrf.mxu0 }
 0x184   : > { %v1446_v51 = vpop.f32.mrf.mxu3  ;;  %v996_v38 = vpop.f32.mrf.mxu1 }
 0x185   : > { %v1499_v60 = vadd.f32 %v1446_v51, %v1365_v57  ;;  %v997_v0 = vadd.f32 %v996_v38, %v3226_v23 }
 0x186   : > { %2598 = vmatmul.msk.bf16.gmra.mxu0 %vm664_vm4, %v3127_v40 }
 0x187   : > { %v1314_v9 = vpop.f32.mrf.mxu2  ;;  %2543 = vmatmul.msk.bf16.gmra.mxu1 %vm664_vm4, %v3127_v40  ;;  %v3536_v59 = vadd.f32 %v1602_v52, %v1499_v60 }
 0x188   : > { %v1366_v43 = vadd.f32 %v1314_v9, %v994_v41 }
 0x18b   : > { %v1604_v17 = vpop.f32.mrf.mxu0 }
 0x18c   : > { %v1448_v63 = vpop.f32.mrf.mxu3  ;;  %2564 = vmatmul.msk.bf16.gmra.mxu2 %vm664_vm4, %v3135_v8  ;;  %v998_v20 = vpop.f32.mrf.mxu1 }
 0x18d   : > { %v1500_v15 = vadd.f32 %v1448_v63, %v1366_v43  ;;  %v999_v8 = vadd.f32 %v998_v20, %v3247_v1  ;;  %v3956_v43 = vld [vmem:[#allocation18_spill] sm:$0xff]  ;;  %v3957_v63 = vld [vmem:[#allocation16_spill] sm:$0xff] }
 0x18f   : > { %v1317_v55 = vpop.f32.mrf.mxu2  ;;  %v3541_v47 = vadd.f32 %v1604_v17, %v1500_v15 }
 0x190   : > { %v1367_v3 = vadd.f32 %v1317_v55, %v997_v0  ;;  %v3958_v55 = vld [vmem:[#allocation8_spill] sm:$0xff] }
 0x191   : > { %2581 = vmatmul.msk.bf16.gmra.mxu3 %vm664_vm4, %v2756_v62 }
 0x193   : > { %v1607_v40 = vpop.f32.mrf.mxu0 }
 0x194   : > { %v1451_v48 = vpop.f32.mrf.mxu3  ;;  %v1001_v2 = vpop.f32.mrf.mxu1 }
 0x195   : > { %v1501_v6 = vadd.f32 %v1451_v48, %v1367_v3  ;;  %v1002_v5 = vadd.f32 %v1001_v2, %v3269_v56  ;;  %v3959_v2 = vld [vmem:[#allocation21_spill] sm:$0xff] }
 0x196   : > { %2599 = vmatmul.msk.bf16.gmra.mxu0 %vm664_vm4, %v3155_v12 }
 0x197   : > { %v1319_v39 = vpop.f32.mrf.mxu2  ;;  %2544 = vmatmul.msk.bf16.gmra.mxu1 %vm664_vm4, %v3155_v12  ;;  %v3550_v23 = vadd.f32 %v1607_v40, %v1501_v6  ;;  %v3960_v6 = vld [vmem:[#allocation17_spill] sm:$0xff] }
 0x198   : > { %v1368_v29 = vadd.f32 %v1319_v39, %v999_v8 }
 0x19b   : > { %v1609_v18 = vpop.f32.mrf.mxu0 }
 0x19c   : > { %v1453_v34 = vpop.f32.mrf.mxu3  ;;  %2565 = vmatmul.msk.bf16.gmra.mxu2 %vm664_vm4, %v3163_v27  ;;  %v1003_v62 = vpop.f32.mrf.mxu1 }
 0x19d   : > { %v1502_v45 = vadd.f32 %v1453_v34, %v1368_v29  ;;  %v1004_v27 = vadd.f32 %v1003_v62, %v3284_v44 }
 0x19f   : > { %v1322_v24 = vpop.f32.mrf.mxu2  ;;  %v3555_v61 = vadd.f32 %v1609_v18, %v1502_v45  ;;  %v3961_v45 = vld [vmem:[#allocation22_spill] sm:$0xff] }
 0x1a0   : > { %v1369_v1 = vadd.f32 %v1322_v24, %v1002_v5 }
 0x1a1   : > { %2582 = vmatmul.msk.bf16.gmra.mxu3 %vm664_vm4, %v2830_v37 }
 0x1a3   : > { %v1612_v12 = vpop.f32.mrf.mxu0 }
 0x1a4   : > { %v1456_v57 = vpop.f32.mrf.mxu3  ;;  %v1006_v52 = vpop.f32.mrf.mxu1 }
 0x1a5   : > { %v1503_v51 = vadd.f32 %v1456_v57, %v1369_v1  ;;  %v1007_v20 = vadd.f32 %v1006_v52, %v3957_v63  ;;  %v3962_v1 = vld [vmem:[#allocation19_spill] sm:$0xff] }
 0x1a6   : > { %2600 = vmatmul.msk.bf16.gmra.mxu0 %vm664_vm4, %v3187_v33 }
 0x1a7   : > { %v1324_v38 = vpop.f32.mrf.mxu2  ;;  %2545 = vmatmul.msk.bf16.gmra.mxu1 %vm664_vm4, %v3187_v33  ;;  %v3564_v56 = vadd.f32 %v1612_v12, %v1503_v51 }
 0x1a8   : > { %v1370_v60 = vadd.f32 %v1324_v38, %v1004_v27  ;;  %v3963_v27 = vld [vmem:[#allocation14_spill] sm:$0xff] }
 0x1ab   : > { %v1614_v41 = vpop.f32.mrf.mxu0 }
 0x1ac   : > { %v1458_v9 = vpop.f32.mrf.mxu3  ;;  %2566 = vmatmul.msk.bf16.gmra.mxu2 %vm664_vm4, %v3956_v43  ;;  %v1008_v37 = vpop.f32.mrf.mxu1  ;;  %v3964_v43 = vld [vmem:[#allocation24_spill] sm:$0xff] }
 0x1ad   : > { %v1504_v17 = vadd.f32 %v1458_v9, %v1370_v60  ;;  %v1009_v8 = vadd.f32 %v1008_v37, %v3960_v6  ;;  %v3965_v37 = vld [vmem:[#allocation20_spill] sm:$0xff] }
 0x1af   : > { %v1327_v15 = vpop.f32.mrf.mxu2  ;;  %v3569_v0 = vadd.f32 %v1614_v41, %v1504_v17 }
 0x1b0   : > { %v1371_v44 = vadd.f32 %v1327_v15, %v1007_v20 }
 0x1b1   : > { %2583 = vmatmul.msk.bf16.gmra.mxu3 %vm664_vm4, %v3958_v55 }
 0x1b3   : > { %v1617_v33 = vpop.f32.mrf.mxu0 }
 0x1b4   : > { %v1461_v3 = vpop.f32.mrf.mxu3  ;;  %v1011_v40 = vpop.f32.mrf.mxu1 }
 0x1b5   : > { %v1505_v48 = vadd.f32 %v1461_v3, %v1371_v44  ;;  %v1012_v12 = vadd.f32 %v1011_v40, %v3962_v1  ;;  %v3970_v1 = vld [vmem:[#allocation25_spill] sm:$0xff] }
 0x1b6   : > { %2601 = vmatmul.msk.bf16.gmra.mxu0 %vm664_vm4, %v3959_v2 }
 0x1b7   : > { %v1329_v39 = vpop.f32.mrf.mxu2  ;;  %2546 = vmatmul.msk.bf16.gmra.mxu1 %vm664_vm4, %v3959_v2  ;;  %v3578_v29 = vadd.f32 %v1617_v33, %v1505_v48  ;;  %v3966_v33 = vld [vmem:[#allocation26_spill] sm:$0xff]  ;;  %v3967_v48 = vld [vmem:[#allocation23_spill] sm:$0xff] }
 0x1b8   : > { %v1372_v18 = vadd.f32 %v1329_v39, %v1009_v8 }
 0x1bb   : > { %v1619_v34 = vpop.f32.mrf.mxu0 }
 0x1bc   : > { %v1463_v62 = vpop.f32.mrf.mxu3  ;;  %2567 = vmatmul.msk.bf16.gmra.mxu2 %vm664_vm4, %v3961_v45  ;;  %v1013_v5 = vpop.f32.mrf.mxu1 }
 0x1bd   : > { %v1506_v24 = vadd.f32 %v1463_v62, %v1372_v18  ;;  %v1014_v17 = vadd.f32 %v1013_v5, %v3965_v37  ;;  %v3968_v18 = vld [vmem:[#allocation2_spill] sm:$0xff] }
 0x1bf   : > { %v1332_v57 = vpop.f32.mrf.mxu2  ;;  %v3583_v52 = vadd.f32 %v1619_v34, %v1506_v24  ;;  %v3969_v24 = vld [vmem:[#allocation28_spill] sm:$0xff] }
 0x1c0   : > { %v1373_v51 = vadd.f32 %v1332_v57, %v1012_v12 }
 0x1c1   : > { %2584 = vmatmul.msk.bf16.gmra.mxu3 %vm664_vm4, %v3963_v27 }
 0x1c3   : > { %v1622_v38 = vpop.f32.mrf.mxu0 }
 0x1c4   : > { %v1466_v60 = vpop.f32.mrf.mxu3  ;;  %v1016_v41 = vpop.f32.mrf.mxu1 }
 0x1c5   : > { %v1507_v9 = vadd.f32 %v1466_v60, %v1373_v51  ;;  %v1017_v2 = vadd.f32 %v1016_v41, %v3967_v48 }
 0x1c6   : > { %2602 = vmatmul.msk.bf16.gmra.mxu0 %vm664_vm4, %v3964_v43 }
 0x1c7   : > { %v1334_v63 = vpop.f32.mrf.mxu2  ;;  %2547 = vmatmul.msk.bf16.gmra.mxu1 %vm664_vm4, %v3964_v43  ;;  %v3592_v20 = vadd.f32 %v1622_v38, %v1507_v9  ;;  %v3971_v43 = vld [vmem:[#allocation27_spill] sm:$0xff] }
 0x1c8   : > { %v1374_v15 = vadd.f32 %v1334_v63, %v1014_v17 }
 0x1cb   : > { %v1624_v44 = vpop.f32.mrf.mxu0 }
 0x1cc   : > { %v1468_v55 = vpop.f32.mrf.mxu3  ;;  %2568 = vmatmul.msk.bf16.gmra.mxu2 %vm664_vm4, %v3966_v33  ;;  %v1018_v3 = vpop.f32.mrf.mxu1 }
 0x1cd   : > { %v1508_v40 = vadd.f32 %v1468_v55, %v1374_v15  ;;  %v1019_v12 = vadd.f32 %v1018_v3, %v3970_v1 }
 0x1cf   : > { %v1337_v6 = vpop.f32.mrf.mxu2  ;;  %v3597_v8 = vadd.f32 %v1624_v44, %v1508_v40  ;;  %v3972_v40 = vld [vmem:[#allocation29_spill] sm:$0xff] }
 0x1d0   : > { %v1375_v39 = vadd.f32 %v1337_v6, %v1017_v2 }
 0x1d1   : > { %2585 = vmatmul.msk.bf16.gmra.mxu3 %vm664_vm4, %v3968_v18 }
 0x1d3   : > { %v1627_v34 = vpop.f32.mrf.mxu0 }
 0x1d4   : > { %v1471_v62 = vpop.f32.mrf.mxu3  ;;  %v1021_v45 = vpop.f32.mrf.mxu1 }
 0x1d5   : > { %v1509_v5 = vadd.f32 %v1471_v62, %v1375_v39  ;;  %v1022_v37 = vadd.f32 %v1021_v45, %v3971_v43 }
 0x1d6   : > { %2603 = vmatmul.msk.bf16.gmra.mxu0 %vm664_vm4, %v3969_v24 }
 0x1d7   : > { %v1339_v57 = vpop.f32.mrf.mxu2  ;;  %2548 = vmatmul.msk.bf16.gmra.mxu1 %vm664_vm4, %v3969_v24  ;;  %v3606_v51 = vadd.f32 %v1627_v34, %v1509_v5 }
 0x1d8   : > { %v1376_v27 = vadd.f32 %v1339_v57, %v1019_v12 }
 0x1db   : > { %v1629_v38 = vpop.f32.mrf.mxu0 }
 0x1dc   : > { %v1473_v60 = vpop.f32.mrf.mxu3  ;;  %2569 = vmatmul.msk.bf16.gmra.mxu2 %vm664_vm4, %v3299_v19  ;;  %v1023_v41 = vpop.f32.mrf.mxu1 }
 0x1dd   : > { %v1510_v9 = vadd.f32 %v1473_v60, %v1376_v27  ;;  %v1024_v19 = vadd.f32 %v1023_v41, %v3972_v40 }
 0x1df   : > { %v1342_v17 = vpop.f32.mrf.mxu2  ;;  %v3611_v63 = vadd.f32 %v1629_v38, %v1510_v9 }
 0x1e0   : > { %v1377_v15 = vadd.f32 %v1342_v17, %v1022_v37 }
 0x1e1   : > { %2586 = vmatmul.msk.bf16.gmra.mxu3 %vm664_vm4, %v2855_v4 }
 0x1e3   : > { %v1632_v44 = vpop.f32.mrf.mxu0 }
 0x1e4   : > { %v1476_v55 = vpop.f32.mrf.mxu3  ;;  %v1697_v33 = vpop.f32.mrf.mxu1 }
 0x1e5   : > { %v1511_v3 = vadd.f32 %v1476_v55, %v1377_v15  ;;  %v1777_v62 = vadd.f32 %v1697_v33, %v3314_v32 }
 0x1e6   : > { %2604 = vmatmul.msk.bf16.gmra.mxu0 %vm664_vm4, %v3316_v10 }
 0x1e7   : > { %v1344_v48 = vpop.f32.mrf.mxu2  ;;  %2549 = vmatmul.msk.bf16.gmra.mxu1 %vm664_vm4, %v3316_v10  ;;  %v3620_v2 = vadd.f32 %v1632_v44, %v1511_v3  ;;  %v3973_v44 = vld [vmem:[#allocation15_spill] sm:$0xff] }
 0x1e8   : > { %v1378_v6 = vadd.f32 %v1344_v48, %v1024_v19 }
 0x1eb   : > { %v1634_v39 = vpop.f32.mrf.mxu0 }
 0x1ec   : > { %v1478_v18 = vpop.f32.mrf.mxu3  ;;  %2570 = vmatmul.msk.bf16.gmra.mxu2 %vm664_vm4, %v3323_v42  ;;  %v1699_v4 = vpop.f32.mrf.mxu1  ;;  %v3633_v42 = vld [vmem:[%s3854_s2] ss:$0 sm:$0xff] }
 0x1ed   : > { %v1512_v34 = vadd.f32 %v1478_v18, %v1378_v6  ;;  %v1778_v27 = vadd.f32 %v1699_v4, %v3327_v35  ;;  %v3975_v6 = vld [vmem:[#allocation9_spill] sm:$0xff] }
 0x1ef   : > { %v1831_v45 = vpop.f32.mrf.mxu2  ;;  %v3625_v5 = vadd.f32 %v1634_v39, %v1512_v34 }
 0x1f0   : > { %v1911_v10 = vadd.f32 %v1831_v45, %v1777_v62  ;;  %v3976_v45 = vld [vmem:[#allocation32_spill] sm:$0xff] }
 0x1f1   : > { %2587 = vmatmul.msk.bf16.gmra.mxu3 %vm664_vm4, %v2940_v25 }
 0x1f3   : > { %v2127_v24 = vpop.f32.mrf.mxu0 }
 0x1f4   : > { %v1987_v1 = vpop.f32.mrf.mxu3  ;;  %v1702_v12 = vpop.f32.mrf.mxu1 }
 0x1f5   : > { %v2067_v57 = vadd.f32 %v1987_v1, %v1911_v10  ;;  %v1779_v37 = vadd.f32 %v1702_v12, %v3340_v21  ;;  %v3977_v12 = vld [vmem:[#allocation30_spill] sm:$0xff] }
 0x1f6   : > { %2605 = vmatmul.msk.bf16.gmra.mxu0 %vm664_vm4, %v3342_v13 }
 0x1f7   : > { %v2207_v32 = vadd.f32 %v2127_v24, %v2067_v57  ;;  %v1833_v38 = vpop.f32.mrf.mxu2  ;;  %2550 = vmatmul.msk.bf16.gmra.mxu1 %vm664_vm4, %v3342_v13 }
 0x1f8   : > { %v1912_v60 = vadd.f32 %v1833_v38, %v1778_v27  ;;  %v3978_v38 = vld [vmem:[#allocation3_spill] sm:$0xff] }
 0x1f9   : > { %v2243_v25 = vadd.f32 %v3633_v42, %v2207_v32 }
 0x1fb   : > { %2276 = vst.msk [vmem:[%s3643_s13] sm:$0xff] %vm2275_vm8, %v2243_v25  ;;  %v2129_v41 = vpop.f32.mrf.mxu0 }
 0x1fc   : > { %v1989_v9 = vpop.f32.mrf.mxu3  ;;  %2571 = vmatmul.msk.bf16.gmra.mxu2 %vm664_vm4, %v3349_v50  ;;  %v1704_v35 = vpop.f32.mrf.mxu1  ;;  %v3974_v50 = vld [vmem:[#allocation31_spill] sm:$0xff] }
 0x1fd   : > { %v2068_v13 = vadd.f32 %v1989_v9, %v1912_v60  ;;  %v1780_v21 = vadd.f32 %v1704_v35, %v3975_v6  ;;  %v3982_v6 = vld [vmem:[#allocation34_spill] sm:$0xff] }
 0x1ff   : > { %v2208_v43 = vadd.f32 %v2129_v41, %v2068_v13  ;;  %v1836_v17 = vpop.f32.mrf.mxu2  ;;  %v3979_v13 = vld [vmem:[#allocation35_spill] sm:$0xff] }
 0x200   : > { %v1913_v55 = vadd.f32 %v1836_v17, %v1779_v37  ;;  %v3980_v37 = vld [vmem:[#allocation33_spill] sm:$0xff] }
 0x201   : > { %v2244_v15 = vadd.f32 %v3633_v42, %v2208_v43  ;;  %2588 = vmatmul.msk.bf16.gmra.mxu3 %vm664_vm4, %v3973_v44 }
 0x203   : > { %2277 = vst.msk [vmem:[%s3643_s13 + $0x8] sm:$0xff] %vm2275_vm8, %v2244_v15  ;;  %v2132_v33 = vpop.f32.mrf.mxu0 }
 0x204   : > { %v1992_v3 = vpop.f32.mrf.mxu3  ;;  %v1707_v40 = vpop.f32.mrf.mxu1 }
 0x205   : > { %v2069_v19 = vadd.f32 %v1992_v3, %v1913_v55  ;;  %v1781_v57 = vadd.f32 %v1707_v40, %v3977_v12  ;;  %v3981_v40 = vld [vmem:[#allocation36_spill] sm:$0xff] }
 0x206   : > { %2606 = vmatmul.msk.bf16.gmra.mxu0 %vm664_vm4, %v3974_v50 }
 0x207   : > { %v2209_v48 = vadd.f32 %v2132_v33, %v2069_v19  ;;  %v1838_v39 = vpop.f32.mrf.mxu2  ;;  %2551 = vmatmul.msk.bf16.gmra.mxu1 %vm664_vm4, %v3974_v50 }
 0x208   : > { %v1914_v4 = vadd.f32 %v1838_v39, %v1780_v21 }
 0x209   : > { %v2245_v18 = vadd.f32 %v3633_v42, %v2209_v48 }
 0x20b   : > { %2278 = vst.msk [vmem:[%s3643_s13 + $0x10] sm:$0xff] %vm2275_vm8, %v2245_v18  ;;  %v2134_v34 = vpop.f32.mrf.mxu0 }
 0x20c   : > { %v1994_v62 = vpop.f32.mrf.mxu3  ;;  %2572 = vmatmul.msk.bf16.gmra.mxu2 %vm664_vm4, %v3976_v45  ;;  %v1709_v10 = vpop.f32.mrf.mxu1 }
 0x20d   : > { %v2070_v24 = vadd.f32 %v1994_v62, %v1914_v4  ;;  %v1782_v17 = vadd.f32 %v1709_v10, %v3980_v37  ;;  %v3983_v4 = vld [vmem:[#allocation4_spill] sm:$0xff]  ;;  %v3987_v37 = vld [vmem:[#allocation38_spill] sm:$0xff] }
 0x20f   : > { %v2210_v1 = vadd.f32 %v2134_v34, %v2070_v24  ;;  %v1841_v32 = vpop.f32.mrf.mxu2 }
 0x210   : > { %v1915_v25 = vadd.f32 %v1841_v32, %v1781_v57  ;;  %v3985_v57 = vld [vmem:[#allocation37_spill] sm:$0xff] }
 0x211   : > { %v2246_v27 = vadd.f32 %v3633_v42, %v2210_v1  ;;  %2589 = vmatmul.msk.bf16.gmra.mxu3 %vm664_vm4, %v3978_v38  ;;  %v3984_v1 = vld [vmem:[#allocation39_spill] sm:$0xff] }
 0x213   : > { %2279 = vst.msk [vmem:[%s3643_s13 + $0x18] sm:$0xff] %vm2275_vm8, %v2246_v27  ;;  %v2137_v60 = vpop.f32.mrf.mxu0 }
 0x214   : > { %v1997_v41 = vpop.f32.mrf.mxu3  ;;  %v1712_v9 = vpop.f32.mrf.mxu1 }
 0x215   : > { %v2071_v35 = vadd.f32 %v1997_v41, %v1915_v25  ;;  %v1783_v21 = vadd.f32 %v1712_v9, %v3982_v6  ;;  %v3986_v9 = vld [vmem:[#allocation6_spill] sm:$0xff] }
 0x216   : > { %2607 = vmatmul.msk.bf16.gmra.mxu0 %vm664_vm4, %v3979_v13 }
 0x217   : > { %v2211_v43 = vadd.f32 %v2137_v60, %v2071_v35  ;;  %v1843_v15 = vpop.f32.mrf.mxu2  ;;  %2552 = vmatmul.msk.bf16.gmra.mxu1 %vm664_vm4, %v3979_v13 }
 0x218   : > { %v1916_v55 = vadd.f32 %v1843_v15, %v1782_v17 }
 0x219   : > { %v2247_v44 = vadd.f32 %v3633_v42, %v2211_v43 }
 0x21b   : > { %2280 = vst.msk [vmem:[%s3643_s13 + $0x20] sm:$0xff] %vm2275_vm8, %v2247_v44  ;;  %v2139_v33 = vpop.f32.mrf.mxu0 }
 0x21c   : > { %v1999_v3 = vpop.f32.mrf.mxu3  ;;  %2573 = vmatmul.msk.bf16.gmra.mxu2 %vm664_vm4, %v3981_v40  ;;  %v1714_v19 = vpop.f32.mrf.mxu1 }
 0x21d   : > { %v2072_v50 = vadd.f32 %v1999_v3, %v1916_v55  ;;  %v1784_v32 = vadd.f32 %v1714_v19, %v3985_v57  ;;  %v3988_v55 = vld [vmem:[#allocation10_spill] sm:$0xff] }
 0x21f   : > { %v2212_v48 = vadd.f32 %v2139_v33, %v2072_v50  ;;  %v1846_v39 = vpop.f32.mrf.mxu2 }
 0x220   : > { %v1917_v34 = vadd.f32 %v1846_v39, %v1783_v21  ;;  %v3990_v21 = vld [vmem:[#allocation7_spill] sm:$0xff] }
 0x221   : > { %v2248_v18 = vadd.f32 %v3633_v42, %v2212_v48  ;;  %2590 = vmatmul.msk.bf16.gmra.mxu3 %vm664_vm4, %v3983_v4  ;;  %v3989_v48 = vld [vmem:[#allocation41_spill] sm:$0xff] }
 0x223   : > { %2281 = vst.msk [vmem:[%s3643_s13 + $0x28] sm:$0xff] %vm2275_vm8, %v2248_v18  ;;  %v2142_v62 = vpop.f32.mrf.mxu0 }
 0x224   : > { %v2002_v45 = vpop.f32.mrf.mxu3  ;;  %v1717_v10 = vpop.f32.mrf.mxu1 }
 0x225   : > { %v2073_v24 = vadd.f32 %v2002_v45, %v1917_v34  ;;  %v1785_v17 = vadd.f32 %v1717_v10, %v3987_v37  ;;  %v3993_v37 = vld [vmem:[#allocation5_spill] sm:$0xff] }
 0x226   : > { %2608 = vmatmul.msk.bf16.gmra.mxu0 %vm664_vm4, %v3984_v1 }
 0x227   : > { %v2213_v12 = vadd.f32 %v2142_v62, %v2073_v24  ;;  %v1848_v27 = vpop.f32.mrf.mxu2  ;;  %2553 = vmatmul.msk.bf16.gmra.mxu1 %vm664_vm4, %v3984_v1 }
 0x228   : > { %v1918_v25 = vadd.f32 %v1848_v27, %v1784_v32 }
 0x229   : > { %v2249_v38 = vadd.f32 %v3633_v42, %v2213_v12  ;;  %v3991_v12 = vld [vmem:[#allocation40_spill] sm:$0xff] }
 0x22b   : > { %2282 = vst.msk [vmem:[%s3643_s13 + $0x30] sm:$0xff] %vm2275_vm8, %v2249_v38  ;;  %v2144_v60 = vpop.f32.mrf.mxu0 }
 0x22c   : > { %v2004_v41 = vpop.f32.mrf.mxu3  ;;  %2574 = vmatmul.msk.bf16.gmra.mxu2 %vm664_vm4, %v3986_v9  ;;  %v1719_v35 = vpop.f32.mrf.mxu1  ;;  %v3722_v9 = vld [vmem:[%s2717_s27 + $0xcc] sm:$0xf] }
 0x22d   : > { %v2074_v13 = vadd.f32 %v2004_v41, %v1918_v25  ;;  %v1786_v39 = vadd.f32 %v1719_v35, %v3990_v21 }
 0x22f   : > { %v2214_v43 = vadd.f32 %v2144_v60, %v2074_v13  ;;  %v1851_v15 = vpop.f32.mrf.mxu2  ;;  %v3992_v60 = vld [vmem:[#allocation42_spill] sm:$0xff] }
 0x230   : > { %v1919_v33 = vadd.f32 %v1851_v15, %v1785_v17  ;;  %v1672_v41 = vrot.slane %v3992_v60, 5  ;;  %v2539_v17 = vrot.slane %v3993_v37, 9  ;;  %v1947_v15 = vshll.u32 %v3722_v9, 16 }
 0x231   : > { %v2250_v44 = vadd.f32 %v3633_v42, %v2214_v43  ;;  %2591 = vmatmul.msk.bf16.gmra.mxu3 %vm664_vm4, %v3988_v55 }
 0x232   : > { %v1673_v21 = vsel %vm3047_vm7, %v2539_v17, %v1672_v41 }
 0x233   : > { %2283 = vst.msk [vmem:[%s3643_s13 + $0x38] sm:$0xff] %vm2275_vm8, %v2250_v44  ;;  %v2147_v3 = vpop.f32.mrf.mxu0 }
 0x234   : > { %v2007_v40 = vpop.f32.mrf.mxu3  ;;  %v1722_v19 = vpop.f32.mrf.mxu1 }
 0x235   : > { %v2075_v50 = vadd.f32 %v2007_v40, %v1919_v33  ;;  %v1787_v57 = vadd.f32 %v1722_v19, %v3991_v12  ;;  %v1674_v19 = vrot.slane %v1672_v41, 4 }
 0x236   : > { %2609 = vmatmul.msk.bf16.gmra.mxu0 %vm664_vm4, %v3989_v48 }
 0x237   : > { %v2215_v6 = vadd.f32 %v2147_v3, %v2075_v50  ;;  %v1853_v18 = vpop.f32.mrf.mxu2  ;;  %2554 = vmatmul.msk.bf16.gmra.mxu1 %vm664_vm4, %v3989_v48  ;;  %v1675_v50 = vrot.slane %v3469_v11, 5 }
 0x238   : > { %v1920_v34 = vadd.f32 %v1853_v18, %v1786_v39  ;;  %v1949_v18 = vrot.slane %v1947_v15, 5 }
 0x239   : > { %v2251_v4 = vadd.f32 %v3633_v42, %v2215_v6 }
 0x23b   : > { %2284 = vst.msk [vmem:[%s3643_s13 + $0x40] sm:$0xff] %vm2275_vm8, %v2251_v4  ;;  %v2149_v62 = vpop.f32.mrf.mxu0 }
 0x23c   : > { %v2009_v45 = vpop.f32.mrf.mxu3  ;;  %2575 = vmatmul.msk.bf16.gmra.mxu2 %vm664_vm4, %v3462_v30  ;;  %v1724_v10 = vpop.f32.mrf.mxu1  ;;  %v3725_v30 = vld [vmem:[%s2717_s27 + $0xd0] sm:$0xf] }
 0x23d   : > { %v2076_v24 = vadd.f32 %v2009_v45, %v1920_v34  ;;  %v1953_v44 = vshll.u32 %v3725_v30, 16  ;;  %v1957_v55 = vshrl.u32 %v3725_v30, 16  ;;  %v1788_v3 = vadd.f32 %v1724_v10, %v3466_v49 }
 0x23f   : > { %v2216_v1 = vadd.f32 %v2149_v62, %v2076_v24  ;;  %v1856_v32 = vpop.f32.mrf.mxu2  ;;  %v1955_v4 = vrot.slane %v1953_v44, 5  ;;  %v1959_v34 = vrot.slane %v1957_v55, 4  ;;  %v1676_v62 = vsel %vm3047_vm7, %v1674_v19, %v1675_v50  ;;  %v2633_v50 = vld [vmem:[%s2717_s27 + $0xcc] sm:$0xff] }
 0x240   : > { %v1921_v38 = vadd.f32 %v1856_v32, %v1787_v57  ;;  %v1679_v24 = vunpack.c.l.b16 %v1673_v21  ;;  %v2595_v55 = vrot.slane %v3722_v9, 9 }
 0x241   : > { %v2252_v27 = vadd.f32 %v3633_v42, %v2216_v1  ;;  %2592 = vmatmul.msk.bf16.gmra.mxu3 %vm664_vm4, %v3056_v53  ;;  %v1944_v53 = vshrl.u32 %v3722_v9, 16  ;;  %v1680_v1 = vunpack.c.l.b16 %v1676_v62  ;;  %v1960_v57 = vor.u32 %v1959_v34, %v1955_v4 }
 0x243   : > { %2285 = vst.msk [vmem:[%s3643_s13 + $0x48] sm:$0xff] %vm2275_vm8, %v2252_v27  ;;  %v2152_v25 = vpop.f32.mrf.mxu0  ;;  %v1946_v39 = vrot.slane %v1944_v53, 4  ;;  %v2102_v53 = vrot.slane %v3725_v30, 5 }
 0x244   : > { %v2012_v35 = vpop.f32.mrf.mxu3  ;;  %v1727_v13 = vpop.f32.mrf.mxu1 }
 0x245   : > { %v2077_v43 = vadd.f32 %v2012_v35, %v1921_v38  ;;  %v1950_v12 = vor.u32 %v1949_v18, %v1946_v39  ;;  %v1789_v38 = vadd.f32 %v1727_v13, %v3483_v7  ;;  %v1681_v35 = vpack.c.b16 %v1680_v1, %v1679_v24 }
 0x246   : > { %2610 = vmatmul.msk.bf16.gmra.mxu0 %vm664_vm4, %v3485_v46  ;;  %v2104_v30 = vrot.slane %v2102_v53, 4  ;;  %v2103_v9 = vsel %vm3047_vm7, %v2595_v55, %v2102_v53 }
 0x247   : > { %v2217_v33 = vadd.f32 %v2152_v25, %v2077_v43  ;;  %v1858_v40 = vpop.f32.mrf.mxu2  ;;  %2555 = vmatmul.msk.bf16.gmra.mxu1 %vm664_vm4, %v3485_v46  ;;  %v225_v46 = vld [vmem:[%s2717_s27 + $0xd4] sm:$0x1]  ;;  %v1961_v43 = vrot.slane %v1960_v57, 4  ;;  %v2109_v62 = vunpack.c.l.b16 %v2103_v9 }
 0x248   : > { %v1922_v6 = vadd.f32 %v1858_v40, %v1788_v3  ;;  %v1963_v32 = vshll.u32 %v225_v46, 16  ;;  %v2105_v19 = vrot.slane %v225_v46, 5 }
 0x249   : > { %v2253_v48 = vadd.f32 %v3633_v42, %v2217_v33 }
 0x24a   : > { %v1965_v37 = vrot.slane %v1963_v32, 5 }
 0x24b   : > { %2286 = vst.msk [vmem:[%s3643_s13 + $0x50] sm:$0xff] %vm2275_vm8, %v2253_v48  ;;  %v2154_v49 = vpop.f32.mrf.mxu0 }
 0x24c   : > { %v2014_v45 = vpop.f32.mrf.mxu3  ;;  %2576 = vmatmul.msk.bf16.gmra.mxu2 %vm664_vm4, %v3494_v54  ;;  %v1729_v11 = vpop.f32.mrf.mxu1  ;;  %v1951_v54 = vrot.slane %v1950_v12, 4  ;;  %v1966_v13 = vsel %vm2744_vm3, %v1961_v43, %v1965_v37 }
 0x24d   : > { %v2078_v10 = vadd.f32 %v2014_v45, %v1922_v6  ;;  %v1790_v3 = vadd.f32 %v1729_v11, %v3497_v28  ;;  %v1970_v39 = vunpack.c.l.b16 %v1966_v13  ;;  %v2106_v28 = vsel %vm3047_vm7, %v2104_v30, %v2105_v19 }
 0x24e   : > { %v2110_v46 = vunpack.c.l.b16 %v2106_v28 }
 0x24f   : > { %v2218_v27 = vadd.f32 %v2154_v49, %v2078_v10  ;;  %v1861_v25 = vpop.f32.mrf.mxu2 }
 0x250   : > { %v1923_v41 = vadd.f32 %v1861_v25, %v1789_v38  ;;  %v2111_v1 = vpack.c.b16 %v2110_v46, %v2109_v62 }
 0x251   : > { %v2254_v60 = vadd.f32 %v3633_v42, %v2218_v27  ;;  %2593 = vmatmul.msk.bf16.gmra.mxu3 %vm664_vm4, %v3501_v22  ;;  %v1956_v22 = vsel %vm2744_vm3, %v1951_v54, %v1955_v4 }
 0x252   : > { %v1969_v21 = vunpack.c.l.b16 %v1956_v22 }
 0x253   : > { %2287 = vst.msk [vmem:[%s3643_s13 + $0x58] sm:$0xff] %vm2275_vm8, %v2254_v60  ;;  %v2157_v17 = vpop.f32.mrf.mxu0 }
 0x254   : > { %v2017_v15 = vpop.f32.mrf.mxu3  ;;  %v1732_v44 = vpop.f32.mrf.mxu1  ;;  %v1971_v49 = vpack.c.b16 %v1970_v39, %v1969_v21 }
 0x255   : > { %v2079_v7 = vadd.f32 %v2017_v15, %v1923_v41  ;;  %v1791_v11 = vadd.f32 %v1732_v44, %v3508_v58 }
 0x256   : > { %2611 = vmatmul.msk.bf16.gmra.mxu0 %vm664_vm4, %v1681_v35 }
 0x257   : > { %v2219_v33 = vadd.f32 %v2157_v17, %v2079_v7  ;;  %v1863_v40 = vpop.f32.mrf.mxu2  ;;  %2556 = vmatmul.msk.bf16.gmra.mxu1 %vm664_vm4, %v1681_v35 }
 0x258   : > { %v1924_v6 = vadd.f32 %v1863_v40, %v1790_v3 }
 0x259   : > { %v2255_v48 = vadd.f32 %v3633_v42, %v2219_v33 }
 0x25b   : > { %2288 = vst.msk [vmem:[%s3643_s13 + $0x60] sm:$0xff] %vm2275_vm8, %v2255_v48  ;;  %v2159_v36 = vpop.f32.mrf.mxu0 }
 0x25c   : > { %v2019_v18 = vpop.f32.mrf.mxu3  ;;  %2577 = vmatmul.msk.bf16.gmra.mxu2 %vm664_vm4, %v2633_v50  ;;  %v1734_v4 = vpop.f32.mrf.mxu1 }
 0x25d   : > { %v2080_v34 = vadd.f32 %v2019_v18, %v1924_v6  ;;  %v1792_v58 = vadd.f32 %v1734_v4, %v3513_v31 }
 0x25f   : > { %v2220_v45 = vadd.f32 %v2159_v36, %v2080_v34  ;;  %v1866_v10 = vpop.f32.mrf.mxu2 }
 0x260   : > { %v1925_v14 = vadd.f32 %v1866_v10, %v1791_v11 }
 0x261   : > { %v2256_v24 = vadd.f32 %v3633_v42, %v2220_v45  ;;  %2594 = vmatmul.msk.bf16.gmra.mxu3 %vm664_vm4, %v1971_v49 }
 0x263   : > { %2289 = vst.msk [vmem:[%s3643_s13 + $0x68] sm:$0xff] %vm2275_vm8, %v2256_v24  ;;  %v2162_v12 = vpop.f32.mrf.mxu0 }
 0x264   : > { %v2022_v57 = vpop.f32.mrf.mxu3  ;;  %v1737_v32 = vpop.f32.mrf.mxu1 }
 0x265   : > { %v2081_v27 = vadd.f32 %v2022_v57, %v1925_v14  ;;  %v1793_v53 = vadd.f32 %v1737_v32, %v3522_v16 }
 0x266   : > { %2612 = vmatmul.msk.bf16.gmra.mxu0 %vm664_vm4, %v2111_v1 }
 0x267   : > { %v2221_v38 = vadd.f32 %v2162_v12, %v2081_v27  ;;  %v1868_v25 = vpop.f32.mrf.mxu2 }
 0x268   : > { %v1926_v41 = vadd.f32 %v1868_v25, %v1792_v58 }
 0x269   : > { %v2257_v60 = vadd.f32 %v3633_v42, %v2221_v38 }
 0x26b   : > { %2290 = vst.msk [vmem:[%s3643_s13 + $0x70] sm:$0xff] %vm2275_vm8, %v2257_v60  ;;  %v2164_v35 = vpop.f32.mrf.mxu0 }
 0x26c   : > { %v2024_v54 = vpop.f32.mrf.mxu3  ;;  %v1739_v43 = vpop.f32.mrf.mxu1 }
 0x26d   : > { %v2082_v37 = vadd.f32 %v2024_v54, %v1926_v41  ;;  %v1794_v3 = vadd.f32 %v1739_v43, %v3527_v26 }
 0x26f   : > { %v2222_v17 = vadd.f32 %v2164_v35, %v2082_v37  ;;  %v1871_v15 = vpop.f32.mrf.mxu2 }
 0x270   : > { %v1927_v7 = vadd.f32 %v1871_v15, %v1793_v53 }
 0x271   : > { %v2258_v44 = vadd.f32 %v3633_v42, %v2222_v17 }
 0x273   : > { %2291 = vst.msk [vmem:[%s3643_s13 + $0x78] sm:$0xff] %vm2275_vm8, %v2258_v44  ;;  %v2167_v31 = vpop.f32.mrf.mxu0 }
 0x274   : > { %v2027_v22 = vpop.f32.mrf.mxu3  ;;  %v1742_v13 = vpop.f32.mrf.mxu1 }
 0x275   : > { %v2083_v55 = vadd.f32 %v2027_v22, %v1927_v7  ;;  %v1795_v39 = vadd.f32 %v1742_v13, %v3536_v59 }
 0x277   : > { %v2223_v33 = vadd.f32 %v2167_v31, %v2083_v55  ;;  %v1873_v40 = vpop.f32.mrf.mxu2 }
 0x278   : > { %v1928_v19 = vadd.f32 %v1873_v40, %v1794_v3 }
 0x279   : > { %v2259_v30 = vadd.f32 %v3633_v42, %v2223_v33 }
 0x27b   : > { %2292 = vst.msk [vmem:[%s3643_s13 + $0x80] sm:$0xff] %vm2275_vm8, %v2259_v30  ;;  %v2169_v16 = vpop.f32.mrf.mxu0 }
 0x27c   : > { %v2029_v50 = vpop.f32.mrf.mxu3  ;;  %v1744_v48 = vpop.f32.mrf.mxu1 }
 0x27d   : > { %v2084_v6 = vadd.f32 %v2029_v50, %v1928_v19  ;;  %v1796_v62 = vadd.f32 %v1744_v48, %v3541_v47 }
 0x27f   : > { %v2224_v21 = vadd.f32 %v2169_v16, %v2084_v6  ;;  %v1876_v36 = vpop.f32.mrf.mxu2 }
 0x280   : > { %v1929_v28 = vadd.f32 %v1876_v36, %v1795_v39 }
 0x281   : > { %v2260_v9 = vadd.f32 %v3633_v42, %v2224_v21 }
 0x283   : > { %2293 = vst.msk [vmem:[%s3643_s13 + $0x88] sm:$0xff] %vm2275_vm8, %v2260_v9  ;;  %v2172_v26 = vpop.f32.mrf.mxu0 }
 0x284   : > { %v2032_v18 = vpop.f32.mrf.mxu3  ;;  %v1747_v4 = vpop.f32.mrf.mxu1 }
 0x285   : > { %v2085_v34 = vadd.f32 %v2032_v18, %v1929_v28  ;;  %v1797_v12 = vadd.f32 %v1747_v4, %v3550_v23 }
 0x287   : > { %v2225_v49 = vadd.f32 %v2172_v26, %v2085_v34  ;;  %v1878_v46 = vpop.f32.mrf.mxu2 }
 0x288   : > { %v1930_v11 = vadd.f32 %v1878_v46, %v1796_v62 }
 0x289   : > { %v2261_v45 = vadd.f32 %v3633_v42, %v2225_v49 }
 0x28b   : > { %2294 = vst.msk [vmem:[%s3643_s13 + $0x90] sm:$0xff] %vm2275_vm8, %v2261_v45  ;;  %v2174_v59 = vpop.f32.mrf.mxu0 }
 0x28c   : > { %v2034_v10 = vpop.f32.mrf.mxu3  ;;  %v1749_v24 = vpop.f32.mrf.mxu1 }
 0x28d   : > { %v2086_v14 = vadd.f32 %v2034_v10, %v1930_v11  ;;  %v1798_v41 = vadd.f32 %v1749_v24, %v3555_v61 }
 0x28f   : > { %v2226_v1 = vadd.f32 %v2174_v59, %v2086_v14  ;;  %v1881_v57 = vpop.f32.mrf.mxu2 }
 0x290   : > { %v1931_v27 = vadd.f32 %v1881_v57, %v1797_v12 }
 0x291   : > { %v2262_v32 = vadd.f32 %v3633_v42, %v2226_v1 }
 0x293   : > { %2295 = vst.msk [vmem:[%s3643_s13 + $0x98] sm:$0xff] %vm2275_vm8, %v2262_v32  ;;  %v2177_v47 = vpop.f32.mrf.mxu0 }
 0x294   : > { %v2037_v38 = vpop.f32.mrf.mxu3  ;;  %v1752_v58 = vpop.f32.mrf.mxu1 }
 0x295   : > { %v2087_v25 = vadd.f32 %v2037_v38, %v1931_v27  ;;  %v1799_v44 = vadd.f32 %v1752_v58, %v3564_v56 }
 0x297   : > { %v2227_v60 = vadd.f32 %v2177_v47, %v2087_v25  ;;  %v1883_v35 = vpop.f32.mrf.mxu2 }
 0x298   : > { %v1932_v43 = vadd.f32 %v1883_v35, %v1798_v41 }
 0x299   : > { %v2263_v54 = vadd.f32 %v3633_v42, %v2227_v60 }
 0x29b   : > { %2296 = vst.msk [vmem:[%s3643_s13 + $0xa0] sm:$0xff] %vm2275_vm8, %v2263_v54  ;;  %v2179_v23 = vpop.f32.mrf.mxu0 }
 0x29c   : > { %v2039_v37 = vpop.f32.mrf.mxu3  ;;  %v1754_v17 = vpop.f32.mrf.mxu1 }
 0x29d   : > { %v2088_v53 = vadd.f32 %v2039_v37, %v1932_v43  ;;  %v1800_v40 = vadd.f32 %v1754_v17, %v3569_v0 }
 0x29f   : > { %v2228_v15 = vadd.f32 %v2179_v23, %v2088_v53  ;;  %v1886_v7 = vpop.f32.mrf.mxu2 }
 0x2a0   : > { %v1933_v22 = vadd.f32 %v1886_v7, %v1799_v44 }
 0x2a1   : > { %v2264_v31 = vadd.f32 %v3633_v42, %v2228_v15 }
 0x2a3   : > { %2297 = vst.msk [vmem:[%s3643_s13 + $0xa8] sm:$0xff] %vm2275_vm8, %v2264_v31  ;;  %v2182_v61 = vpop.f32.mrf.mxu0 }
 0x2a4   : > { %v2042_v13 = vpop.f32.mrf.mxu3  ;;  %v1757_v55 = vpop.f32.mrf.mxu1 }
 0x2a5   : > { %v2089_v33 = vadd.f32 %v2042_v13, %v1933_v22  ;;  %v1801_v39 = vadd.f32 %v1757_v55, %v3578_v29 }
 0x2a7   : > { %v2229_v3 = vadd.f32 %v2182_v61, %v2089_v33  ;;  %v1888_v30 = vpop.f32.mrf.mxu2 }
 0x2a8   : > { %v1934_v16 = vadd.f32 %v1888_v30, %v1800_v40 }
 0x2a9   : > { %v2265_v19 = vadd.f32 %v3633_v42, %v2229_v3 }
 0x2ab   : > { %2298 = vst.msk [vmem:[%s3643_s13 + $0xb0] sm:$0xff] %vm2275_vm8, %v2265_v19  ;;  %v2184_v56 = vpop.f32.mrf.mxu0 }
 0x2ac   : > { %v2044_v50 = vpop.f32.mrf.mxu3  ;;  %v1759_v48 = vpop.f32.mrf.mxu1 }
 0x2ad   : > { %v2090_v6 = vadd.f32 %v2044_v50, %v1934_v16  ;;  %v1802_v49 = vadd.f32 %v1759_v48, %v3583_v52 }
 0x2af   : > { %v2230_v21 = vadd.f32 %v2184_v56, %v2090_v6  ;;  %v1891_v36 = vpop.f32.mrf.mxu2 }
 0x2b0   : > { %v1935_v28 = vadd.f32 %v1891_v36, %v1801_v39 }
 0x2b1   : > { %v2266_v9 = vadd.f32 %v3633_v42, %v2230_v21 }
 0x2b3   : > { %2299 = vst.msk [vmem:[%s3643_s13 + $0xb8] sm:$0xff] %vm2275_vm8, %v2266_v9  ;;  %v2187_v0 = vpop.f32.mrf.mxu0 }
 0x2b4   : > { %v2047_v26 = vpop.f32.mrf.mxu3  ;;  %v1762_v18 = vpop.f32.mrf.mxu1 }
 0x2b5   : > { %v2091_v4 = vadd.f32 %v2047_v26, %v1935_v28  ;;  %v1803_v14 = vadd.f32 %v1762_v18, %v3592_v20 }
 0x2b7   : > { %v2231_v34 = vadd.f32 %v2187_v0, %v2091_v4  ;;  %v1893_v62 = vpop.f32.mrf.mxu2 }
 0x2b8   : > { %v1936_v45 = vadd.f32 %v1893_v62, %v1802_v49 }
 0x2b9   : > { %v2267_v46 = vadd.f32 %v3633_v42, %v2231_v34 }
 0x2bb   : > { %2300 = vst.msk [vmem:[%s3643_s13 + $0xc0] sm:$0xff] %vm2275_vm8, %v2267_v46  ;;  %v2189_v29 = vpop.f32.mrf.mxu0 }
 0x2bc   : > { %v2049_v11 = vpop.f32.mrf.mxu3  ;;  %v1764_v59 = vpop.f32.mrf.mxu1 }
 0x2bd   : > { %v2092_v10 = vadd.f32 %v2049_v11, %v1936_v45  ;;  %v1804_v58 = vadd.f32 %v1764_v59, %v3597_v8 }
 0x2bf   : > { %v2232_v24 = vadd.f32 %v2189_v29, %v2092_v10  ;;  %v1896_v1 = vpop.f32.mrf.mxu2 }
 0x2c0   : > { %v1937_v57 = vadd.f32 %v1896_v1, %v1803_v14 }
 0x2c1   : > { %v2268_v12 = vadd.f32 %v3633_v42, %v2232_v24 }
 0x2c3   : > { %2301 = vst.msk [vmem:[%s3643_s13 + $0xc8] sm:$0xff] %vm2275_vm8, %v2268_v12  ;;  %v2192_v52 = vpop.f32.mrf.mxu0 }
 0x2c4   : > { %v2052_v32 = vpop.f32.mrf.mxu3  ;;  %v1767_v47 = vpop.f32.mrf.mxu1 }
 0x2c5   : > { %v2093_v27 = vadd.f32 %v2052_v32, %v1937_v57  ;;  %v1805_v23 = vadd.f32 %v1767_v47, %v3606_v51 }
 0x2c7   : > { %v2233_v38 = vadd.f32 %v2192_v52, %v2093_v27  ;;  %v1898_v25 = vpop.f32.mrf.mxu2 }
 0x2c8   : > { %v1938_v41 = vadd.f32 %v1898_v25, %v1804_v58 }
 0x2c9   : > { %v2269_v60 = vadd.f32 %v3633_v42, %v2233_v38 }
 0x2cb   : > { %2302 = vst.msk [vmem:[%s3643_s13 + $0xd0] sm:$0xff] %vm2275_vm8, %v2269_v60  ;;  %v2194_v20 = vpop.f32.mrf.mxu0 }
 0x2cc   : > { %v2054_v35 = vpop.f32.mrf.mxu3  ;;  %v1769_v17 = vpop.f32.mrf.mxu1 }
 0x2cd   : > { %v2094_v54 = vadd.f32 %v2054_v35, %v1938_v41  ;;  %v1806_v22 = vadd.f32 %v1769_v17, %v3611_v63 }
 0x2cf   : > { %v2234_v43 = vadd.f32 %v2194_v20, %v2094_v54  ;;  %v1901_v37 = vpop.f32.mrf.mxu2 }
 0x2d0   : > { %v1939_v15 = vadd.f32 %v1901_v37, %v1805_v23 }
 0x2d1   : > { %v2270_v53 = vadd.f32 %v3633_v42, %v2234_v43 }
 0x2d3   : > { %2303 = vst.msk [vmem:[%s3643_s13 + $0xd8] sm:$0xff] %vm2275_vm8, %v2270_v53  ;;  %v2197_v8 = vpop.f32.mrf.mxu0 }
 0x2d4   : > { %v2057_v44 = vpop.f32.mrf.mxu3  ;;  %v1772_v33 = vpop.f32.mrf.mxu1 }
 0x2d5   : > { %v2095_v7 = vadd.f32 %v2057_v44, %v1939_v15  ;;  %v1807_v19 = vadd.f32 %v1772_v33, %v3620_v2 }
 0x2d7   : > { %v2235_v31 = vadd.f32 %v2197_v8, %v2095_v7  ;;  %v1903_v61 = vpop.f32.mrf.mxu2 }
 0x2d8   : > { %v1940_v55 = vadd.f32 %v1903_v61, %v1806_v22 }
 0x2d9   : > { %v2271_v13 = vadd.f32 %v3633_v42, %v2235_v31 }
 0x2db   : > { %2304 = vst.msk [vmem:[%s3643_s13 + $0xe0] sm:$0xff] %vm2275_vm8, %v2271_v13  ;;  %v2199_v51 = vpop.f32.mrf.mxu0 }
 0x2dc   : > { %v2059_v3 = vpop.f32.mrf.mxu3  ;;  %v1774_v63 = vpop.f32.mrf.mxu1 }
 0x2dd   : > { %v2096_v40 = vadd.f32 %v2059_v3, %v1940_v55  ;;  %v1808_v36 = vadd.f32 %v1774_v63, %v3625_v5 }
 0x2df   : > { %v2236_v30 = vadd.f32 %v2199_v51, %v2096_v40  ;;  %v1906_v16 = vpop.f32.mrf.mxu2 }
 0x2e0   : > { %v1941_v50 = vadd.f32 %v1906_v16, %v1807_v19 }
 0x2e1   : > { %v2272_v56 = vadd.f32 %v3633_v42, %v2236_v30 }
 0x2e3   : > { %2305 = vst.msk [vmem:[%s3643_s13 + $0xe8] sm:$0xff] %vm2275_vm8, %v2272_v56  ;;  %v2202_v48 = vpop.f32.mrf.mxu0 }
 0x2e4   : > { %v2062_v6 = vpop.f32.mrf.mxu3 }
 0x2e5   : > { %v2097_v21 = vadd.f32 %v2062_v6, %v1941_v50 }
 0x2e7   : > { %v2237_v39 = vadd.f32 %v2202_v48, %v2097_v21  ;;  %v1908_v9 = vpop.f32.mrf.mxu2 }
 0x2e8   : > { %v1942_v0 = vadd.f32 %v1908_v9, %v1808_v36 }
 0x2e9   : > { %v2273_v28 = vadd.f32 %v3633_v42, %v2237_v39 }
 0x2eb   : > { %2306 = vst.msk [vmem:[%s3643_s13 + $0xf0] sm:$0xff] %vm2275_vm8, %v2273_v28  ;;  %v2204_v18 = vpop.f32.mrf.mxu0 }
 0x2ec   : > { %v2064_v2 = vpop.f32.mrf.mxu3 }
 0x2ed   : > { %v2098_v26 = vadd.f32 %v2064_v2, %v1942_v0 }
 0x2ef   : > { %v2238_v4 = vadd.f32 %v2204_v18, %v2098_v26 }
 0x2f1   : > { %v2274_v34 = vadd.f32 %v3633_v42, %v2238_v4 }
 0x2f3   : > { %2307 = vst.msk [vmem:[%s3643_s13 + $0xf8] sm:$0xff] %vm2275_vm8, %v2274_v34 }
 0x2f4 PF: > { %s13_s12 = sadd.s32 1, %s2661_s12  }
 0x2f5   : > { %p10_p4 = scmp.ge.s32.totalorder %s13_s12, 4  }
 0x2f7   :  { %12 = sbr.rel (!%p10_p4) target bundleno = 1 (0x1), region = 70 }

// kernel: quant_model_forward.2
= control target key start
LH: loop header
LB: loop body
LE: loop exit
PB: predicated region body
PF: predicated region fallthrough
CT: control target
= control target key end

     0   :  { %s3872_s27 = smov 0   ;;  %s6377_s0 = inlined_call_operand.vmem [shape: bf16[2,18,18,4], index: 0, kind: input, shape index: {}]   ;;  %s6378_s1 = inlined_call_operand.vmem [shape: bf16[9,4,8], index: 1, kind: input, shape index: {}]   ;;  %s6379_s2 = inlined_call_operand.vmem [shape: f32[1,8], index: 2, kind: input, shape index: {}]   ;;  %s6380_s3 = inlined_call_operand.vmem [shape: bf16[2,1,32], index: 3, kind: input, shape index: {}]   ;;  %s6381_s4 = inlined_call_operand.vmem [shape: bf16[32,64], index: 4, kind: input, shape index: {}]   ;;  %s6382_s5 = inlined_call_operand.vmem [shape: f32[1,64], index: 5, kind: input, shape index: {}]   ;;  %s6383_s6 = inlined_call_operand.vmem [shape: bf16[64,8], index: 6, kind: input, shape index: {}]   ;;  %s6384_s7 = inlined_call_operand.vmem [shape: f32[1,8], index: 7, kind: input, shape index: {}]   ;;  %s6385_s8 = inlined_call_operand.vmem [shape: bf16[2,256,8], index: 8, kind: output, shape index: {}]  }
   0x1 LB: > { %s3332_s28 = sadd.s32 4294967295, %s3825_s27   ;;  %p3336_p0 = scmp.ge.s32.totalorder %s3825_s27, 1  ;;  %s3825_s27 = sphi %s3872_s27, %s18_s27  }
   0x2   : > { %p270_p1 = scmp.lt.s32.totalorder %s3825_s27, 3 }
   0x4   : > { %p271_p2 = pnand %p3336_p0, %p270_p1 }
   0x6   : > { %274 = sbr.rel (%p271_p2) target bundleno = 1074 (0x432), region = 52 }
   0xb   : > { %v3340_v0 = vld [vmem:[%s6378_s1 + $0x2] sm:$0x3]  ;;  %vm862_vm0 = vcmask 1041408   ;;  %p307_p3 = scmp.lt.s32.totalorder %s3332_s28, 1  ;;  %v375_v2 = vld [vmem:[%s6378_s1] sm:$0x3] }
   0xc   : > { %v864_v1 = vsel %vm862_vm0, %v3340_v0, 0  ;;  %v1084_v3 = vsel %vm862_vm0, %v375_v2, 0  ;;  %vm376_vm1 = vsmask.f32 3328  ;;  %vm377_vm2 = vsmask.f32 7440 }
   0xd   : > { %3668 = vmatpush.bf16.msra.mxu1 %v864_v1  ;;  %3670 = vmatpush.bf16.msra.mxu3 %v864_v1  ;;  %s6798_s28 = smov (!%p307_p3, %s3332_s28), 1  ;;  %vm3921_vm3 = vmor %vm376_vm1, %vm377_vm2  ;;  %vm813_vm4 = vcmask 31744   ;;  %vm1191_vm5 = vcmask 1042432   ;;  %vm1192_vm6 = vcmask 1046532   ;;  %vm2406_vm8 = vcmask 261120  }
   0xe   : > { %873 = vmatpush.bf16.msra.mxu0 %v864_v1  ;;  %s3671_s11 = smul.u32 216, %s6798_s28  ;;  %3669 = vmatpush.bf16.msra.mxu2 %v864_v1  ;;  %vm4188_vm7 = vmor %vm1191_vm5, %vm1192_vm6  ;;  %s314_s19 = scalar_lea.vmem %s6380_s3, %s6798_s28  ;;  %vm2477_vm13 = vcmask 523264  }
   0xf   : > { %s3643_s10 = sshll.u32 %s6798_s28, 7 }
  0x10   : > { %s3894_s14 = scalar_lea.vmem %s6377_s0, %s3671_s11  ;;  %s6111_s12 = scalar_lea.vmem %s6385_s8, %s3643_s10 }
  0x11   : > { %1093 = vmatpush.bf16.msrb.mxu1 %v1084_v3  ;;  %v3897_v4 = vld [vmem:[%s3894_s14 + $0x3c] sm:$0xf]  ;;  %v3900_v5 = vld [vmem:[%s3894_s14 + $0x40] sm:$0xf]  ;;  %v3903_v6 = vld [vmem:[%s3894_s14 + $0x44] sm:$0x1] }
  0x12   : > { %v500_v7 = vshrl.u32 %v3897_v4, 16  ;;  %v503_v8 = vshll.u32 %v3897_v4, 16  ;;  %v509_v9 = vshll.u32 %v3900_v5, 16  ;;  %v513_v10 = vshrl.u32 %v3900_v5, 16  ;;  %v354_v11 = vld [vmem:[%s3894_s14 + $0x84] sm:$0xf] }
  0x13   : > { %v519_v12 = vshll.u32 %v3903_v6, 16  ;;  %v355_v13 = vld [vmem:[%s3894_s14 + $0x88] sm:$0xf]  ;;  %v356_v14 = vld [vmem:[%s3894_s14 + $0x8c] sm:$0x1]  ;;  %v644_v15 = vshrl.u32 %v354_v11, 16 }
  0x14   : > { %v502_v16 = vrot.slane %v500_v7, 4  ;;  %v505_v17 = vrot.slane %v503_v8, 5  ;;  %v511_v18 = vrot.slane %v509_v9, 5  ;;  %v515_v19 = vrot.slane %v513_v10, 4  ;;  %v3914_v20 = vld [vmem:[%s3894_s14] sm:$0xf] }
  0x15   : > { %v521_v21 = vrot.slane %v519_v12, 5  ;;  %v646_v22 = vrot.slane %v644_v15, 4  ;;  %v647_v23 = vshll.u32 %v354_v11, 16  ;;  %v653_v24 = vshll.u32 %v355_v13, 16  ;;  %v3917_v29 = vld [vmem:[%s3894_s14 + $0x4] sm:$0xf] }
  0x16   : > { %v506_v25 = vor.u32 %v505_v17, %v502_v16  ;;  %v516_v26 = vor.u32 %v515_v19, %v511_v18  ;;  %v657_v27 = vshrl.u32 %v355_v13, 16  ;;  %v663_v28 = vshll.u32 %v356_v14, 16  ;;  %v3927_v39 = vld [vmem:[%s3894_s14 + $0x8] sm:$0x1]  ;;  %v3945_v59 = vld [vmem:[%s3894_s14 + $0x4c] sm:$0xf] }
  0x17   : > { %v649_v31 = vrot.slane %v647_v23, 5  ;;  %v655_v32 = vrot.slane %v653_v24, 5  ;;  %v380_v33 = vshrl.u32 %v3914_v20, 16  ;;  %v383_v41 = vshll.u32 %v3914_v20, 16  ;;  %v3938_v55 = vld [vmem:[%s3894_s14 + $0x48] sm:$0xf] }
  0x18   : > { %v507_v34 = vrot.slane %v506_v25, 4  ;;  %v517_v35 = vrot.slane %v516_v26, 4  ;;  %v659_v36 = vrot.slane %v657_v27, 4  ;;  %v665_v37 = vrot.slane %v663_v28, 5  ;;  %v3948_v60 = vld [vmem:[%s3894_s14 + $0x50] sm:$0x1] }
  0x19   : > { %v650_v38 = vor.u32 %v649_v31, %v646_v22  ;;  %v382_v40 = vrot.slane %v380_v33, 4  ;;  %v389_v42 = vshll.u32 %v3917_v29, 16  ;;  %v393_v46 = vshrl.u32 %v3917_v29, 16  ;;  %v357_v12 = vld [vmem:[%s3894_s14 + $0x90] sm:$0xf] }
  0x1a   : > { %v512_v43 = vsel %vm3921_vm3, %v507_v34, %v511_v18  ;;  %v522_v44 = vsel %vm3921_vm3, %v517_v35, %v521_v21  ;;  %v660_v45 = vor.u32 %v659_v36, %v655_v32  ;;  %v385_v50 = vrot.slane %v383_v41, 5  ;;  %v358_v17 = vld [vmem:[%s3894_s14 + $0x94] sm:$0xf]  ;;  %v359_v23 = vld [vmem:[%s3894_s14 + $0x98] sm:$0x1] }
  0x1b   : > { %v775_v47 = vunpack.c.l.b16 %v512_v43  ;;  %v776_v48 = vunpack.c.l.b16 %v522_v44  ;;  %v651_v49 = vrot.slane %v650_v38, 4  ;;  %v391_v52 = vrot.slane %v389_v42, 5  ;;  %v3971_v34 = vld [vmem:[%s3894_s14 + $0xc] sm:$0xf]  ;;  %v3974_v44 = vld [vmem:[%s3894_s14 + $0x10] sm:$0xf] }
  0x1c   : > { %v661_v51 = vrot.slane %v660_v45, 4  ;;  %v395_v53 = vrot.slane %v393_v46, 4  ;;  %v399_v54 = vshll.u32 %v3927_v39, 16  ;;  %v386_v58 = vor.u32 %v385_v50, %v382_v40 }
  0x1d   : > { %v3940_v56 = vpack.c.b16 %v776_v48, %v775_v47  ;;  %v656_v57 = vsel %vm3921_vm3, %v651_v49, %v655_v32  ;;  %v524_v3 = vshrl.u32 %v3938_v55, 16  ;;  %v527_v7 = vshll.u32 %v3938_v55, 16  ;;  %v3980_v47 = vld [vmem:[%s3894_s14 + $0x14] sm:$0x1] }
  0x1e   : > { %v666_v61 = vsel %vm3921_vm3, %v661_v51, %v665_v37  ;;  %v787_v62 = vunpack.c.l.b16 %v656_v57  ;;  %v396_v63 = vor.u32 %v395_v53, %v391_v52  ;;  %v401_v0 = vrot.slane %v399_v54, 5  ;;  %v3986_v53 = vld [vmem:[%s3894_s14 + $0x6c] sm:$0xf] }
  0x1f   : > { %3346 = vmatmul.msk.bf16.vlgmr.msra.gmra.mxu1 %vm813_vm4, %v3940_v56  ;;  %v788_v1 = vunpack.c.l.b16 %v666_v61  ;;  %v387_v2 = vrot.slane %v386_v58, 4  ;;  %v533_v9 = vshll.u32 %v3945_v59, 16  ;;  %v537_v10 = vshrl.u32 %v3945_v59, 16 }
  0x20   : > { %v397_v8 = vrot.slane %v396_v63, 4  ;;  %v543_v11 = vshll.u32 %v3948_v60, 16  ;;  %v526_v15 = vrot.slane %v524_v3, 4  ;;  %v529_v16 = vrot.slane %v527_v7, 5 }
  0x21   : > { %v3960_v13 = vpack.c.b16 %v788_v1, %v787_v62  ;;  %v392_v14 = vsel %vm3921_vm3, %v387_v2, %v391_v52  ;;  %v535_v21 = vrot.slane %v533_v9, 5  ;;  %v539_v22 = vrot.slane %v537_v10, 4 }
  0x22   : > { %v402_v18 = vsel %vm3921_vm3, %v397_v8, %v401_v0  ;;  %v765_v19 = vunpack.c.l.b16 %v392_v14  ;;  %v530_v25 = vor.u32 %v529_v16, %v526_v15  ;;  %v545_v26 = vrot.slane %v543_v11, 5  ;;  %v3995_v8 = vld [vmem:[%s3894_s14 + $0x70] sm:$0xf]  ;;  %v4003_v15 = vld [vmem:[%s3894_s14 + $0x74] sm:$0x1] }
  0x23   : > { %6479 = vst [vmem:[#allocation2_spill] sm:$0xff] %v3960_v13  ;;  %3352 = vmatmul.msk.bf16.vlgmr.msra.gmra.mxu3 %vm813_vm4, %v3960_v13  ;;  %v766_v24 = vunpack.c.l.b16 %v402_v18  ;;  %v668_v27 = vshrl.u32 %v357_v12, 16  ;;  %v540_v28 = vor.u32 %v539_v22, %v535_v21  ;;  %v671_v31 = vshll.u32 %v357_v12, 16  ;;  %v4006_v16 = vld [vmem:[%s3894_s14 + $0x54] sm:$0xf] }
  0x24   : > { %v677_v32 = vshll.u32 %v358_v17, 16  ;;  %v681_v33 = vshrl.u32 %v358_v17, 16  ;;  %v531_v36 = vrot.slane %v530_v25, 4  ;;  %v687_v38 = vshll.u32 %v359_v23, 16 }
  0x25   : > { %v797_v35 = vpack.c.b16 %v766_v24, %v765_v19  ;;  %v670_v37 = vrot.slane %v668_v27, 4  ;;  %v541_v40 = vrot.slane %v540_v28, 4  ;;  %v673_v41 = vrot.slane %v671_v31, 5  ;;  %v4017_v31 = vld [vmem:[%s3894_s14 + $0x58] sm:$0xf] }
  0x26   : > { %v679_v42 = vrot.slane %v677_v32, 5  ;;  %v683_v43 = vrot.slane %v681_v33, 4  ;;  %v536_v45 = vsel %vm3921_vm3, %v531_v36, %v535_v21  ;;  %v689_v46 = vrot.slane %v687_v38, 5  ;;  %v4021_v38 = vld [vmem:[%s3894_s14 + $0x5c] sm:$0x1] }
  0x27   : > { %3341 = vmatmul.msk.bf16.vlgmr.msra.gmra.mxu0 %vm813_vm4, %v797_v35  ;;  %v404_v48 = vshrl.u32 %v3971_v34, 16  ;;  %v546_v49 = vsel %vm3921_vm3, %v541_v40, %v545_v26  ;;  %v777_v50 = vunpack.c.l.b16 %v536_v45  ;;  %v674_v51 = vor.u32 %v673_v41, %v670_v37  ;;  %v4027_v45 = vld [vmem:[%s3894_s14 + $0x9c] sm:$0xf] }
  0x28   : > { %v684_v52 = vor.u32 %v683_v43, %v679_v42  ;;  %v778_v54 = vunpack.c.l.b16 %v546_v49  ;;  %v407_v58 = vshll.u32 %v3971_v34, 16  ;;  %v413_v61 = vshll.u32 %v3974_v44, 16  ;;  %6482 = vst [vmem:[#allocation5_spill] sm:$0xff] %v4027_v45 }
  0x29   : > { %v406_v57 = vrot.slane %v404_v48, 4  ;;  %v675_v62 = vrot.slane %v674_v51, 4  ;;  %v417_v0 = vshrl.u32 %v3974_v44, 16  ;;  %v423_v1 = vshll.u32 %v3980_v47, 16 }
  0x2a   : > { %v685_v63 = vrot.slane %v684_v52, 4  ;;  %v3992_v2 = vpack.c.b16 %v778_v54, %v777_v50  ;;  %v409_v3 = vrot.slane %v407_v58, 5  ;;  %v415_v7 = vrot.slane %v413_v61, 5 }
  0x2b   : > { %v596_v9 = vshrl.u32 %v3986_v53, 16  ;;  %v680_v10 = vsel %vm3921_vm3, %v675_v62, %v679_v42  ;;  %v419_v12 = vrot.slane %v417_v0, 4  ;;  %v425_v14 = vrot.slane %v423_v1, 5 }
  0x2c   : > { %6480 = vst [vmem:[#allocation3_spill] sm:$0xff] %v3992_v2  ;;  %v690_v11 = vsel %vm3921_vm3, %v685_v63, %v689_v46  ;;  %v789_v17 = vunpack.c.l.b16 %v680_v10  ;;  %v410_v19 = vor.u32 %v409_v3, %v406_v57  ;;  %v599_v23 = vshll.u32 %v3986_v53, 16  ;;  %v4043_v10 = vld [vmem:[%s3894_s14 + $0xa4] sm:$0x1] }
  0x2d   : > { %v790_v18 = vunpack.c.l.b16 %v690_v11  ;;  %v598_v21 = vrot.slane %v596_v9, 4  ;;  %v420_v22 = vor.u32 %v419_v12, %v415_v7  ;;  %v605_v24 = vshll.u32 %v3995_v8, 16  ;;  %v4040_v9 = vld [vmem:[%s3894_s14 + $0xa0] sm:$0xf]  ;;  %6483 = vst [vmem:[#allocation6_spill] sm:$0xff] %v4043_v10 }
  0x2e   : > { %v609_v25 = vshrl.u32 %v3995_v8, 16  ;;  %v411_v27 = vrot.slane %v410_v19, 4  ;;  %v615_v28 = vshll.u32 %v4003_v15, 16  ;;  %v548_v32 = vshrl.u32 %v4006_v16, 16 }
  0x2f   : > { %3347 = vmatmul.msk.bf16.gmra.mxu1 %vm813_vm4, %v3992_v2  ;;  %v4013_v26 = vpack.c.b16 %v790_v18, %v789_v17  ;;  %v421_v33 = vrot.slane %v420_v22, 4  ;;  %v601_v35 = vrot.slane %v599_v23, 5  ;;  %v607_v36 = vrot.slane %v605_v24, 5 }
  0x30   : > { %v611_v37 = vrot.slane %v609_v25, 4  ;;  %v416_v40 = vsel %vm3921_vm3, %v411_v27, %v415_v7  ;;  %v617_v41 = vrot.slane %v615_v28, 5  ;;  %v550_v42 = vrot.slane %v548_v32, 4  ;;  %v4056_v28 = vld [vmem:[%s3894_s14 + $0x18] sm:$0xf] }
  0x31   : > { %6481 = vst [vmem:[#allocation4_spill] sm:$0xff] %v4013_v26  ;;  %v551_v43 = vshll.u32 %v4006_v16, 16  ;;  %v426_v46 = vsel %vm3921_vm3, %v421_v33, %v425_v14  ;;  %v767_v48 = vunpack.c.l.b16 %v416_v40  ;;  %v602_v49 = vor.u32 %v601_v35, %v598_v21 }
  0x32   : > { %v612_v50 = vor.u32 %v611_v37, %v607_v36  ;;  %v768_v51 = vunpack.c.l.b16 %v426_v46  ;;  %v557_v54 = vshll.u32 %v4017_v31, 16  ;;  %v561_v57 = vshrl.u32 %v4017_v31, 16 }
  0x33   : > { %3353 = vmatmul.msk.bf16.gmra.mxu3 %vm813_vm4, %v4013_v26  ;;  %v553_v52 = vrot.slane %v551_v43, 5  ;;  %v603_v58 = vrot.slane %v602_v49, 4  ;;  %v567_v62 = vshll.u32 %v4021_v38, 16  ;;  %v692_v63 = vshrl.u32 %v4027_v45, 16  ;;  %v4066_v43 = vld [vmem:[%s3894_s14 + $0x20] sm:$0x1] }
  0x34   : > { %v613_v61 = vrot.slane %v612_v50, 4  ;;  %v4037_v0 = vpack.c.b16 %v768_v51, %v767_v48  ;;  %v559_v3 = vrot.slane %v557_v54, 5  ;;  %v563_v7 = vrot.slane %v561_v57, 4  ;;  %v4176_v26 = vld [vmem:[%s3894_s14 + $0xb4] sm:$0xf] }
  0x35   : > { %v554_v1 = vor.u32 %v553_v52, %v550_v42  ;;  %v608_v11 = vsel %vm3921_vm3, %v603_v58, %v607_v36  ;;  %v569_v14 = vrot.slane %v567_v62, 5  ;;  %v694_v17 = vrot.slane %v692_v63, 4  ;;  %v4063_v36 = vld [vmem:[%s3894_s14 + $0x1c] sm:$0xf]  ;;  %v4076_v58 = vld [vmem:[%s3894_s14 + $0x78] sm:$0xf] }
  0x36   : > { %v618_v12 = vsel %vm3921_vm3, %v613_v61, %v617_v41  ;;  %v783_v18 = vunpack.c.l.b16 %v608_v11  ;;  %v564_v22 = vor.u32 %v563_v7, %v559_v3  ;;  %v695_v23 = vshll.u32 %v4027_v45, 16  ;;  %6492 = vst [vmem:[#allocation15_spill] sm:$0xff] %v4176_v26 }
  0x37   : > { %3342 = vmatmul.msk.bf16.gmra.mxu0 %vm813_vm4, %v4037_v0  ;;  %v784_v19 = vunpack.c.l.b16 %v618_v12  ;;  %v555_v21 = vrot.slane %v554_v1, 4  ;;  %v701_v24 = vshll.u32 %v4040_v9, 16  ;;  %v705_v25 = vshrl.u32 %v4040_v9, 16 }
  0x38   : > { %v711_v27 = vshll.u32 %v4043_v10, 16  ;;  %v565_v35 = vrot.slane %v564_v22, 4  ;;  %v697_v40 = vrot.slane %v695_v23, 5  ;;  %v428_v49 = vshrl.u32 %v4056_v28, 16 }
  0x39   : > { %v4058_v32 = vpack.c.b16 %v784_v19, %v783_v18  ;;  %v560_v33 = vsel %vm3921_vm3, %v555_v21, %v559_v3  ;;  %v703_v41 = vrot.slane %v701_v24, 5  ;;  %v707_v42 = vrot.slane %v705_v25, 4  ;;  %v4081_v3 = vld [vmem:[%s3894_s14 + $0x7c] sm:$0xf]  ;;  %v4093_v24 = vld [vmem:[%s3894_s14 + $0x80] sm:$0x1] }
  0x3a   : > { %v779_v37 = vunpack.c.l.b16 %v560_v33  ;;  %v570_v46 = vsel %vm3921_vm3, %v565_v35, %v569_v14  ;;  %v713_v48 = vrot.slane %v711_v27, 5  ;;  %v431_v50 = vshll.u32 %v4056_v28, 16 }
  0x3b   : > { %6484 = vst [vmem:[#allocation7_spill] sm:$0xff] %v4058_v32  ;;  %3350 = vmatmul.msk.bf16.vlgmr.msra.gmra.mxu2 %vm813_vm4, %v4058_v32  ;;  %v780_v51 = vunpack.c.l.b16 %v570_v46  ;;  %v698_v52 = vor.u32 %v697_v40, %v694_v17  ;;  %v708_v54 = vor.u32 %v707_v42, %v703_v41  ;;  %v437_v57 = vshll.u32 %v4063_v36, 16 }
  0x3c   : > { %v430_v61 = vrot.slane %v428_v49, 4  ;;  %v433_v62 = vrot.slane %v431_v50, 5  ;;  %v441_v63 = vshrl.u32 %v4063_v36, 16  ;;  %v447_v1 = vshll.u32 %v4066_v43, 16  ;;  %v4099_v50 = vld [vmem:[%s3894_s14 + $0x60] sm:$0xf] }
  0x3d   : > { %v4083_v7 = vpack.c.b16 %v780_v51, %v779_v37  ;;  %v699_v11 = vrot.slane %v698_v52, 4  ;;  %v709_v12 = vrot.slane %v708_v54, 4  ;;  %v439_v14 = vrot.slane %v437_v57, 5  ;;  %v4107_v57 = vld [vmem:[%s3894_s14 + $0x64] sm:$0xf] }
  0x3e   : > { %v434_v17 = vor.u32 %v433_v62, %v430_v61  ;;  %v443_v18 = vrot.slane %v441_v63, 4  ;;  %v449_v19 = vrot.slane %v447_v1, 5  ;;  %v620_v21 = vshrl.u32 %v4076_v58, 16  ;;  %v4110_v1 = vld [vmem:[%s3894_s14 + $0x68] sm:$0x1] }
  0x3f   : > { %6485 = vst [vmem:[#allocation8_spill] sm:$0xff] %v4083_v7  ;;  %3348 = vmatmul.msk.bf16.gmra.mxu1 %vm813_vm4, %v4083_v7  ;;  %v704_v22 = vsel %vm3921_vm3, %v699_v11, %v703_v41  ;;  %v714_v23 = vsel %vm3921_vm3, %v709_v12, %v713_v48  ;;  %v623_v25 = vshll.u32 %v4076_v58, 16  ;;  %v629_v27 = vshll.u32 %v4081_v3, 16 }
  0x40   : > { %v791_v33 = vunpack.c.l.b16 %v704_v22  ;;  %v792_v35 = vunpack.c.l.b16 %v714_v23  ;;  %v435_v37 = vrot.slane %v434_v17, 4  ;;  %v444_v40 = vor.u32 %v443_v18, %v439_v14 }
  0x41   : > { %v622_v42 = vrot.slane %v620_v21, 4  ;;  %v625_v46 = vrot.slane %v623_v25, 5  ;;  %v631_v49 = vrot.slane %v629_v27, 5  ;;  %v633_v41 = vshrl.u32 %v4081_v3, 16  ;;  %v4120_v25 = vld [vmem:[%s3894_s14 + $0xa8] sm:$0xf] }
  0x42   : > { %v4101_v48 = vpack.c.b16 %v792_v35, %v791_v33  ;;  %v440_v51 = vsel %vm3921_vm3, %v435_v37, %v439_v14  ;;  %v445_v52 = vrot.slane %v444_v40, 4  ;;  %v639_v54 = vshll.u32 %v4093_v24, 16  ;;  %6487 = vst [vmem:[#allocation10_spill] sm:$0xff] %v4120_v25 }
  0x43   : > { %v769_v61 = vunpack.c.l.b16 %v440_v51  ;;  %v626_v62 = vor.u32 %v625_v46, %v622_v42  ;;  %v635_v63 = vrot.slane %v633_v41, 4  ;;  %v572_v14 = vshrl.u32 %v4099_v50, 16 }
  0x44   : > { %6486 = vst [vmem:[#allocation9_spill] sm:$0xff] %v4101_v48  ;;  %3354 = vmatmul.msk.bf16.gmra.mxu3 %vm813_vm4, %v4101_v48  ;;  %v450_v11 = vsel %vm3921_vm3, %v445_v52, %v449_v19  ;;  %v641_v12 = vrot.slane %v639_v54, 5  ;;  %v575_v17 = vshll.u32 %v4099_v50, 16  ;;  %v581_v23 = vshll.u32 %v4107_v57, 16  ;;  %v4125_v19 = vld [vmem:[%s3894_s14 + $0xac] sm:$0xf] }
  0x45   : > { %v770_v18 = vunpack.c.l.b16 %v450_v11  ;;  %v627_v21 = vrot.slane %v626_v62, 4  ;;  %v636_v22 = vor.u32 %v635_v63, %v631_v49  ;;  %v574_v27 = vrot.slane %v572_v14, 4  ;;  %6488 = vst [vmem:[#allocation11_spill] sm:$0xff] %v4125_v19  ;;  %v4132_v63 = vld [vmem:[%s3894_s14 + $0xb0] sm:$0x1] }
  0x46   : > { %v577_v33 = vrot.slane %v575_v17, 5  ;;  %v585_v35 = vshrl.u32 %v4107_v57, 16  ;;  %v591_v37 = vshll.u32 %v4110_v1, 16  ;;  %v583_v41 = vrot.slane %v581_v23, 5  ;;  %6489 = vst [vmem:[#allocation12_spill] sm:$0xff] %v4132_v63 }
  0x47   : > { %v4127_v40 = vpack.c.b16 %v770_v18, %v769_v61  ;;  %v632_v42 = vsel %vm3921_vm3, %v627_v21, %v631_v49  ;;  %v637_v46 = vrot.slane %v636_v22, 4  ;;  %v716_v61 = vshrl.u32 %v4120_v25, 16 }
  0x48   : > { %v785_v51 = vunpack.c.l.b16 %v632_v42  ;;  %v578_v52 = vor.u32 %v577_v33, %v574_v27  ;;  %v587_v54 = vrot.slane %v585_v35, 4  ;;  %v593_v62 = vrot.slane %v591_v37, 5  ;;  %v4144_v37 = vld [vmem:[%s3894_s14 + $0x24] sm:$0xf] }
  0x49   : > { %3343 = vmatmul.msk.bf16.gmra.mxu0 %vm813_vm4, %v4127_v40  ;;  %v642_v11 = vsel %vm3921_vm3, %v637_v46, %v641_v12  ;;  %v719_v49 = vshll.u32 %v4120_v25, 16  ;;  %v725_v14 = vshll.u32 %v4125_v19, 16  ;;  %v729_v22 = vshrl.u32 %v4125_v19, 16 }
  0x4a   : > { %v786_v17 = vunpack.c.l.b16 %v642_v11  ;;  %v579_v18 = vrot.slane %v578_v52, 4  ;;  %v588_v21 = vor.u32 %v587_v54, %v583_v41  ;;  %v718_v23 = vrot.slane %v716_v61, 4  ;;  %v4151_v11 = vld [vmem:[%s3894_s14 + $0x28] sm:$0xf] }
  0x4b   : > { %v721_v27 = vrot.slane %v719_v49, 5  ;;  %v727_v33 = vrot.slane %v725_v14, 5  ;;  %v735_v35 = vshll.u32 %v4132_v63, 16  ;;  %v731_v48 = vrot.slane %v729_v22, 4  ;;  %v4155_v49 = vld [vmem:[%s3894_s14 + $0x2c] sm:$0x1] }
  0x4c   : > { %v4146_v12 = vpack.c.b16 %v786_v17, %v785_v51  ;;  %v584_v42 = vsel %vm3921_vm3, %v579_v18, %v583_v41  ;;  %v589_v46 = vrot.slane %v588_v21, 4  ;;  %v1199_v52 = vrot.slane %v3927_v39, 5 }
  0x4d   : > { %v781_v54 = vunpack.c.l.b16 %v584_v42  ;;  %v722_v25 = vor.u32 %v721_v27, %v718_v23  ;;  %v737_v61 = vrot.slane %v735_v35, 5  ;;  %v732_v14 = vor.u32 %v731_v48, %v727_v33  ;;  %v3453_v48 = vld [vmem:[%s6378_s1 + $0x4] sm:$0x3] }
  0x4e   : > { %6490 = vst [vmem:[#allocation13_spill] sm:$0xff] %v4146_v12  ;;  %3351 = vmatmul.msk.bf16.gmra.mxu2 %vm813_vm4, %v4146_v12  ;;  %v594_v51 = vsel %vm3921_vm3, %v589_v46, %v593_v62  ;;  %v452_v41 = vshrl.u32 %v4144_v37, 16  ;;  %v455_v17 = vshll.u32 %v4144_v37, 16  ;;  %v461_v39 = vshll.u32 %v4151_v11, 16 }
  0x4f   : > { %v782_v18 = vunpack.c.l.b16 %v594_v51  ;;  %v723_v21 = vrot.slane %v722_v25, 4  ;;  %v465_v22 = vshrl.u32 %v4151_v11, 16  ;;  %v733_v23 = vrot.slane %v732_v14, 4 }
  0x50   : > { %v454_v27 = vrot.slane %v452_v41, 4  ;;  %v457_v35 = vrot.slane %v455_v17, 5  ;;  %v471_v42 = vshll.u32 %v4155_v49, 16  ;;  %v463_v46 = vrot.slane %v461_v39, 5 }
  0x51   : > { %v4169_v62 = vpack.c.b16 %v782_v18, %v781_v54  ;;  %v728_v25 = vsel %vm3921_vm3, %v723_v21, %v727_v33  ;;  %v467_v51 = vrot.slane %v465_v22, 4  ;;  %v738_v63 = vsel %vm3921_vm3, %v733_v23, %v737_v61  ;;  %v4182_v33 = vld [vmem:[%s3894_s14 + $0xb8] sm:$0xf] }
  0x52   : > { %v793_v14 = vunpack.c.l.b16 %v728_v25  ;;  %v458_v41 = vor.u32 %v457_v35, %v454_v27  ;;  %v473_v17 = vrot.slane %v471_v42, 5  ;;  %v794_v19 = vunpack.c.l.b16 %v738_v63  ;;  %6493 = vst [vmem:[#allocation16_spill] sm:$0xff] %v4182_v33 }
  0x53   : > { %6491 = vst [vmem:[#allocation14_spill] sm:$0xff] %v4169_v62  ;;  %3349 = vmatmul.msk.bf16.gmra.mxu1 %vm813_vm4, %v4169_v62  ;;  %v468_v45 = vor.u32 %v467_v51, %v463_v46  ;;  %v1405_v54 = vsel %vm862_vm0, %v3453_v48, 0  ;;  %v3437_v61 = vrot.slane %v3914_v20, 9  ;;  %v1196_v21 = vrot.slane %v3917_v29, 5  ;;  %v4199_v29 = vld [vmem:[%s3894_s14 + $0xbc] sm:$0x1] }
  0x54   : > { %v459_v18 = vrot.slane %v458_v41, 4  ;;  %1414 = vmatpush.bf16.msrb.mxu2 %v1405_v54  ;;  %v4186_v39 = vpack.c.b16 %v794_v19, %v793_v14  ;;  %v6495_v63 = vmov 0  ;;  %v740_v23 = vshrl.u32 %v4176_v26, 16  ;;  %6498 = vst [vmem:[#allocation19_spill] sm:$0xff] %v4199_v29  ;;  %v4210_v14 = vld [vmem:[%s3894_s14 + $0x30] sm:$0xf] }
  0x55   : > { %v469_v22 = vrot.slane %v468_v45, 4  ;;  %v6496_v63 = vsel %vm4188_vm7, 4294967295, %v6495_v63  ;;  %v743_v27 = vshll.u32 %v4176_v26, 16  ;;  %v1197_v20 = vsel %vm4188_vm7, %v3437_v61, %v1196_v21  ;;  %v4223_v26 = vld [vmem:[%s3894_s14 + $0x38] sm:$0x1] }
  0x56   : > { %6494 = vst [vmem:[#allocation17_spill] sm:$0xff] %v4186_v39  ;;  %v464_v35 = vsel %vm3921_vm3, %v459_v18, %v463_v46  ;;  %v1198_v42 = vrot.slane %v1196_v21, 4  ;;  %v749_v45 = vshll.u32 %v4182_v33, 16  ;;  %3355 = vmatmul.msk.bf16.gmra.mxu3 %vm813_vm4, %v4186_v39  ;;  %v1308_v25 = vunpack.c.l.b16 %v1197_v20  ;;  %v3509_v46 = vld [vmem:[%s6378_s1 + $0xa] sm:$0x3] }
  0x57   : > { %6497 = vst [vmem:[#allocation18_spill] sm:$0xff] %v6496_v63  ;;  %v474_v19 = vsel %vm3921_vm3, %v469_v22, %v473_v17  ;;  %v771_v48 = vunpack.c.l.b16 %v464_v35  ;;  %v742_v51 = vrot.slane %v740_v23, 4  ;;  %v745_v18 = vrot.slane %v743_v27, 5  ;;  %v4217_v22 = vld [vmem:[%s3894_s14 + $0x34] sm:$0xf] }
  0x58   : > { %v772_v41 = vunpack.c.l.b16 %v474_v19  ;;  %v1200_v54 = vsel %vm4188_vm7, %v1198_v42, %v1199_v52  ;;  %v751_v21 = vrot.slane %v749_v45, 5  ;;  %v753_v39 = vshrl.u32 %v4182_v33, 16 }
  0x59   : > { %v1309_v61 = vunpack.c.l.b16 %v1200_v54  ;;  %v759_v17 = vshll.u32 %v4199_v29, 16  ;;  %v746_v35 = vor.u32 %v745_v18, %v742_v51  ;;  %v1835_v20 = vsel %vm862_vm0, %v3509_v46, 0 }
  0x5a   : > { %v4219_v23 = vpack.c.b16 %v772_v41, %v771_v48  ;;  %v476_v19 = vshrl.u32 %v4210_v14, 16  ;;  %v755_v52 = vrot.slane %v753_v39, 4  ;;  %1844 = vmatpush.bf16.msra.mxu1 %v1835_v20  ;;  %v479_v27 = vshll.u32 %v4210_v14, 16  ;;  %v3470_v20 = vld [vmem:[%s6378_s1 + $0x6] sm:$0x3] }
  0x5b   : > { %v1340_v10 = vpack.c.b16 %v1309_v61, %v1308_v25  ;;  %v747_v42 = vrot.slane %v746_v35, 4  ;;  %v485_v48 = vshll.u32 %v4217_v22, 16  ;;  %v489_v51 = vshrl.u32 %v4217_v22, 16 }
  0x5c   : > { %3344 = vmatmul.msk.bf16.gmra.mxu0 %vm813_vm4, %v4219_v23  ;;  %v478_v45 = vrot.slane %v476_v19, 4  ;;  %v756_v46 = vor.u32 %v755_v52, %v751_v21  ;;  %v761_v41 = vrot.slane %v759_v17, 5  ;;  %v481_v54 = vrot.slane %v479_v27, 5  ;;  %v3644_v52 = vld [vmem:[%s3894_s14] sm:$0xff] }
  0x5d   : > { %v495_v18 = vshll.u32 %v4223_v26, 16  ;;  %v752_v39 = vsel %vm3921_vm3, %v747_v42, %v751_v21  ;;  %v487_v25 = vrot.slane %v485_v48, 5  ;;  %v491_v61 = vrot.slane %v489_v51, 4 }
  0x5e   : > { %3454 = vmatmul.msk.bf16.vlgmr.msrb.gmra.mxu2 %vm813_vm4, %v1340_v10  ;;  %v1203_v35 = vrot.slane %v3974_v44, 5  ;;  %v757_v19 = vrot.slane %v756_v46, 4  ;;  %v795_v29 = vunpack.c.l.b16 %v752_v39  ;;  %v482_v17 = vor.u32 %v481_v54, %v478_v45  ;;  %v3491_v10 = vld [vmem:[%s6378_s1 + $0x8] sm:$0x3] }
  0x5f   : > { %v3438_v27 = vrot.slane %v3971_v34, 9  ;;  %v492_v33 = vor.u32 %v491_v61, %v487_v25  ;;  %v497_v21 = vrot.slane %v495_v18, 5  ;;  %v1206_v48 = vrot.slane %v3980_v47, 5 }
  0x60   : > { %v1205_v42 = vrot.slane %v1203_v35, 4  ;;  %v762_v44 = vsel %vm3921_vm3, %v757_v19, %v761_v41  ;;  %v483_v51 = vrot.slane %v482_v17, 4  ;;  %v1539_v46 = vsel %vm862_vm0, %v3470_v20, 0 }
  0x61   : > { %v796_v39 = vunpack.c.l.b16 %v762_v44  ;;  %v493_v13 = vrot.slane %v492_v33, 4  ;;  %1548 = vmatpush.bf16.msrb.mxu3 %v1539_v46  ;;  %v1695_v34 = vsel %vm862_vm0, %v3491_v10, 0  ;;  %v1204_v47 = vsel %vm4188_vm7, %v3438_v27, %v1203_v35 }
  0x62   : > { %v488_v45 = vsel %vm3921_vm3, %v483_v51, %v487_v25  ;;  %v1207_v41 = vsel %vm4188_vm7, %v1205_v42, %v1206_v48  ;;  %1704 = vmatpush.bf16.msrb.mxu0 %v1695_v34  ;;  %v1310_v20 = vunpack.c.l.b16 %v1204_v47  ;;  %v1210_v35 = vrot.slane %v4063_v36, 5 }
  0x63   : > { %3421 = vmatmul.msk.bf16.vlgmr.msrb.gmra.mxu1 %vm813_vm4, %v3644_v52  ;;  %v4256_v54 = vpack.c.b16 %v796_v39, %v795_v29  ;;  %v498_v33 = vsel %vm3921_vm3, %v493_v13, %v497_v21  ;;  %v773_v18 = vunpack.c.l.b16 %v488_v45  ;;  %v1311_v19 = vunpack.c.l.b16 %v1207_v41  ;;  %v3645_v13 = vld [vmem:[%s3894_s14 + $0xc] sm:$0xff] }
  0x64   : > { %v774_v61 = vunpack.c.l.b16 %v498_v33  ;;  %v3439_v29 = vrot.slane %v4056_v28, 9  ;;  %v1212_v17 = vrot.slane %v1210_v35, 4  ;;  %v1213_v27 = vrot.slane %v4066_v43, 5  ;;  %v4288_v28 = vld [vmem:[%s3894_s14 + $0x18] sm:$0xff] }
  0x65   : > { %v4264_v52 = vpack.c.b16 %v1311_v19, %v1310_v20  ;;  %v1217_v44 = vrot.slane %v4151_v11, 5  ;;  %v3440_v43 = vrot.slane %v4144_v37, 9  ;;  %v1220_v46 = vrot.slane %v4155_v49, 5  ;;  %v4308_v49 = vld [vmem:[%s3894_s14 + $0x24] sm:$0xff] }
  0x66   : > { %3356 = vmatmul.msk.bf16.gmra.mxu3 %vm813_vm4, %v4256_v54  ;;  %v4262_v25 = vpack.c.b16 %v774_v61, %v773_v18  ;;  %v1211_v10 = vsel %vm4188_vm7, %v3439_v29, %v1210_v35  ;;  %v1214_v36 = vsel %vm4188_vm7, %v1212_v17, %v1213_v27  ;;  %v1224_v37 = vrot.slane %v4217_v22, 5  ;;  %v4330_v35 = vld [vmem:[%s3894_s14 + $0x30] sm:$0xff] }
  0x67   : > { %v1312_v21 = vunpack.c.l.b16 %v1211_v10  ;;  %v1313_v42 = vunpack.c.l.b16 %v1214_v36  ;;  %v1219_v51 = vrot.slane %v1217_v44, 4  ;;  %v1218_v11 = vsel %vm4188_vm7, %v3440_v43, %v1217_v44 }
  0x68   : > { %v1314_v39 = vunpack.c.l.b16 %v1218_v11  ;;  %v3441_v47 = vrot.slane %v4210_v14, 9  ;;  %v1226_v41 = vrot.slane %v1224_v37, 4  ;;  %v1227_v33 = vrot.slane %v4223_v26, 5  ;;  %v4362_v11 = vld [vmem:[%s3894_s14 + $0x3c] sm:$0xff] }
  0x69   : > { %v4280_v48 = vpack.c.b16 %v1313_v42, %v1312_v21  ;;  %v1231_v26 = vrot.slane %v3900_v5, 5  ;;  %v1234_v17 = vrot.slane %v3903_v6, 5 }
  0x6a   : > { %v1225_v22 = vsel %vm4188_vm7, %v3441_v47, %v1224_v37  ;;  %v1228_v18 = vsel %vm4188_vm7, %v1226_v41, %v1227_v33 }
  0x6b   : > { %v1316_v61 = vunpack.c.l.b16 %v1225_v22  ;;  %v1317_v20 = vunpack.c.l.b16 %v1228_v18  ;;  %v1233_v29 = vrot.slane %v1231_v26, 4  ;;  %v1245_v18 = vrot.slane %v4017_v31, 5 }
  0x6c   : > { %3345 = vmatmul.msk.bf16.gmra.mxu0 %vm813_vm4, %v4262_v25  ;;  %v1248_v31 = vrot.slane %v4021_v38, 5 }
  0x6d   : > { %v4320_v19 = vpack.c.b16 %v1317_v20, %v1316_v61  ;;  %v1235_v36 = vsel %vm4188_vm7, %v1233_v29, %v1234_v17  ;;  %v4396_v29 = vld [vmem:[%s3894_s14 + $0x48] sm:$0xff]  ;;  %v3444_v17 = vrot.slane %v4006_v16, 9 }
  0x6e   : > { %3455 = vmatmul.msk.bf16.gmra.mxu2 %vm813_vm4, %v4264_v52  ;;  %v1319_v42 = vunpack.c.l.b16 %v1235_v36 }
  0x6f   : > { %v1246_v36 = vsel %vm4188_vm7, %v3444_v17, %v1245_v18  ;;  %v1255_v17 = vrot.slane %v4110_v1, 5 }
  0x73   : > { %3422 = vmatmul.msk.bf16.gmra.mxu1 %vm813_vm4, %v3645_v13 }
  0x76   : > { %3475 = vmatmul.msk.bf16.vlgmr.msrb.gmra.mxu3 %vm813_vm4, %v3645_v13  ;;  %v3442_v13 = vrot.slane %v3897_v4, 9 }
  0x78   : > { %v1232_v10 = vsel %vm4188_vm7, %v3442_v13, %v1231_v26 }
  0x79   : > { %v1318_v4 = vunpack.c.l.b16 %v1232_v10  ;;  %v1247_v10 = vrot.slane %v1245_v18, 4 }
  0x7b   : > { %v4348_v6 = vpack.c.b16 %v1319_v42, %v1318_v4  ;;  %v1249_v4 = vsel %vm4188_vm7, %v1247_v10, %v1248_v31 }
  0x7c   : > { %3492 = vmatmul.msk.bf16.vlgmr.msrb.gmra.mxu0 %vm813_vm4, %v4037_v0  ;;  %v1221_v0 = vsel %vm4188_vm7, %v1219_v51, %v1220_v46  ;;  %v1238_v51 = vrot.slane %v3945_v59, 5 }
  0x7d   : > { %v1315_v34 = vunpack.c.l.b16 %v1221_v0  ;;  %v3443_v0 = vrot.slane %v3938_v55, 9 }
  0x7e   : > { %3456 = vmatmul.msk.bf16.gmra.mxu2 %vm813_vm4, %v4280_v48 }
  0x7f   : > { %v4300_v45 = vpack.c.b16 %v1315_v34, %v1314_v39  ;;  %v1240_v39 = vrot.slane %v1238_v51, 4  ;;  %v1241_v34 = vrot.slane %v3948_v60, 5  ;;  %v1239_v47 = vsel %vm4188_vm7, %v3443_v0, %v1238_v51 }
  0x80   : > { %v1320_v55 = vunpack.c.l.b16 %v1239_v47  ;;  %v1322_v0 = vunpack.c.l.b16 %v1246_v36  ;;  %v1252_v47 = vrot.slane %v4107_v57, 5 }
  0x81   : > { %v1242_v41 = vsel %vm4188_vm7, %v1240_v39, %v1241_v34  ;;  %v1323_v39 = vunpack.c.l.b16 %v1249_v4 }
  0x82   : > { %v1321_v22 = vunpack.c.l.b16 %v1242_v41  ;;  %v1254_v18 = vrot.slane %v1252_v47, 4 }
  0x83   : > { %3423 = vmatmul.msk.bf16.gmra.mxu1 %vm813_vm4, %v4288_v28  ;;  %v4416_v34 = vpack.c.b16 %v1323_v39, %v1322_v0 }
  0x84   : > { %v4380_v60 = vpack.c.b16 %v1321_v22, %v1320_v55  ;;  %v4426_v55 = vld [vmem:[%s3894_s14 + $0x54] sm:$0xff]  ;;  %v3445_v22 = vrot.slane %v4099_v50, 9  ;;  %v1256_v4 = vsel %vm4188_vm7, %v1254_v18, %v1255_v17  ;;  %v3446_v18 = vrot.slane %v3986_v53, 9 }
  0x85   : > { %6500 = vst [vmem:[#allocation21_spill] sm:$0xff] %v4416_v34  ;;  %v1325_v0 = vunpack.c.l.b16 %v1256_v4 }
  0x86   : > { %3476 = vmatmul.msk.bf16.gmra.mxu3 %vm813_vm4, %v4288_v28  ;;  %6499 = vst [vmem:[#allocation20_spill] sm:$0xff] %v4380_v60  ;;  %v1253_v36 = vsel %vm4188_vm7, %v3445_v22, %v1252_v47  ;;  %v1259_v47 = vrot.slane %v3995_v8, 5  ;;  %v4460_v22 = vld [vmem:[%s3894_s14 + $0x60] sm:$0xff] }
  0x87   : > { %v1324_v50 = vunpack.c.l.b16 %v1253_v36  ;;  %6504 = vst [vmem:[#allocation25_spill] sm:$0xff] %v4460_v22  ;;  %v1262_v36 = vrot.slane %v4003_v15, 5 }
  0x88   : > { %v1261_v17 = vrot.slane %v1259_v47, 4 }
  0x8a   : > { %v1263_v53 = vsel %vm4188_vm7, %v1261_v17, %v1262_v36 }
  0x8b   : > { %v1327_v15 = vunpack.c.l.b16 %v1263_v53  ;;  %v1266_v53 = vrot.slane %v4081_v3, 5 }
  0x8c   : > { %3493 = vmatmul.msk.bf16.gmra.mxu0 %vm813_vm4, %v4127_v40 }
  0x8e   : > { %3457 = vmatmul.msk.bf16.gmra.mxu2 %vm813_vm4, %v4300_v45 }
  0x93   : > { %3424 = vmatmul.msk.bf16.gmra.mxu1 %vm813_vm4, %v4308_v49 }
  0x96   : > { %3477 = vmatmul.msk.bf16.gmra.mxu3 %vm813_vm4, %v4308_v49 }
  0x9c   : > { %v4322_v14 = vpop.f32.mrf.mxu1  ;;  %3494 = vmatmul.msk.bf16.gmra.mxu0 %vm813_vm4, %v4219_v23 }
  0x9e   : > { %3458 = vmatmul.msk.bf16.gmra.mxu2 %vm813_vm4, %v4320_v19 }
  0xa3   : > { %3425 = vmatmul.msk.bf16.gmra.mxu1 %vm813_vm4, %v4330_v35 }
  0xa4   : > { %v4336_v27 = vpop.f32.mrf.mxu0  ;;  %v4338_v5 = vpop.f32.mrf.mxu1 }
  0xa6   : > { %v4344_v21 = vpop.f32.mrf.mxu3  ;;  %3478 = vmatmul.msk.bf16.gmra.mxu3 %vm813_vm4, %v4330_v35 }
  0xac   : > { %v4350_v44 = vpop.f32.mrf.mxu0  ;;  %v4352_v43 = vpop.f32.mrf.mxu1  ;;  %3495 = vmatmul.msk.bf16.gmra.mxu0 %vm813_vm4, %v4262_v25 }
  0xae   : > { %v4357_v46 = vpop.f32.mrf.mxu3  ;;  %3459 = vmatmul.msk.bf16.gmra.mxu2 %vm813_vm4, %v4348_v6 }
  0xb3   : > { %3426 = vmatmul.msk.bf16.gmra.mxu1 %vm813_vm4, %v4362_v11 }
  0xb4   : > { %v4368_v37 = vpop.f32.mrf.mxu0  ;;  %v4370_v59 = vpop.f32.mrf.mxu1 }
  0xb6   : > { %v4376_v33 = vpop.f32.mrf.mxu3  ;;  %3479 = vmatmul.msk.bf16.gmra.mxu3 %vm813_vm4, %v4362_v11 }
  0xbc   : > { %3496 = vmatmul.msk.bf16.gmra.mxu0 %vm813_vm4, %v3940_v56  ;;  %v4385_v61 = vpop.f32.mrf.mxu0  ;;  %v4387_v20 = vpop.f32.mrf.mxu1 }
  0xbe   : > { %v4389_v26 = vpop.f32.mrf.mxu3  ;;  %v4391_v13 = vpop.f32.mrf.mxu2  ;;  %3460 = vmatmul.msk.bf16.gmra.mxu2 %vm813_vm4, %v4380_v60 }
  0xc3   : > { %3427 = vmatmul.msk.bf16.gmra.mxu1 %vm813_vm4, %v4396_v29 }
  0xc4   : > { %v4408_v51 = vpop.f32.mrf.mxu1 }
  0xc6   : > { %v4406_v42 = vpop.f32.mrf.mxu0  ;;  %3480 = vmatmul.msk.bf16.gmra.mxu3 %vm813_vm4, %v4396_v29  ;;  %v4414_v38 = vpop.f32.mrf.mxu2 }
  0xc7   : > { %v4412_v16 = vpop.f32.mrf.mxu3 }
  0xcc   : > { %3497 = vmatmul.msk.bf16.gmra.mxu0 %vm813_vm4, %v3992_v2  ;;  %v4452_v2 = vpack.c.b16 %v1325_v0, %v1324_v50 }
  0xce   : > { %3461 = vmatmul.msk.bf16.gmra.mxu2 %vm813_vm4, %v4416_v34  ;;  %v4423_v41 = vpop.f32.mrf.mxu0  ;;  %6503 = vst [vmem:[#allocation24_spill] sm:$0xff] %v4452_v2 }
  0xcf   : > { %v4430_v10 = vpop.f32.mrf.mxu3 }
  0xd0   : > { %6501 = vst [vmem:[#allocation22_spill] sm:$0xff] %v4430_v10  ;;  %v4432_v31 = vpop.f32.mrf.mxu1 }
  0xd1   : > { %v4434_v57 = vpop.f32.mrf.mxu2 }
  0xd3   : > { %3428 = vmatmul.msk.bf16.gmra.mxu1 %vm813_vm4, %v4426_v55 }
  0xd6   : > { %3481 = vmatmul.msk.bf16.gmra.mxu3 %vm813_vm4, %v4426_v55 }
  0xd8   : > { %v4444_v1 = vpop.f32.mrf.mxu1 }
  0xd9   : > { %v4446_v39 = vpop.f32.mrf.mxu0  ;;  %v4448_v34 = vpop.f32.mrf.mxu2 }
  0xda   : > { %v4450_v10 = vpop.f32.mrf.mxu3 }
  0xdb   : > { %6502 = vst [vmem:[#allocation23_spill] sm:$0xff] %v4450_v10 }
  0xdc   : > { %3498 = vmatmul.msk.bf16.gmra.mxu0 %vm813_vm4, %v4083_v7 }
  0xde   : > { %3462 = vmatmul.msk.bf16.gmra.mxu2 %vm813_vm4, %v4452_v2  ;;  %v1260_v2 = vsel %vm4188_vm7, %v3446_v18, %v1259_v47 }
  0xdf   : > { %v1326_v7 = vunpack.c.l.b16 %v1260_v2 }
  0xe0   : > { %v1095_v4 = vpop.f32.mrf.mxu1 }
  0xe1   : > { %v4464_v60 = vpop.f32.mrf.mxu0  ;;  %v1096_v50 = vadd.f32 %v1095_v4, %v4336_v27  ;;  %v1416_v0 = vpop.f32.mrf.mxu2  ;;  %v3526_v27 = vld [vmem:[%s6378_s1 + $0xc] sm:$0x3]  ;;  %v4486_v2 = vpack.c.b16 %v1327_v15, %v1326_v7  ;;  %v3447_v7 = vrot.slane %v4076_v58, 9  ;;  %v1268_v15 = vrot.slane %v1266_v53, 4 }
  0xe2   : > { %v4467_v8 = vpop.f32.mrf.mxu3 }
  0xe3   : > { %6505 = vst [vmem:[#allocation26_spill] sm:$0xff] %v4467_v8  ;;  %v1496_v10 = vadd.f32 %v1416_v0, %v1096_v50  ;;  %3429 = vmatmul.msk.bf16.gmra.mxu1 %vm813_vm4, %v4460_v22  ;;  %v1969_v50 = vsel %vm862_vm0, %v3526_v27, 0  ;;  %v3547_v27 = vld [vmem:[%s6378_s1 + $0xe] sm:$0x3] }
  0xe4   : > { %1978 = vmatpush.bf16.msra.mxu2 %v1969_v50  ;;  %6507 = vst [vmem:[#allocation28_spill] sm:$0xff] %v4486_v2  ;;  %v4499_v50 = vld [vmem:[%s3894_s14 + $0x6c] sm:$0xff] }
  0xe5   : > { %6508 = vst [vmem:[#allocation29_spill] sm:$0xff] %v4499_v50 }
  0xe6   : > { %3482 = vmatmul.msk.bf16.gmra.mxu3 %vm813_vm4, %v4460_v22 }
  0xe8   : > { %v1097_v4 = vpop.f32.mrf.mxu1 }
  0xe9   : > { %v4481_v0 = vpop.f32.mrf.mxu0  ;;  %v1098_v47 = vadd.f32 %v1097_v4, %v4350_v44  ;;  %v1418_v18 = vpop.f32.mrf.mxu2  ;;  %v2125_v44 = vsel %vm862_vm0, %v3547_v27, 0  ;;  %v1269_v4 = vrot.slane %v4093_v24, 5  ;;  %v1267_v24 = vsel %vm4188_vm7, %v3447_v7, %v1266_v53  ;;  %v3565_v27 = vld [vmem:[%s6378_s1 + $0x10] sm:$0x3] }
  0xea   : > { %v4484_v17 = vpop.f32.mrf.mxu3  ;;  %2134 = vmatpush.bf16.msra.mxu3 %v2125_v44  ;;  %v1328_v44 = vunpack.c.l.b16 %v1267_v24 }
  0xeb   : > { %6506 = vst [vmem:[#allocation27_spill] sm:$0xff] %v4484_v17  ;;  %v1497_v36 = vadd.f32 %v1418_v18, %v1098_v47  ;;  %v1270_v58 = vsel %vm4188_vm7, %v1268_v15, %v1269_v4 }
  0xec   : > { %3499 = vmatmul.msk.bf16.gmra.mxu0 %vm813_vm4, %v4169_v62 }
  0xee   : > { %3463 = vmatmul.msk.bf16.gmra.mxu2 %vm813_vm4, %v4486_v2 }
  0xf0   : > { %v1100_v3 = vpop.f32.mrf.mxu1 }
  0xf1   : > { %v4502_v47 = vpop.f32.mrf.mxu0  ;;  %v1101_v18 = vadd.f32 %v1100_v3, %v4368_v37  ;;  %v1421_v62 = vpop.f32.mrf.mxu2  ;;  %v1329_v37 = vunpack.c.l.b16 %v1270_v58  ;;  %v2265_v3 = vsel %vm862_vm0, %v3565_v27, 0  ;;  %v3813_v58 = vld [vmem:[%s3894_s14 + $0x88] sm:$0xf] }
  0xf2   : > { %v4505_v17 = vpop.f32.mrf.mxu3  ;;  %2274 = vmatpush.bf16.msra.mxu0 %v2265_v3  ;;  %v3814_v3 = vld [vmem:[%s3894_s14 + $0x8c] sm:$0x1] }
  0xf3   : > { %6509 = vst [vmem:[#allocation30_spill] sm:$0xff] %v4505_v17  ;;  %v1498_v8 = vadd.f32 %v1421_v62, %v1101_v18  ;;  %3430 = vmatmul.msk.bf16.gmra.mxu1 %vm813_vm4, %v4499_v50  ;;  %v4520_v18 = vpack.c.b16 %v1329_v37, %v1328_v44  ;;  %v1273_v17 = vrot.slane %v3813_v58, 5 }
  0xf5   : > { %6510 = vst [vmem:[#allocation31_spill] sm:$0xff] %v4520_v18  ;;  %v1275_v44 = vrot.slane %v1273_v17, 4 }
  0xf6   : > { %3483 = vmatmul.msk.bf16.gmra.mxu3 %vm813_vm4, %v4499_v50  ;;  %v1276_v50 = vrot.slane %v3814_v3, 5 }
  0xf8   : > { %v1102_v62 = vpop.f32.mrf.mxu1 }
  0xf9   : > { %v1103_v53 = vadd.f32 %v1102_v62, %v4385_v61  ;;  %v1706_v7 = vpop.f32.mrf.mxu0  ;;  %v1423_v4 = vpop.f32.mrf.mxu2  ;;  %v4531_v61 = vld [vmem:[%s3894_s14 + $0x78] sm:$0xff]  ;;  %v3815_v62 = vld [vmem:[%s3894_s14 + $0x84] sm:$0xf] }
  0xfa   : > { %v1550_v15 = vpop.f32.mrf.mxu3  ;;  %v3448_v22 = vrot.slane %v3815_v62, 9 }
  0xfb   : > { %v1630_v2 = vadd.f32 %v1550_v15, %v1496_v10  ;;  %v1499_v24 = vadd.f32 %v1423_v4, %v1103_v53 }
  0xfc   : > { %3500 = vmatmul.msk.bf16.gmra.mxu0 %vm813_vm4, %v4058_v32 }
  0xfd   : > { %v4525_v27 = vadd.f32 %v1706_v7, %v1630_v2  ;;  %v1274_v2 = vsel %vm4188_vm7, %v3448_v22, %v1273_v17  ;;  %v1277_v7 = vsel %vm4188_vm7, %v1275_v44, %v1276_v50  ;;  %v3816_v44 = vld [vmem:[%s3894_s14 + $0x94] sm:$0xf] }
  0xfe   : > { %3464 = vmatmul.msk.bf16.gmra.mxu2 %vm813_vm4, %v4520_v18  ;;  %v1330_v62 = vunpack.c.l.b16 %v1274_v2  ;;  %v3817_v2 = vld [vmem:[%s3894_s14 + $0x98] sm:$0x1] }
 0x100   : > { %v1105_v37 = vpop.f32.mrf.mxu1 }
 0x101   : > { %v1106_v10 = vadd.f32 %v1105_v37, %v4406_v42  ;;  %v1708_v53 = vpop.f32.mrf.mxu0  ;;  %v1426_v4 = vpop.f32.mrf.mxu2  ;;  %v1331_v42 = vunpack.c.l.b16 %v1277_v7  ;;  %v1283_v7 = vrot.slane %v3817_v2, 5 }
 0x102   : > { %v1552_v15 = vpop.f32.mrf.mxu3 }
 0x103   : > { %v1631_v58 = vadd.f32 %v1552_v15, %v1497_v36  ;;  %v1500_v32 = vadd.f32 %v1426_v4, %v1106_v10  ;;  %3431 = vmatmul.msk.bf16.gmra.mxu1 %vm813_vm4, %v4531_v61  ;;  %v4546_v22 = vpack.c.b16 %v1331_v42, %v1330_v62 }
 0x105   : > { %v4541_v3 = vadd.f32 %v1708_v53, %v1631_v58  ;;  %6511 = vst [vmem:[#allocation32_spill] sm:$0xff] %v4546_v22  ;;  %v1280_v53 = vrot.slane %v3816_v44, 5 }
 0x106   : > { %3484 = vmatmul.msk.bf16.gmra.mxu3 %vm813_vm4, %v4531_v61 }
 0x107   : > { %v1282_v62 = vrot.slane %v1280_v53, 4 }
 0x108   : > { %v1107_v36 = vpop.f32.mrf.mxu1 }
 0x109   : > { %v1108_v37 = vadd.f32 %v1107_v36, %v4423_v41  ;;  %v1711_v10 = vpop.f32.mrf.mxu0  ;;  %v1428_v4 = vpop.f32.mrf.mxu2  ;;  %v4557_v41 = vld [vmem:[%s3894_s14 + $0x84] sm:$0xff]  ;;  %v3818_v36 = vld [vmem:[%s3894_s14 + $0x90] sm:$0xf] }
 0x10a   : > { %v1555_v15 = vpop.f32.mrf.mxu3  ;;  %v3449_v18 = vrot.slane %v3818_v36, 9 }
 0x10b   : > { %v1632_v17 = vadd.f32 %v1555_v15, %v1498_v8  ;;  %v1501_v50 = vadd.f32 %v1428_v4, %v1108_v37 }
 0x10c   : > { %3501 = vmatmul.msk.bf16.gmra.mxu0 %vm813_vm4, %v4146_v12 }
 0x10d   : > { %v4551_v58 = vadd.f32 %v1711_v10, %v1632_v17  ;;  %v1281_v10 = vsel %vm4188_vm7, %v3449_v18, %v1280_v53  ;;  %v1284_v17 = vsel %vm4188_vm7, %v1282_v62, %v1283_v7  ;;  %v1287_v7 = vrot.slane %v4040_v9, 5  ;;  %v6513_v62 = vld [vmem:[#allocation2_spill] sm:$0xff] }
 0x10e   : > { %3465 = vmatmul.msk.bf16.gmra.mxu2 %vm813_vm4, %v4546_v22  ;;  %v1332_v36 = vunpack.c.l.b16 %v1281_v10  ;;  %v1333_v22 = vunpack.c.l.b16 %v1284_v17  ;;  %v6516_v17 = vld [vmem:[#allocation5_spill] sm:$0xff] }
 0x110   : > { %v1110_v42 = vpop.f32.mrf.mxu1 }
 0x111   : > { %v1111_v8 = vadd.f32 %v1110_v42, %v4446_v39  ;;  %v1713_v37 = vpop.f32.mrf.mxu0  ;;  %v1431_v4 = vpop.f32.mrf.mxu2 }
 0x112   : > { %v1557_v15 = vpop.f32.mrf.mxu3 }
 0x113   : > { %v1633_v44 = vadd.f32 %v1557_v15, %v1499_v24  ;;  %v1502_v12 = vadd.f32 %v1431_v4, %v1111_v8  ;;  %3432 = vmatmul.msk.bf16.gmra.mxu1 %vm813_vm4, %v4557_v41  ;;  %v4572_v15 = vpack.c.b16 %v1333_v22, %v1332_v36  ;;  %v1289_v22 = vrot.slane %v1287_v7, 4 }
 0x115   : > { %v4567_v2 = vadd.f32 %v1713_v37, %v1633_v44  ;;  %6512 = vst [vmem:[#allocation33_spill] sm:$0xff] %v4572_v15  ;;  %v6515_v44 = vld [vmem:[#allocation6_spill] sm:$0xff] }
 0x116   : > { %3485 = vmatmul.msk.bf16.gmra.mxu3 %vm813_vm4, %v4557_v41  ;;  %v1290_v10 = vrot.slane %v6515_v44, 5 }
 0x118   : > { %v1112_v39 = vpop.f32.mrf.mxu1 }
 0x119   : > { %v1113_v24 = vadd.f32 %v1112_v39, %v4464_v60  ;;  %v1716_v42 = vpop.f32.mrf.mxu0  ;;  %v1433_v8 = vpop.f32.mrf.mxu2  ;;  %v4583_v60 = vld [vmem:[%s3894_s14 + $0x90] sm:$0xff]  ;;  %v3450_v39 = vrot.slane %v6516_v17, 9 }
 0x11a   : > { %v1560_v4 = vpop.f32.mrf.mxu3 }
 0x11b   : > { %v1634_v18 = vadd.f32 %v1560_v4, %v1500_v32  ;;  %v1503_v53 = vadd.f32 %v1433_v8, %v1113_v24 }
 0x11c   : > { %3502 = vmatmul.msk.bf16.gmra.mxu0 %vm813_vm4, %v6513_v62 }
 0x11d   : > { %v4577_v37 = vadd.f32 %v1716_v42, %v1634_v18  ;;  %v1288_v42 = vsel %vm4188_vm7, %v3450_v39, %v1287_v7  ;;  %v1291_v18 = vsel %vm4188_vm7, %v1289_v22, %v1290_v10  ;;  %v6519_v22 = vld [vmem:[#allocation4_spill] sm:$0xff] }
 0x11e   : > { %3466 = vmatmul.msk.bf16.gmra.mxu2 %vm813_vm4, %v4572_v15  ;;  %v1334_v17 = vunpack.c.l.b16 %v1288_v42  ;;  %v1335_v15 = vunpack.c.l.b16 %v1291_v18  ;;  %v6522_v18 = vld [vmem:[#allocation10_spill] sm:$0xff] }
 0x11f   : > { %6514 = vst [vmem:[#allocation34_spill] sm:$0xff] %v4577_v37  ;;  %v6518_v37 = vld [vmem:[#allocation11_spill] sm:$0xff] }
 0x120   : > { %v1115_v36 = vpop.f32.mrf.mxu1  ;;  %v1294_v10 = vrot.slane %v6518_v37, 5 }
 0x121   : > { %v1116_v32 = vadd.f32 %v1115_v36, %v4481_v0  ;;  %v1718_v24 = vpop.f32.mrf.mxu0  ;;  %v1436_v9 = vpop.f32.mrf.mxu2 }
 0x122   : > { %v1562_v8 = vpop.f32.mrf.mxu3 }
 0x123   : > { %v1635_v4 = vadd.f32 %v1562_v8, %v1501_v50  ;;  %v1504_v62 = vadd.f32 %v1436_v9, %v1116_v32  ;;  %3433 = vmatmul.msk.bf16.gmra.mxu1 %vm813_vm4, %v4583_v60  ;;  %v4598_v8 = vpack.c.b16 %v1335_v15, %v1334_v17  ;;  %v1296_v15 = vrot.slane %v1294_v10, 4 }
 0x125   : > { %v4593_v44 = vadd.f32 %v1718_v24, %v1635_v4  ;;  %6517 = vst [vmem:[#allocation6_spill] sm:$0xff] %v4598_v8  ;;  %v6521_v4 = vld [vmem:[#allocation12_spill] sm:$0xff] }
 0x126   : > { %3486 = vmatmul.msk.bf16.gmra.mxu3 %vm813_vm4, %v4583_v60  ;;  %v1297_v42 = vrot.slane %v6521_v4, 5 }
 0x128   : > { %v1117_v0 = vpop.f32.mrf.mxu1 }
 0x129   : > { %v1118_v50 = vadd.f32 %v1117_v0, %v4502_v47  ;;  %v1721_v36 = vpop.f32.mrf.mxu0  ;;  %v1438_v32 = vpop.f32.mrf.mxu2  ;;  %v4609_v47 = vld [vmem:[%s3894_s14 + $0x9c] sm:$0xff]  ;;  %v3451_v0 = vrot.slane %v6522_v18, 9 }
 0x12a   : > { %v1565_v9 = vpop.f32.mrf.mxu3 }
 0x12b   : > { %v1636_v7 = vadd.f32 %v1565_v9, %v1502_v12  ;;  %v1505_v39 = vadd.f32 %v1438_v32, %v1118_v50 }
 0x12c   : > { %3503 = vmatmul.msk.bf16.gmra.mxu0 %vm813_vm4, %v6519_v22 }
 0x12d   : > { %v4603_v24 = vadd.f32 %v1721_v36, %v1636_v7  ;;  %v1295_v36 = vsel %vm4188_vm7, %v3451_v0, %v1294_v10  ;;  %v1298_v7 = vsel %vm4188_vm7, %v1296_v15, %v1297_v42  ;;  %v6525_v15 = vld [vmem:[#allocation9_spill] sm:$0xff] }
 0x12e   : > { %3467 = vmatmul.msk.bf16.gmra.mxu2 %vm813_vm4, %v4598_v8  ;;  %v1336_v18 = vunpack.c.l.b16 %v1295_v36  ;;  %v1337_v8 = vunpack.c.l.b16 %v1298_v7  ;;  %v6527_v7 = vld [vmem:[#allocation15_spill] sm:$0xff] }
 0x12f   : > { %6520 = vst [vmem:[#allocation5_spill] sm:$0xff] %v4603_v24  ;;  %v6524_v24 = vld [vmem:[#allocation16_spill] sm:$0xff] }
 0x130   : > { %v1120_v17 = vpop.f32.mrf.mxu1  ;;  %v1301_v42 = vrot.slane %v6524_v24, 5 }
 0x131   : > { %v1121_v12 = vadd.f32 %v1120_v17, %v4322_v14  ;;  %v1723_v50 = vpop.f32.mrf.mxu0  ;;  %v1441_v37 = vpop.f32.mrf.mxu2 }
 0x132   : > { %v1567_v32 = vpop.f32.mrf.mxu3 }
 0x133   : > { %v1637_v9 = vadd.f32 %v1567_v32, %v1503_v53  ;;  %v1506_v22 = vadd.f32 %v1441_v37, %v1121_v12  ;;  %3434 = vmatmul.msk.bf16.gmra.mxu1 %vm813_vm4, %v4609_v47  ;;  %v4624_v32 = vpack.c.b16 %v1337_v8, %v1336_v18  ;;  %v1303_v8 = vrot.slane %v1301_v42, 4 }
 0x135   : > { %v4619_v4 = vadd.f32 %v1723_v50, %v1637_v9  ;;  %6523 = vst [vmem:[#allocation11_spill] sm:$0xff] %v4624_v32  ;;  %v6526_v9 = vld [vmem:[#allocation19_spill] sm:$0xff] }
 0x136   : > { %3487 = vmatmul.msk.bf16.gmra.mxu3 %vm813_vm4, %v4609_v47  ;;  %v1304_v36 = vrot.slane %v6526_v9, 5 }
 0x138   : > { %v1122_v14 = vpop.f32.mrf.mxu1 }
 0x139   : > { %v1123_v53 = vadd.f32 %v1122_v14, %v4338_v5  ;;  %v1726_v17 = vpop.f32.mrf.mxu0  ;;  %v1443_v12 = vpop.f32.mrf.mxu2  ;;  %v4635_v5 = vld [vmem:[%s3894_s14 + $0xa8] sm:$0xff]  ;;  %v3452_v14 = vrot.slane %v6527_v7, 9 }
 0x13a   : > { %v1570_v37 = vpop.f32.mrf.mxu3 }
 0x13b   : > { %v1638_v10 = vadd.f32 %v1570_v37, %v1504_v62  ;;  %v1507_v0 = vadd.f32 %v1443_v12, %v1123_v53 }
 0x13c   : > { %3504 = vmatmul.msk.bf16.gmra.mxu0 %vm813_vm4, %v6525_v15 }
 0x13d   : > { %v4629_v50 = vadd.f32 %v1726_v17, %v1638_v10  ;;  %v1302_v17 = vsel %vm4188_vm7, %v3452_v14, %v1301_v42  ;;  %v1305_v10 = vsel %vm4188_vm7, %v1303_v8, %v1304_v36 }
 0x13e   : > { %3468 = vmatmul.msk.bf16.gmra.mxu2 %vm813_vm4, %v4624_v32  ;;  %v1338_v7 = vunpack.c.l.b16 %v1302_v17  ;;  %v1339_v32 = vunpack.c.l.b16 %v1305_v10  ;;  %v4665_v17 = vld [vmem:[%s3894_s14 + $0xc4] sm:$0xf] }
 0x13f   : > { %6533 = vst [vmem:[#allocation15_spill] sm:$0xff] %v4665_v17 }
 0x140   : > { %v1125_v18 = vpop.f32.mrf.mxu1  ;;  %v4653_v8 = vpack.c.b16 %v1339_v32, %v1338_v7 }
 0x141   : > { %v1126_v62 = vadd.f32 %v1125_v18, %v4352_v43  ;;  %v1728_v53 = vpop.f32.mrf.mxu0  ;;  %v1446_v24 = vpop.f32.mrf.mxu2  ;;  %v3663_v43 = vld [vmem:[%s6381_s4 + $0x8] sm:$0xff] }
 0x142   : > { %v1572_v12 = vpop.f32.mrf.mxu3  ;;  %2416 = vmatpush.bf16.msrb.mxu1 %v3663_v43  ;;  %6529 = vst [vmem:[#allocation10_spill] sm:$0xff] %v4653_v8 }
 0x143   : > { %v1639_v37 = vadd.f32 %v1572_v12, %v1505_v39  ;;  %v1508_v15 = vadd.f32 %v1446_v24, %v1126_v62  ;;  %3435 = vmatmul.msk.bf16.gmra.mxu1 %vm813_vm4, %v4635_v5  ;;  %v6530_v24 = vld [vmem:[#allocation17_spill] sm:$0xff] }
 0x145   : > { %v4645_v9 = vadd.f32 %v1728_v53, %v1639_v37  ;;  %v4660_v37 = vld [vmem:[%s3894_s14 + $0xc0] sm:$0xf] }
 0x146   : > { %3488 = vmatmul.msk.bf16.gmra.mxu3 %vm813_vm4, %v4635_v5  ;;  %6532 = vst [vmem:[#allocation19_spill] sm:$0xff] %v4660_v37  ;;  %v1663_v32 = vshrl.u32 %v4660_v37, 16 }
 0x147   : > { %6528 = vst [vmem:[#allocation12_spill] sm:$0xff] %v4645_v9 }
 0x148   : > { %v1127_v39 = vpop.f32.mrf.mxu1  ;;  %v1665_v63 = vrot.slane %v1663_v32, 4 }
 0x149   : > { %v1128_v42 = vadd.f32 %v1127_v39, %v4370_v59  ;;  %v1731_v14 = vpop.f32.mrf.mxu0  ;;  %v1448_v18 = vpop.f32.mrf.mxu2  ;;  %v4668_v59 = vld [vmem:[%s3894_s14 + $0xb4] sm:$0xff]  ;;  %v1666_v39 = vshll.u32 %v4660_v37, 16 }
 0x14a   : > { %v1575_v36 = vpop.f32.mrf.mxu3 }
 0x14b   : > { %v1640_v62 = vadd.f32 %v1575_v36, %v1506_v22  ;;  %v1509_v53 = vadd.f32 %v1448_v18, %v1128_v42  ;;  %v1672_v42 = vshll.u32 %v4665_v17, 16 }
 0x14c   : > { %3505 = vmatmul.msk.bf16.gmra.mxu0 %vm813_vm4, %v6530_v24  ;;  %v1668_v24 = vrot.slane %v1666_v39, 5 }
 0x14d   : > { %v4657_v12 = vadd.f32 %v1731_v14, %v1640_v62  ;;  %v1676_v14 = vshrl.u32 %v4665_v17, 16 }
 0x14e   : > { %3469 = vmatmul.msk.bf16.gmra.mxu2 %vm813_vm4, %v4653_v8 }
 0x14f   : > { %6531 = vst [vmem:[#allocation16_spill] sm:$0xff] %v4657_v12  ;;  %v1674_v12 = vrot.slane %v1672_v42, 5 }
 0x150   : > { %v1130_v10 = vpop.f32.mrf.mxu1 }
 0x151   : > { %v1131_v22 = vadd.f32 %v1130_v10, %v4387_v20  ;;  %v1733_v7 = vpop.f32.mrf.mxu0  ;;  %v1451_v43 = vpop.f32.mrf.mxu2  ;;  %v1678_v20 = vrot.slane %v1676_v14, 4  ;;  %v4680_v10 = vld [vmem:[%s3894_s14 + $0xc8] sm:$0x1] }
 0x152   : > { %v1577_v18 = vpop.f32.mrf.mxu3 }
 0x153   : > { %v1641_v36 = vadd.f32 %v1577_v18, %v1507_v0  ;;  %v1510_v62 = vadd.f32 %v1451_v43, %v1131_v22  ;;  %3436 = vmatmul.msk.bf16.gmra.mxu1 %vm813_vm4, %v4668_v59  ;;  %v1669_v22 = vor.u32 %v1668_v24, %v1665_v63  ;;  %v1679_v43 = vor.u32 %v1678_v20, %v1674_v12 }
 0x154   : > { %v1682_v18 = vshll.u32 %v4680_v10, 16 }
 0x155   : > { %v4677_v8 = vadd.f32 %v1733_v7, %v1641_v36  ;;  %v1670_v42 = vrot.slane %v1669_v22, 4  ;;  %v1680_v14 = vrot.slane %v1679_v43, 4  ;;  %v4698_v22 = vld [vmem:[%s3894_s14 + $0xc0] sm:$0xff] }
 0x156   : > { %3489 = vmatmul.msk.bf16.gmra.mxu3 %vm813_vm4, %v4668_v59 }
 0x157   : > { %6534 = vst [vmem:[#allocation35_spill] sm:$0xff] %v4677_v8  ;;  %v1684_v8 = vrot.slane %v1682_v18, 5 }
 0x158   : > { %v1132_v37 = vpop.f32.mrf.mxu1 }
 0x159   : > { %v1133_v17 = vadd.f32 %v1132_v37, %v4408_v51  ;;  %v1736_v9 = vpop.f32.mrf.mxu0  ;;  %v1453_v0 = vpop.f32.mrf.mxu2 }
 0x15a   : > { %v1580_v32 = vpop.f32.mrf.mxu3 }
 0x15b   : > { %v1642_v7 = vadd.f32 %v1580_v32, %v1508_v15  ;;  %v1511_v36 = vadd.f32 %v1453_v0, %v1133_v17  ;;  %v1675_v15 = vsel %vm3921_vm3, %v1670_v42, %v1674_v12  ;;  %v1685_v17 = vsel %vm3921_vm3, %v1680_v14, %v1684_v8 }
 0x15c   : > { %3506 = vmatmul.msk.bf16.gmra.mxu0 %vm813_vm4, %v4256_v54  ;;  %v1689_v43 = vunpack.c.l.b16 %v1685_v17 }
 0x15d   : > { %v4688_v39 = vadd.f32 %v1736_v9, %v1642_v7 }
 0x15e   : > { %3531 = vmatmul.msk.bf16.vlgmr.msra.gmra.mxu2 %vm813_vm4, %v4288_v28  ;;  %v1688_v28 = vunpack.c.l.b16 %v1675_v15 }
 0x160   : > { %v1135_v51 = vpop.f32.mrf.mxu1  ;;  %v4706_v12 = vpack.c.b16 %v1689_v43, %v1688_v28 }
 0x161   : > { %v1136_v63 = vadd.f32 %v1135_v51, %v4432_v31  ;;  %v1738_v24 = vpop.f32.mrf.mxu0  ;;  %v1456_v37 = vpop.f32.mrf.mxu2 }
 0x162   : > { %v1582_v20 = vpop.f32.mrf.mxu3 }
 0x163   : > { %v1643_v9 = vadd.f32 %v1582_v20, %v1509_v53  ;;  %v1512_v0 = vadd.f32 %v1456_v37, %v1136_v63  ;;  %3510 = vmatmul.msk.bf16.vlgmr.msra.gmra.mxu1 %vm813_vm4, %v4264_v52 }
 0x165   : > { %v4702_v18 = vadd.f32 %v1738_v24, %v1643_v9 }
 0x166   : > { %3490 = vmatmul.msk.bf16.gmra.mxu3 %vm813_vm4, %v4698_v22 }
 0x168   : > { %v1137_v31 = vpop.f32.mrf.mxu1 }
 0x169   : > { %v1138_v8 = vadd.f32 %v1137_v31, %v4444_v1  ;;  %v1741_v32 = vpop.f32.mrf.mxu0  ;;  %v1458_v53 = vpop.f32.mrf.mxu2 }
 0x16a   : > { %v1585_v7 = vpop.f32.mrf.mxu3 }
 0x16b   : > { %v1644_v42 = vadd.f32 %v1585_v7, %v1510_v62  ;;  %v1513_v14 = vadd.f32 %v1458_v53, %v1138_v8 }
 0x16c   : > { %3507 = vmatmul.msk.bf16.gmra.mxu0 %vm813_vm4, %v4706_v12 }
 0x16d   : > { %v4711_v52 = vadd.f32 %v1741_v32, %v1644_v42 }
 0x16e   : > { %3532 = vmatmul.msk.bf16.gmra.mxu2 %vm813_vm4, %v4308_v49 }
 0x170   : > { %v1140_v51 = vpop.f32.mrf.mxu1 }
 0x171   : > { %v1141_v63 = vadd.f32 %v1140_v51, %v4391_v13  ;;  %v1743_v24 = vpop.f32.mrf.mxu0  ;;  %v1461_v37 = vpop.f32.mrf.mxu2 }
 0x172   : > { %v1587_v15 = vpop.f32.mrf.mxu3 }
 0x173   : > { %v1645_v1 = vadd.f32 %v1587_v15, %v1511_v36  ;;  %v1514_v17 = vadd.f32 %v1461_v37, %v1141_v63  ;;  %3511 = vmatmul.msk.bf16.gmra.mxu1 %vm813_vm4, %v4280_v48 }
 0x175   : > { %v4718_v62 = vadd.f32 %v1743_v24, %v1645_v1 }
 0x176   : > { %3548 = vmatmul.msk.bf16.vlgmr.msra.gmra.mxu3 %vm813_vm4, %v4127_v40 }
 0x178   : > { %v1142_v20 = vpop.f32.mrf.mxu1 }
 0x179   : > { %v1143_v9 = vadd.f32 %v1142_v20, %v4414_v38  ;;  %v1746_v49 = vpop.f32.mrf.mxu0  ;;  %v1463_v28 = vpop.f32.mrf.mxu2 }
 0x17a   : > { %v1590_v43 = vpop.f32.mrf.mxu3 }
 0x17b   : > { %v1646_v13 = vadd.f32 %v1590_v43, %v1512_v0  ;;  %v1515_v31 = vadd.f32 %v1463_v28, %v1143_v9 }
 0x17c   : > { %3566 = vmatmul.msk.bf16.vlgmr.msra.gmra.mxu0 %vm813_vm4, %v4280_v48 }
 0x17d   : > { %v4725_v36 = vadd.f32 %v1746_v49, %v1646_v13 }
 0x17e   : > { %3533 = vmatmul.msk.bf16.gmra.mxu2 %vm813_vm4, %v4330_v35 }
 0x180   : > { %v1145_v8 = vpop.f32.mrf.mxu1 }
 0x181   : > { %v1146_v32 = vadd.f32 %v1145_v8, %v4434_v57  ;;  %v1748_v40 = vpop.f32.mrf.mxu0  ;;  %v1466_v53 = vpop.f32.mrf.mxu2 }
 0x182   : > { %v1592_v7 = vpop.f32.mrf.mxu3 }
 0x183   : > { %v1647_v38 = vadd.f32 %v1592_v7, %v1513_v14  ;;  %v1516_v42 = vadd.f32 %v1466_v53, %v1146_v32  ;;  %3512 = vmatmul.msk.bf16.gmra.mxu1 %vm813_vm4, %v4300_v45 }
 0x185   : > { %v4732_v0 = vadd.f32 %v1748_v40, %v1647_v38 }
 0x186   : > { %3549 = vmatmul.msk.bf16.gmra.mxu3 %vm813_vm4, %v4219_v23 }
 0x188   : > { %v1147_v48 = vpop.f32.mrf.mxu1 }
 0x189   : > { %v1148_v51 = vadd.f32 %v1147_v48, %v4448_v34  ;;  %v1751_v35 = vpop.f32.mrf.mxu0  ;;  %v1468_v63 = vpop.f32.mrf.mxu2 }
 0x18a   : > { %v1595_v24 = vpop.f32.mrf.mxu3 }
 0x18b   : > { %v1648_v57 = vadd.f32 %v1595_v24, %v1514_v17  ;;  %v1517_v37 = vadd.f32 %v1468_v63, %v1148_v51 }
 0x18c   : > { %3567 = vmatmul.msk.bf16.gmra.mxu0 %vm813_vm4, %v4300_v45 }
 0x18d   : > { %v4739_v14 = vadd.f32 %v1751_v35, %v1648_v57 }
 0x18e   : > { %3534 = vmatmul.msk.bf16.gmra.mxu2 %vm813_vm4, %v4362_v11 }
 0x190   : > { %v1150_v15 = vpop.f32.mrf.mxu1 }
 0x191   : > { %v1151_v1 = vadd.f32 %v1150_v15, %v4344_v21  ;;  %v1753_v23 = vpop.f32.mrf.mxu0  ;;  %v1471_v20 = vpop.f32.mrf.mxu2 }
 0x192   : > { %v1597_v9 = vpop.f32.mrf.mxu3 }
 0x193   : > { %v1649_v34 = vadd.f32 %v1597_v9, %v1515_v31  ;;  %v1518_v49 = vadd.f32 %v1471_v20, %v1151_v1  ;;  %3513 = vmatmul.msk.bf16.gmra.mxu1 %vm813_vm4, %v4320_v19  ;;  %v6535_v20 = vld [vmem:[#allocation20_spill] sm:$0xff] }
 0x195   : > { %v4746_v17 = vadd.f32 %v1753_v23, %v1649_v34  ;;  %v6536_v34 = vld [vmem:[#allocation3_spill] sm:$0xff] }
 0x196   : > { %3550 = vmatmul.msk.bf16.gmra.mxu3 %vm813_vm4, %v4262_v25 }
 0x198   : > { %v1152_v45 = vpop.f32.mrf.mxu1 }
 0x199   : > { %v1153_v28 = vadd.f32 %v1152_v45, %v4357_v46  ;;  %v1756_v11 = vpop.f32.mrf.mxu0  ;;  %v1473_v43 = vpop.f32.mrf.mxu2 }
 0x19a   : > { %v1600_v13 = vpop.f32.mrf.mxu3 }
 0x19b   : > { %v1650_v21 = vadd.f32 %v1600_v13, %v1516_v42  ;;  %v1519_v8 = vadd.f32 %v1473_v43, %v1153_v28 }
 0x19c   : > { %3568 = vmatmul.msk.bf16.gmra.mxu0 %vm813_vm4, %v4320_v19 }
 0x19d   : > { %v4753_v31 = vadd.f32 %v1756_v11, %v1650_v21  ;;  %v6538_v21 = vld [vmem:[#allocation25_spill] sm:$0xff] }
 0x19e   : > { %3535 = vmatmul.msk.bf16.gmra.mxu2 %vm813_vm4, %v4396_v29 }
 0x1a0   : > { %v1155_v32 = vpop.f32.mrf.mxu1 }
 0x1a1   : > { %v1156_v40 = vadd.f32 %v1155_v32, %v4376_v33  ;;  %v1758_v25 = vpop.f32.mrf.mxu0  ;;  %v1476_v53 = vpop.f32.mrf.mxu2  ;;  %v6539_v32 = vld [vmem:[#allocation23_spill] sm:$0xff] }
 0x1a2   : > { %v1602_v7 = vpop.f32.mrf.mxu3 }
 0x1a3   : > { %v1651_v46 = vadd.f32 %v1602_v7, %v1517_v37  ;;  %v1520_v38 = vadd.f32 %v1476_v53, %v1156_v40  ;;  %3514 = vmatmul.msk.bf16.gmra.mxu1 %vm813_vm4, %v4348_v6 }
 0x1a5   : > { %v4760_v42 = vadd.f32 %v1758_v25, %v1651_v46 }
 0x1a6   : > { %3551 = vmatmul.msk.bf16.gmra.mxu3 %vm813_vm4, %v3940_v56 }
 0x1a8   : > { %v1157_v19 = vpop.f32.mrf.mxu1 }
 0x1a9   : > { %v1158_v48 = vadd.f32 %v1157_v19, %v4389_v26  ;;  %v1761_v29 = vpop.f32.mrf.mxu0  ;;  %v1478_v51 = vpop.f32.mrf.mxu2 }
 0x1aa   : > { %v1605_v35 = vpop.f32.mrf.mxu3 }
 0x1ab   : > { %v1652_v33 = vadd.f32 %v1605_v35, %v1518_v49  ;;  %v1521_v63 = vadd.f32 %v1478_v51, %v1158_v48  ;;  %v6537_v49 = vld [vmem:[#allocation22_spill] sm:$0xff]  ;;  %v6540_v48 = vld [vmem:[#allocation21_spill] sm:$0xff] }
 0x1ac   : > { %3569 = vmatmul.msk.bf16.gmra.mxu0 %vm813_vm4, %v4348_v6  ;;  %v3662_v51 = vld [vmem:[%s6381_s4] sm:$0xff] }
 0x1ad   : > { %v4767_v24 = vadd.f32 %v1761_v29, %v1652_v33  ;;  %v6541_v29 = vld [vmem:[#allocation8_spill] sm:$0xff]  ;;  %v6542_v33 = vld [vmem:[#allocation26_spill] sm:$0xff]  ;;  %2417 = vmatpush.bf16.msrb.mxu1 %v3662_v51 }
 0x1ae   : > { %3536 = vmatmul.msk.bf16.gmra.mxu2 %vm813_vm4, %v4426_v55 }
 0x1b0   : > { %v1160_v57 = vpop.f32.mrf.mxu1 }
 0x1b1   : > { %v1161_v37 = vadd.f32 %v1160_v57, %v4412_v16  ;;  %v1763_v56 = vpop.f32.mrf.mxu0  ;;  %v1481_v15 = vpop.f32.mrf.mxu2 }
 0x1b2   : > { %v1607_v1 = vpop.f32.mrf.mxu3 }
 0x1b3   : > { %v1653_v26 = vadd.f32 %v1607_v1, %v1519_v8  ;;  %v1522_v23 = vadd.f32 %v1481_v15, %v1161_v37  ;;  %3515 = vmatmul.msk.bf16.gmra.mxu1 %vm813_vm4, %v6535_v20 }
 0x1b5   : > { %v4774_v9 = vadd.f32 %v1763_v56, %v1653_v26 }
 0x1b6   : > { %3552 = vmatmul.msk.bf16.gmra.mxu3 %vm813_vm4, %v6536_v34 }
 0x1b8   : > { %v1162_v6 = vpop.f32.mrf.mxu1 }
 0x1b9   : > { %v1163_v45 = vadd.f32 %v1162_v6, %v6537_v49  ;;  %v1766_v55 = vpop.f32.mrf.mxu0  ;;  %v1483_v28 = vpop.f32.mrf.mxu2  ;;  %v6544_v6 = vld [vmem:[#allocation27_spill] sm:$0xff] }
 0x1ba   : > { %v1610_v11 = vpop.f32.mrf.mxu3 }
 0x1bb   : > { %v1654_v16 = vadd.f32 %v1610_v11, %v1520_v38  ;;  %v1523_v43 = vadd.f32 %v1483_v28, %v1163_v45 }
 0x1bc   : > { %3570 = vmatmul.msk.bf16.gmra.mxu0 %vm813_vm4, %v6535_v20  ;;  %v6543_v20 = vld [vmem:[#allocation29_spill] sm:$0xff] }
 0x1bd   : > { %v4781_v13 = vadd.f32 %v1766_v55, %v1654_v16 }
 0x1be   : > { %3537 = vmatmul.msk.bf16.gmra.mxu2 %vm813_vm4, %v6538_v21  ;;  %v6545_v21 = vld [vmem:[#allocation24_spill] sm:$0xff] }
 0x1c0   : > { %v1165_v8 = vpop.f32.mrf.mxu1 }
 0x1c1   : > { %v1166_v40 = vadd.f32 %v1165_v8, %v6539_v32  ;;  %v1768_v25 = vpop.f32.mrf.mxu0  ;;  %v1486_v53 = vpop.f32.mrf.mxu2  ;;  %v6546_v8 = vld [vmem:[#allocation14_spill] sm:$0xff] }
 0x1c2   : > { %v1612_v7 = vpop.f32.mrf.mxu3 }
 0x1c3   : > { %v1655_v46 = vadd.f32 %v1612_v7, %v1521_v63  ;;  %v1524_v19 = vadd.f32 %v1486_v53, %v1166_v40  ;;  %3516 = vmatmul.msk.bf16.gmra.mxu1 %vm813_vm4, %v6540_v48  ;;  %v6547_v40 = vld [vmem:[#allocation30_spill] sm:$0xff] }
 0x1c5   : > { %v4788_v38 = vadd.f32 %v1768_v25, %v1655_v46 }
 0x1c6   : > { %3553 = vmatmul.msk.bf16.gmra.mxu3 %vm813_vm4, %v6541_v29 }
 0x1c8   : > { %v1167_v35 = vpop.f32.mrf.mxu1 }
 0x1c9   : > { %v1168_v57 = vadd.f32 %v1167_v35, %v6542_v33  ;;  %v1771_v37 = vpop.f32.mrf.mxu0  ;;  %v1488_v56 = vpop.f32.mrf.mxu2 }
 0x1ca   : > { %v1615_v63 = vpop.f32.mrf.mxu3 }
 0x1cb   : > { %v1656_v15 = vadd.f32 %v1615_v63, %v1522_v23  ;;  %v1525_v1 = vadd.f32 %v1488_v56, %v1168_v57 }
 0x1cc   : > { %3571 = vmatmul.msk.bf16.gmra.mxu0 %vm813_vm4, %v6540_v48 }
 0x1cd   : > { %v4798_v26 = vadd.f32 %v1771_v37, %v1656_v15  ;;  %v6548_v15 = vld [vmem:[#allocation28_spill] sm:$0xff] }
 0x1ce   : > { %3538 = vmatmul.msk.bf16.gmra.mxu2 %vm813_vm4, %v6543_v20  ;;  %v6549_v20 = vld [vmem:[#allocation7_spill] sm:$0xff] }
 0x1d0   : > { %v1170_v34 = vpop.f32.mrf.mxu1 }
 0x1d1   : > { %v1171_v49 = vadd.f32 %v1170_v34, %v6544_v6  ;;  %v1773_v45 = vpop.f32.mrf.mxu0  ;;  %v1491_v55 = vpop.f32.mrf.mxu2 }
 0x1d2   : > { %v1617_v28 = vpop.f32.mrf.mxu3 }
 0x1d3   : > { %v1657_v11 = vadd.f32 %v1617_v28, %v1523_v43  ;;  %v1526_v16 = vadd.f32 %v1491_v55, %v1171_v49  ;;  %3517 = vmatmul.msk.bf16.gmra.mxu1 %vm813_vm4, %v6545_v21 }
 0x1d5   : > { %v4805_v23 = vadd.f32 %v1773_v45, %v1657_v11 }
 0x1d6   : > { %3554 = vmatmul.msk.bf16.gmra.mxu3 %vm813_vm4, %v6546_v8 }
 0x1d8   : > { %v1172_v32 = vpop.f32.mrf.mxu1 }
 0x1d9   : > { %v1173_v25 = vadd.f32 %v1172_v32, %v6547_v40  ;;  %v1776_v53 = vpop.f32.mrf.mxu0  ;;  %v1493_v7 = vpop.f32.mrf.mxu2 }
 0x1da   : > { %v1620_v46 = vpop.f32.mrf.mxu3 }
 0x1db   : > { %v1658_v48 = vadd.f32 %v1620_v46, %v1524_v19  ;;  %v1527_v29 = vadd.f32 %v1493_v7, %v1173_v25  ;;  %v6551_v7 = vld [vmem:[#allocation13_spill] sm:$0xff] }
 0x1dc   : > { %3572 = vmatmul.msk.bf16.gmra.mxu0 %vm813_vm4, %v6545_v21 }
 0x1dd   : > { %v4812_v43 = vadd.f32 %v1776_v53, %v1658_v48  ;;  %v6550_v53 = vld [vmem:[#allocation31_spill] sm:$0xff] }
 0x1de   : > { %3539 = vmatmul.msk.bf16.gmra.mxu2 %vm813_vm4, %v4531_v61  ;;  %v3667_v61 = vld [vmem:[%s6383_s6 + $0x18] sm:$0xff] }
 0x1df   : > { %2485 = vmatpush.bf16.msrb.mxu2 %v3667_v61 }
 0x1e0   : > { %v1846_v51 = vpop.f32.mrf.mxu1 }
 0x1e1   : > { %v1778_v35 = vpop.f32.mrf.mxu0  ;;  %v1926_v33 = vadd.f32 %v1846_v51, %v4525_v27  ;;  %v1980_v57 = vpop.f32.mrf.mxu2 }
 0x1e2   : > { %v1622_v37 = vpop.f32.mrf.mxu3 }
 0x1e3   : > { %v1659_v56 = vadd.f32 %v1622_v37, %v1525_v1  ;;  %v2060_v63 = vadd.f32 %v1980_v57, %v1926_v33  ;;  %3518 = vmatmul.msk.bf16.gmra.mxu1 %vm813_vm4, %v6548_v15  ;;  %v6552_v37 = vld [vmem:[#allocation34_spill] sm:$0xff] }
 0x1e5   : > { %v4819_v19 = vadd.f32 %v1778_v35, %v1659_v56 }
 0x1e6   : > { %3555 = vmatmul.msk.bf16.gmra.mxu3 %vm813_vm4, %v6549_v20 }
 0x1e8   : > { %v1848_v34 = vpop.f32.mrf.mxu1 }
 0x1e9   : > { %v1781_v6 = vpop.f32.mrf.mxu0  ;;  %v1927_v27 = vadd.f32 %v1848_v34, %v4541_v3  ;;  %v1982_v49 = vpop.f32.mrf.mxu2 }
 0x1ea   : > { %v1625_v1 = vpop.f32.mrf.mxu3 }
 0x1eb   : > { %v1660_v45 = vadd.f32 %v1625_v1, %v1526_v16  ;;  %v2061_v55 = vadd.f32 %v1982_v49, %v1927_v27  ;;  %v6554_v27 = vld [vmem:[#allocation2_spill] sm:$0xff] }
 0x1ec   : > { %3573 = vmatmul.msk.bf16.gmra.mxu0 %vm813_vm4, %v6548_v15 }
 0x1ed   : > { %v4829_v28 = vadd.f32 %v1781_v6, %v1660_v45  ;;  %v6553_v6 = vld [vmem:[#allocation32_spill] sm:$0xff] }
 0x1ee   : > { %3540 = vmatmul.msk.bf16.gmra.mxu2 %vm813_vm4, %v4557_v41 }
 0x1f0   : > { %v1851_v11 = vpop.f32.mrf.mxu1 }
 0x1f1   : > { %v1783_v21 = vpop.f32.mrf.mxu0  ;;  %v1928_v8 = vadd.f32 %v1851_v11, %v4551_v58  ;;  %v1985_v32 = vpop.f32.mrf.mxu2 }
 0x1f2   : > { %v1627_v40 = vpop.f32.mrf.mxu3 }
 0x1f3   : > { %v1661_v3 = vadd.f32 %v1627_v40, %v1527_v29  ;;  %v2062_v25 = vadd.f32 %v1985_v32, %v1928_v8  ;;  %3519 = vmatmul.msk.bf16.gmra.mxu1 %vm813_vm4, %v6550_v53  ;;  %v6555_v40 = vld [vmem:[#allocation5_spill] sm:$0xff] }
 0x1f5   : > { %v4836_v16 = vadd.f32 %v1783_v21, %v1661_v3 }
 0x1f6   : > { %3556 = vmatmul.msk.bf16.gmra.mxu3 %vm813_vm4, %v6551_v7 }
 0x1f8   : > { %v1853_v46 = vpop.f32.mrf.mxu1 }
 0x1f9   : > { %v1929_v48 = vadd.f32 %v1853_v46, %v4567_v2  ;;  %v2276_v41 = vpop.f32.mrf.mxu0  ;;  %v1987_v51 = vpop.f32.mrf.mxu2 }
 0x1fa   : > { %v2136_v35 = vpop.f32.mrf.mxu3 }
 0x1fb   : > { %v2216_v33 = vadd.f32 %v2136_v35, %v2060_v63  ;;  %v2063_v58 = vadd.f32 %v1987_v51, %v1929_v48  ;;  %v6557_v51 = vld [vmem:[#allocation4_spill] sm:$0xff] }
 0x1fc   : > { %3574 = vmatmul.msk.bf16.gmra.mxu0 %vm813_vm4, %v6550_v53 }
 0x1fd   : > { %v4843_v29 = vadd.f32 %v2276_v41, %v2216_v33  ;;  %v6556_v41 = vld [vmem:[#allocation33_spill] sm:$0xff] }
 0x1fe   : > { %3541 = vmatmul.msk.bf16.gmra.mxu2 %vm813_vm4, %v4583_v60 }
 0x200   : > { %v1856_v57 = vpop.f32.mrf.mxu1 }
 0x201   : > { %v1930_v56 = vadd.f32 %v1856_v57, %v6552_v37  ;;  %v2278_v15 = vpop.f32.mrf.mxu0  ;;  %v1990_v20 = vpop.f32.mrf.mxu2 }
 0x202   : > { %v2138_v61 = vpop.f32.mrf.mxu3 }
 0x203   : > { %v2217_v2 = vadd.f32 %v2138_v61, %v2061_v55  ;;  %v2064_v34 = vadd.f32 %v1990_v20, %v1930_v56  ;;  %3520 = vmatmul.msk.bf16.gmra.mxu1 %vm813_vm4, %v6553_v6 }
 0x205   : > { %v4850_v63 = vadd.f32 %v2278_v15, %v2217_v2 }
 0x206   : > { %3557 = vmatmul.msk.bf16.gmra.mxu3 %vm813_vm4, %v6554_v27 }
 0x208   : > { %v1858_v49 = vpop.f32.mrf.mxu1 }
 0x209   : > { %v1931_v1 = vadd.f32 %v1858_v49, %v4593_v44  ;;  %v2281_v60 = vpop.f32.mrf.mxu0  ;;  %v1992_v45 = vpop.f32.mrf.mxu2 }
 0x20a   : > { %v2141_v11 = vpop.f32.mrf.mxu3 }
 0x20b   : > { %v2218_v21 = vadd.f32 %v2141_v11, %v2062_v25  ;;  %v2065_v8 = vadd.f32 %v1992_v45, %v1931_v1  ;;  %v6558_v1 = vld [vmem:[#allocation6_spill] sm:$0xff]  ;;  %v6560_v11 = vld [vmem:[#allocation12_spill] sm:$0xff] }
 0x20c   : > { %3575 = vmatmul.msk.bf16.gmra.mxu0 %vm813_vm4, %v6553_v6 }
 0x20d   : > { %v4857_v55 = vadd.f32 %v2281_v60, %v2218_v21  ;;  %v6559_v60 = vld [vmem:[#allocation9_spill] sm:$0xff] }
 0x20e   : > { %3542 = vmatmul.msk.bf16.gmra.mxu2 %vm813_vm4, %v4609_v47 }
 0x210   : > { %v1861_v32 = vpop.f32.mrf.mxu1 }
 0x211   : > { %v1932_v3 = vadd.f32 %v1861_v32, %v6555_v40  ;;  %v2283_v53 = vpop.f32.mrf.mxu0  ;;  %v1995_v7 = vpop.f32.mrf.mxu2 }
 0x212   : > { %v2143_v46 = vpop.f32.mrf.mxu3 }
 0x213   : > { %v2219_v44 = vadd.f32 %v2143_v46, %v2063_v58  ;;  %v2066_v48 = vadd.f32 %v1995_v7, %v1932_v3  ;;  %3521 = vmatmul.msk.bf16.gmra.mxu1 %vm813_vm4, %v6556_v41  ;;  %v6561_v7 = vld [vmem:[#allocation16_spill] sm:$0xff] }
 0x215   : > { %v4864_v25 = vadd.f32 %v2283_v53, %v2219_v44 }
 0x216   : > { %3558 = vmatmul.msk.bf16.gmra.mxu3 %vm813_vm4, %v6557_v51 }
 0x218   : > { %v1863_v35 = vpop.f32.mrf.mxu1 }
 0x219   : > { %v1933_v33 = vadd.f32 %v1863_v35, %v4619_v4  ;;  %v2286_v47 = vpop.f32.mrf.mxu0  ;;  %v1997_v57 = vpop.f32.mrf.mxu2 }
 0x21a   : > { %v2146_v37 = vpop.f32.mrf.mxu3 }
 0x21b   : > { %v2220_v56 = vadd.f32 %v2146_v37, %v2064_v34  ;;  %v2067_v15 = vadd.f32 %v1997_v57, %v1933_v33  ;;  %v6563_v57 = vld [vmem:[#allocation17_spill] sm:$0xff] }
 0x21c   : > { %3576 = vmatmul.msk.bf16.gmra.mxu0 %vm813_vm4, %v6556_v41 }
 0x21d   : > { %v4871_v58 = vadd.f32 %v2286_v47, %v2220_v56  ;;  %v6562_v47 = vld [vmem:[#allocation11_spill] sm:$0xff] }
 0x21e   : > { %3543 = vmatmul.msk.bf16.gmra.mxu2 %vm813_vm4, %v4635_v5  ;;  %v3666_v5 = vld [vmem:[%s6383_s6 + $0x10] sm:$0xff]  ;;  %v6564_v56 = vld [vmem:[#allocation35_spill] sm:$0xff] }
 0x21f   : > { %2486 = vmatpush.bf16.msrb.mxu2 %v3666_v5 }
 0x220   : > { %v1866_v20 = vpop.f32.mrf.mxu1 }
 0x221   : > { %v1934_v61 = vadd.f32 %v1866_v20, %v4629_v50  ;;  %v2288_v2 = vpop.f32.mrf.mxu0  ;;  %v2000_v6 = vpop.f32.mrf.mxu2 }
 0x222   : > { %v2148_v27 = vpop.f32.mrf.mxu3 }
 0x223   : > { %v2221_v4 = vadd.f32 %v2148_v27, %v2065_v8  ;;  %v2068_v49 = vadd.f32 %v2000_v6, %v1934_v61  ;;  %3522 = vmatmul.msk.bf16.gmra.mxu1 %vm813_vm4, %v6558_v1 }
 0x225   : > { %v4878_v34 = vadd.f32 %v2288_v2, %v2221_v4 }
 0x226   : > { %3559 = vmatmul.msk.bf16.gmra.mxu3 %vm813_vm4, %v6559_v60 }
 0x228   : > { %v1868_v45 = vpop.f32.mrf.mxu1 }
 0x229   : > { %v1935_v50 = vadd.f32 %v1868_v45, %v6560_v11  ;;  %v2291_v21 = vpop.f32.mrf.mxu0  ;;  %v2002_v32 = vpop.f32.mrf.mxu2 }
 0x22a   : > { %v2151_v8 = vpop.f32.mrf.mxu3 }
 0x22b   : > { %v2222_v40 = vadd.f32 %v2151_v8, %v2066_v48  ;;  %v2069_v5 = vadd.f32 %v2002_v32, %v1935_v50 }
 0x22c   : > { %3577 = vmatmul.msk.bf16.gmra.mxu0 %vm813_vm4, %v6558_v1  ;;  %v6565_v1 = vld [vmem:[#allocation15_spill] sm:$0xff] }
 0x22d   : > { %v4888_v3 = vadd.f32 %v2291_v21, %v2222_v40  ;;  %v1821_v60 = vrot.slane %v6565_v1, 5 }
 0x22e   : > { %3544 = vmatmul.msk.bf16.gmra.mxu2 %vm813_vm4, %v4668_v59 }
 0x230   : > { %v1871_v53 = vpop.f32.mrf.mxu1 }
 0x231   : > { %v1936_v46 = vadd.f32 %v1871_v53, %v6561_v7  ;;  %v2293_v44 = vpop.f32.mrf.mxu0  ;;  %v2005_v41 = vpop.f32.mrf.mxu2  ;;  %v6566_v53 = vld [vmem:[#allocation10_spill] sm:$0xff]  ;;  %v6567_v7 = vld [vmem:[#allocation19_spill] sm:$0xff] }
 0x232   : > { %v2153_v51 = vpop.f32.mrf.mxu3 }
 0x233   : > { %v2223_v35 = vadd.f32 %v2153_v51, %v2067_v15  ;;  %v2070_v33 = vadd.f32 %v2005_v41, %v1936_v46  ;;  %3523 = vmatmul.msk.bf16.gmra.mxu1 %vm813_vm4, %v6562_v47  ;;  %v3508_v46 = vrot.slane %v6567_v7, 9 }
 0x235   : > { %v4895_v48 = vadd.f32 %v2293_v44, %v2223_v35  ;;  %v1824_v44 = vrot.slane %v4680_v10, 5  ;;  %v1822_v32 = vsel %vm4188_vm7, %v3508_v46, %v1821_v60  ;;  %v374_v46 = vld [vmem:[%s3894_s14 + $0xd4] sm:$0x1] }
 0x236   : > { %3560 = vmatmul.msk.bf16.gmra.mxu3 %vm813_vm4, %v6563_v57 }
 0x238   : > { %v1873_v37 = vpop.f32.mrf.mxu1 }
 0x239   : > { %v1937_v20 = vadd.f32 %v1873_v37, %v6564_v56  ;;  %v2296_v59 = vpop.f32.mrf.mxu0  ;;  %v2007_v61 = vpop.f32.mrf.mxu2  ;;  %v4922_v37 = vld [vmem:[%s3894_s14 + $0xcc] sm:$0xf]  ;;  %v373_v56 = vld [vmem:[%s3894_s14 + $0xd0] sm:$0xf] }
 0x23a   : > { %v2156_v2 = vpop.f32.mrf.mxu3  ;;  %v2106_v1 = vshrl.u32 %v373_v56, 16 }
 0x23b   : > { %v2224_v6 = vadd.f32 %v2156_v2, %v2068_v49  ;;  %v2071_v27 = vadd.f32 %v2007_v61, %v1937_v20  ;;  %v3661_v20 = vld [vmem:[%s3894_s14 + $0xcc] sm:$0xff]  ;;  %v1828_v2 = vunpack.c.l.b16 %v1822_v32 }
 0x23c   : > { %3578 = vmatmul.msk.bf16.gmra.mxu0 %vm813_vm4, %v6562_v47 }
 0x23d   : > { %v4902_v15 = vadd.f32 %v2296_v59, %v2224_v6  ;;  %v2093_v6 = vshrl.u32 %v4922_v37, 16 }
 0x23e   : > { %3545 = vmatmul.msk.bf16.gmra.mxu2 %vm813_vm4, %v4698_v22  ;;  %v1823_v22 = vrot.slane %v1821_v60, 4 }
 0x240   : > { %v1876_v4 = vpop.f32.mrf.mxu1  ;;  %v1825_v51 = vsel %vm4188_vm7, %v1823_v22, %v1824_v44 }
 0x241   : > { %v1938_v45 = vadd.f32 %v1876_v4, %v4688_v39  ;;  %v2298_v11 = vpop.f32.mrf.mxu0  ;;  %v2010_v21 = vpop.f32.mrf.mxu2  ;;  %v2096_v4 = vshll.u32 %v4922_v37, 16 }
 0x242   : > { %v2158_v8 = vpop.f32.mrf.mxu3 }
 0x243   : > { %v2225_v49 = vadd.f32 %v2158_v8, %v2069_v5  ;;  %v2072_v40 = vadd.f32 %v2010_v21, %v1938_v45  ;;  %3524 = vmatmul.msk.bf16.gmra.mxu1 %vm813_vm4, %v6566_v53  ;;  %v2108_v8 = vrot.slane %v2106_v1, 4 }
 0x245   : > { %v4912_v41 = vadd.f32 %v2298_v11, %v2225_v49  ;;  %v2098_v11 = vrot.slane %v2096_v4, 5 }
 0x246   : > { %3561 = vmatmul.msk.bf16.gmra.mxu3 %vm813_vm4, %v4256_v54  ;;  %v1829_v54 = vunpack.c.l.b16 %v1825_v51 }
 0x248   : > { %v1878_v39 = vpop.f32.mrf.mxu1  ;;  %v1830_v5 = vpack.c.b16 %v1829_v54, %v1828_v2  ;;  %v2251_v54 = vrot.slane %v373_v56, 5 }
 0x249   : > { %v1939_v35 = vadd.f32 %v1878_v39, %v4702_v18  ;;  %v2301_v47 = vpop.f32.mrf.mxu0  ;;  %v2012_v57 = vpop.f32.mrf.mxu2  ;;  %v2102_v18 = vshll.u32 %v373_v56, 16 }
 0x24a   : > { %v2161_v10 = vpop.f32.mrf.mxu3  ;;  %v2253_v56 = vrot.slane %v2251_v54, 4 }
 0x24b   : > { %v2226_v59 = vadd.f32 %v2161_v10, %v2070_v33  ;;  %v2073_v61 = vadd.f32 %v2012_v57, %v1939_v35  ;;  %v2095_v33 = vrot.slane %v2093_v6, 4  ;;  %v2104_v21 = vrot.slane %v2102_v18, 5 }
 0x24c   : > { %3579 = vmatmul.msk.bf16.gmra.mxu0 %vm813_vm4, %v6566_v53  ;;  %v2112_v35 = vshll.u32 %v374_v46, 16 }
 0x24d   : > { %v4930_v60 = vadd.f32 %v2301_v47, %v2226_v59  ;;  %v2099_v32 = vor.u32 %v2098_v11, %v2095_v33  ;;  %v2109_v51 = vor.u32 %v2108_v8, %v2104_v21  ;;  %v2254_v33 = vrot.slane %v374_v46, 5 }
 0x24e   : > { %3546 = vmatmul.msk.bf16.gmra.mxu2 %vm813_vm4, %v3661_v20  ;;  %v2114_v20 = vrot.slane %v2112_v35, 5 }
 0x24f   : > { %v2100_v10 = vrot.slane %v2099_v32, 4 }
 0x250   : > { %v1881_v45 = vpop.f32.mrf.mxu1 }
 0x251   : > { %v1940_v49 = vadd.f32 %v1881_v45, %v4711_v52  ;;  %v2303_v53 = vpop.f32.mrf.mxu0  ;;  %v2015_v7 = vpop.f32.mrf.mxu2  ;;  %v2110_v52 = vrot.slane %v2109_v51, 4  ;;  %v2105_v1 = vsel %vm3921_vm3, %v2100_v10, %v2104_v21 }
 0x252   : > { %v2163_v22 = vpop.f32.mrf.mxu3 }
 0x253   : > { %v2227_v44 = vadd.f32 %v2163_v22, %v2071_v27  ;;  %v2074_v39 = vadd.f32 %v2015_v7, %v1940_v49  ;;  %3525 = vmatmul.msk.bf16.gmra.mxu1 %vm813_vm4, %v1830_v5  ;;  %v2255_v7 = vsel %vm4188_vm7, %v2253_v56, %v2254_v33 }
 0x254   : > { %v2259_v51 = vunpack.c.l.b16 %v2255_v7 }
 0x255   : > { %v4936_v47 = vadd.f32 %v2303_v53, %v2227_v44 }
 0x256   : > { %3562 = vmatmul.msk.bf16.gmra.mxu3 %vm813_vm4, %v4706_v12  ;;  %v2115_v12 = vsel %vm3921_vm3, %v2110_v52, %v2114_v20 }
 0x257   : > { %v2119_v11 = vunpack.c.l.b16 %v2115_v12 }
 0x258   : > { %v1883_v57 = vpop.f32.mrf.mxu1 }
 0x259   : > { %v1941_v59 = vadd.f32 %v1883_v57, %v4718_v62  ;;  %v2306_v2 = vpop.f32.mrf.mxu0  ;;  %v2017_v27 = vpop.f32.mrf.mxu2  ;;  %v3564_v62 = vrot.slane %v4922_v37, 9 }
 0x25a   : > { %v2166_v6 = vpop.f32.mrf.mxu3 }
 0x25b   : > { %v2228_v4 = vadd.f32 %v2166_v6, %v2072_v40  ;;  %v2075_v18 = vadd.f32 %v2017_v27, %v1941_v59  ;;  %v2118_v40 = vunpack.c.l.b16 %v2105_v1  ;;  %v2252_v53 = vsel %vm4188_vm7, %v3564_v62, %v2251_v54 }
 0x25c   : > { %3580 = vmatmul.msk.bf16.gmra.mxu0 %vm813_vm4, %v1830_v5  ;;  %v2388_v5 = vld [vmem:[%s314_s19] sm:$0x1]  ;;  %v2258_v46 = vunpack.c.l.b16 %v2252_v53 }
 0x25d   : > { %v4946_v45 = vadd.f32 %v2306_v2, %v2228_v4  ;;  %v2120_v32 = vpack.c.b16 %v2119_v11, %v2118_v40 }
 0x25e   : > { %v2260_v10 = vpack.c.b16 %v2259_v51, %v2258_v46 }
 0x260   : > { %v1886_v8 = vpop.f32.mrf.mxu1 }
 0x261   : > { %v1942_v21 = vadd.f32 %v1886_v8, %v4725_v36  ;;  %v2308_v49 = vpop.f32.mrf.mxu0  ;;  %v2020_v30 = vpop.f32.mrf.mxu2  ;;  %v3665_v36 = vld [vmem:[%s6383_s6 + $0x8] sm:$0xff] }
 0x262   : > { %v2168_v22 = vpop.f32.mrf.mxu3  ;;  %2487 = vmatpush.bf16.msrb.mxu2 %v3665_v36 }
 0x263   : > { %v2229_v44 = vadd.f32 %v2168_v22, %v2073_v61  ;;  %v2076_v37 = vadd.f32 %v2020_v30, %v1942_v21  ;;  %3590 = vmatmul.msk.bf16.vlgmr.msrb.gmra.mxu1 %vm2406_vm8, %v2388_v5 }
 0x265   : > { %v4958_v35 = vadd.f32 %v2308_v49, %v2229_v44 }
 0x266   : > { %3563 = vmatmul.msk.bf16.gmra.mxu3 %vm813_vm4, %v2120_v32 }
 0x268   : > { %v1888_v57 = vpop.f32.mrf.mxu1 }
 0x269   : > { %v1943_v50 = vadd.f32 %v1888_v57, %v4732_v0  ;;  %v2311_v52 = vpop.f32.mrf.mxu0  ;;  %v2022_v20 = vpop.f32.mrf.mxu2 }
 0x26a   : > { %v2171_v61 = vpop.f32.mrf.mxu3 }
 0x26b   : > { %v2230_v59 = vadd.f32 %v2171_v61, %v2074_v39  ;;  %v2077_v2 = vadd.f32 %v2022_v20, %v1943_v50 }
 0x26c   : > { %3581 = vmatmul.msk.bf16.gmra.mxu0 %vm813_vm4, %v2260_v10 }
 0x26d   : > { %v4966_v27 = vadd.f32 %v2311_v52, %v2230_v59 }
 0x270   : > { %v1891_v54 = vpop.f32.mrf.mxu1 }
 0x271   : > { %v1944_v6 = vadd.f32 %v1891_v54, %v4739_v14  ;;  %v2313_v4 = vpop.f32.mrf.mxu0  ;;  %v2025_v1 = vpop.f32.mrf.mxu2 }
 0x272   : > { %v2173_v12 = vpop.f32.mrf.mxu3 }
 0x273   : > { %v2231_v62 = vadd.f32 %v2173_v12, %v2075_v18  ;;  %v2078_v56 = vadd.f32 %v2025_v1, %v1944_v6 }
 0x275   : > { %v4969_v33 = vadd.f32 %v2313_v4, %v2231_v62 }
 0x278   : > { %v1893_v0 = vpop.f32.mrf.mxu1 }
 0x279   : > { %v1945_v40 = vadd.f32 %v1893_v0, %v4746_v17  ;;  %v2316_v11 = vpop.f32.mrf.mxu0  ;;  %v2027_v39 = vpop.f32.mrf.mxu2 }
 0x27a   : > { %v2176_v8 = vpop.f32.mrf.mxu3 }
 0x27b   : > { %v2232_v5 = vadd.f32 %v2176_v8, %v2076_v37  ;;  %v2079_v21 = vadd.f32 %v2027_v39, %v1945_v40 }
 0x27d   : > { %v4972_v49 = vadd.f32 %v2316_v11, %v2232_v5 }
 0x280   : > { %v1896_v30 = vpop.f32.mrf.mxu1 }
 0x281   : > { %v1946_v14 = vadd.f32 %v1896_v30, %v4753_v31  ;;  %v2318_v53 = vpop.f32.mrf.mxu0  ;;  %v2030_v7 = vpop.f32.mrf.mxu2 }
 0x282   : > { %v2178_v22 = vpop.f32.mrf.mxu3 }
 0x283   : > { %v2233_v18 = vadd.f32 %v2178_v22, %v2077_v2  ;;  %v2080_v44 = vadd.f32 %v2030_v7, %v1946_v14 }
 0x285   : > { %v4975_v32 = vadd.f32 %v2318_v53, %v2233_v18 }
 0x288   : > { %v1898_v46 = vpop.f32.mrf.mxu1 }
 0x289   : > { %v1947_v17 = vadd.f32 %v1898_v46, %v4760_v42  ;;  %v2321_v51 = vpop.f32.mrf.mxu0  ;;  %v2032_v36 = vpop.f32.mrf.mxu2 }
 0x28a   : > { %v2181_v57 = vpop.f32.mrf.mxu3 }
 0x28b   : > { %v2234_v37 = vadd.f32 %v2181_v57, %v2078_v56  ;;  %v2081_v10 = vadd.f32 %v2032_v36, %v1947_v17 }
 0x28d   : > { %v4978_v50 = vadd.f32 %v2321_v51, %v2234_v37 }
 0x290   : > { %v1901_v52 = vpop.f32.mrf.mxu1 }
 0x291   : > { %v1948_v31 = vadd.f32 %v1901_v52, %v4767_v24  ;;  %v2323_v20 = vpop.f32.mrf.mxu0  ;;  %v2035_v61 = vpop.f32.mrf.mxu2 }
 0x292   : > { %v2183_v59 = vpop.f32.mrf.mxu3 }
 0x293   : > { %v2235_v2 = vadd.f32 %v2183_v59, %v2079_v21  ;;  %v4981_v54 = vadd.f32 %v2035_v61, %v1948_v31 }
 0x295   : > { %v4983_v6 = vadd.f32 %v2323_v20, %v2235_v2 }
 0x298   : > { %v1903_v4 = vpop.f32.mrf.mxu1 }
 0x299   : > { %v1949_v42 = vadd.f32 %v1903_v4, %v4774_v9  ;;  %v2326_v1 = vpop.f32.mrf.mxu0  ;;  %v2037_v12 = vpop.f32.mrf.mxu2  ;;  %v3664_v9 = vld [vmem:[%s6383_s6] sm:$0xff] }
 0x29a   : > { %v2186_v62 = vpop.f32.mrf.mxu3  ;;  %2488 = vmatpush.bf16.msrb.mxu2 %v3664_v9 }
 0x29b   : > { %v2236_v56 = vadd.f32 %v2186_v62, %v2080_v44  ;;  %v4986_v0 = vadd.f32 %v2037_v12, %v1949_v42 }
 0x29d   : > { %v4988_v40 = vadd.f32 %v2326_v1, %v2236_v56 }
 0x2a0   : > { %v1906_v24 = vpop.f32.mrf.mxu1 }
 0x2a1   : > { %v1950_v11 = vadd.f32 %v1906_v24, %v4781_v13  ;;  %v2040_v39 = vpop.f32.mrf.mxu2  ;;  %v2328_v5 = vpop.f32.mrf.mxu0 }
 0x2a2   : > { %v2188_v8 = vpop.f32.mrf.mxu3 }
 0x2a3   : > { %v2237_v21 = vadd.f32 %v2188_v8, %v2081_v10  ;;  %v4991_v30 = vadd.f32 %v2040_v39, %v1950_v11 }
 0x2a5   : > { %v4993_v14 = vadd.f32 %v2328_v5, %v2237_v21 }
 0x2a8   : > { %v1908_v53 = vpop.f32.mrf.mxu1 }
 0x2a9   : > { %v1951_v7 = vadd.f32 %v1908_v53, %v4788_v38  ;;  %v2042_v22 = vpop.f32.mrf.mxu2 }
 0x2ab   : > { %v4999_v18 = vadd.f32 %v2042_v22, %v1951_v7 }
 0x2b0   : > { %v1911_v13 = vpop.f32.mrf.mxu1 }
 0x2b1   : > { %v1952_v44 = vadd.f32 %v1911_v13, %v4798_v26  ;;  %v2045_v46 = vpop.f32.mrf.mxu2 }
 0x2b3   : > { %v5002_v17 = vadd.f32 %v2045_v46, %v1952_v44 }
 0x2b8   : > { %v1913_v51 = vpop.f32.mrf.mxu1 }
 0x2b9   : > { %v1953_v36 = vadd.f32 %v1913_v51, %v4805_v23  ;;  %v2047_v57 = vpop.f32.mrf.mxu2  ;;  %v2191_v51 = vpop.f32.mrf.mxu3 }
 0x2bb   : > { %v5005_v37 = vadd.f32 %v2047_v57, %v1953_v36  ;;  %v2331_v36 = vpop.f32.mrf.mxu0 }
 0x2c0   : > { %v1916_v10 = vpop.f32.mrf.mxu1 }
 0x2c1   : > { %v1954_v52 = vadd.f32 %v1916_v10, %v4812_v43  ;;  %v2050_v38 = vpop.f32.mrf.mxu2  ;;  %v2393_v43 = vld [vmem:[%s6382_s5] sm:$0x1]  ;;  %v2193_v57 = vpop.f32.mrf.mxu3 }
 0x2c3   : > { %v5008_v31 = vadd.f32 %v2050_v38, %v1954_v52  ;;  %v2333_v10 = vpop.f32.mrf.mxu0 }
 0x2c8   : > { %v1918_v20 = vpop.f32.mrf.mxu1 }
 0x2c9   : > { %v1955_v61 = vadd.f32 %v1918_v20, %v4819_v19  ;;  %v2052_v59 = vpop.f32.mrf.mxu2  ;;  %v2196_v52 = vpop.f32.mrf.mxu3 }
 0x2cb   : > { %v5011_v26 = vadd.f32 %v2052_v59, %v1955_v61  ;;  %v2336_v38 = vpop.f32.mrf.mxu0 }
 0x2d0   : > { %v1921_v2 = vpop.f32.mrf.mxu1 }
 0x2d1   : > { %v1956_v4 = vadd.f32 %v1921_v2, %v4829_v28  ;;  %v2055_v42 = vpop.f32.mrf.mxu2  ;;  %v2198_v20 = vpop.f32.mrf.mxu3 }
 0x2d3   : > { %v5014_v23 = vadd.f32 %v2055_v42, %v1956_v4  ;;  %v2338_v61 = vpop.f32.mrf.mxu0 }
 0x2d8   : > { %v1923_v1 = vpop.f32.mrf.mxu1 }
 0x2d9   : > { %v5017_v12 = vadd.f32 %v1923_v1, %v4836_v16  ;;  %v2201_v59 = vpop.f32.mrf.mxu3 }
 0x2db   : > { %v2341_v2 = vpop.f32.mrf.mxu0 }
 0x2e0   : > { %v2419_v62 = vpop.f32.mrf.mxu1 }
 0x2e1   : > { %v2420_v56 = vadd.f32 %v2419_v62, %v2393_v43  ;;  %v2203_v4 = vpop.f32.mrf.mxu3 }
 0x2e3   : > { %v3591_v19 = vmul.f32 -1.442695, %v2420_v56  ;;  %v2343_v42 = vpop.f32.mrf.mxu0 }
 0x2e5   : > { %3681 = vpow2.f32 %v3591_v19 }
 0x2e8   : > { %v2421_v24 = vpop.f32.mrf.mxu1 }
 0x2e9   : > { %v2206_v1 = vpop.f32.mrf.mxu3  ;;  %v3680_v24 = vld [vmem:[%s6379_s2] ss:$0 sm:$0xff] }
 0x2eb   : > { %v3682_v11 = vpop.eup %3681  ;;  %v2346_v43 = vpop.f32.mrf.mxu0 }
 0x2ec   : > { %v2426_v39 = vadd.f32 1.0, %v3682_v11 }
 0x2ee   : > { %3683 = vrcp.f32 %v2426_v39  ;;  %v2438_v21 = vand.u32 2147483648, %v2426_v39  ;;  %v2436_v16 = vand.u32 2147483647, %v2426_v39  ;;  %vm2432_vm10 = vweird.f32 %v2426_v39 }
 0x2f0   : > { %v2439_v7 = vor.u32 1.1754944e-38, %v2438_v21  ;;  %vm2437_vm12 = vcmp.eq.f32.partialorder %v2436_v16, 8.507059e+37  ;;  %v2501_v21 = vadd.f32 %v3680_v24, %v4864_v25  ;;  %v2503_v16 = vadd.f32 %v3680_v24, %v4878_v34 }
 0x2f1   : > { %v2208_v62 = vpop.f32.mrf.mxu3  ;;  %v2240_v25 = vadd.f32 %v2196_v52, %v4991_v30  ;;  %v2509_v34 = vadd.f32 %v3680_v24, %v4936_v47  ;;  %v2511_v30 = vadd.f32 %v3680_v24, %v4958_v35  ;;  %v2513_v47 = vadd.f32 %v3680_v24, %v4969_v33 }
 0x2f3   : > { %v2348_v19 = vpop.f32.mrf.mxu0 }
 0x2f4   : > { %v3684_v28 = vpop.eup %3683 }
 0x2f5   : > { %v2428_v8 = vmul.f32 %v3684_v28, %v2426_v39  ;;  %vm2433_vm9 = vweird.f32 %v3684_v28  ;;  %v2498_v39 = vadd.f32 %v3680_v24, %v4843_v29  ;;  %v2508_v29 = vadd.f32 %v3680_v24, %v4930_v60 }
 0x2f6   : > { %vm2434_vm11 = vmor %vm2432_vm10, %vm2433_vm9  ;;  %v2245_v60 = vadd.f32 %v2208_v62, %v5011_v26  ;;  %v2515_v26 = vadd.f32 %v3680_v24, %v4975_v32 }
 0x2f7   : > { %v2429_v5 = vsub.f32 1.0, %v2428_v8  ;;  %v2500_v8 = vadd.f32 %v3680_v24, %v4857_v55  ;;  %v2238_v55 = vadd.f32 %v2191_v51, %v4981_v54 }
 0x2f9   : > { %v2430_v9 = vmul.f32 %v3684_v28, %v2429_v5  ;;  %v2057_v5 = vpop.f32.mrf.mxu2  ;;  %v2378_v51 = vadd.f32 %v2331_v36, %v2238_v55  ;;  %v2518_v36 = vadd.f32 %v3680_v24, %v4988_v40 }
 0x2fb   : > { %v2431_v53 = vadd.f32 %v3684_v28, %v2430_v9  ;;  %v2351_v11 = vpop.f32.mrf.mxu0  ;;  %v2502_v9 = vadd.f32 %v3680_v24, %v4871_v58  ;;  %v2091_v58 = vadd.f32 %v2057_v5, %v5017_v12  ;;  %v2512_v12 = vadd.f32 %v3680_v24, %v4966_v27 }
 0x2fd   : > { %v2435_v22 = vsel %vm2434_vm11, %v3684_v28, %v2431_v53  ;;  %v2499_v28 = vadd.f32 %v3680_v24, %v4850_v63  ;;  %v2504_v53 = vadd.f32 %v3680_v24, %v4888_v3  ;;  %v2241_v3 = vadd.f32 %v2198_v20, %v4999_v18 }
 0x2fe   : > { %v2440_v13 = vsel %vm2437_vm12, %v2439_v7, %v2435_v22  ;;  %v2505_v7 = vadd.f32 %v3680_v24, %v4895_v48  ;;  %v2506_v22 = vadd.f32 %v3680_v24, %v4902_v15  ;;  %v2242_v48 = vadd.f32 %v2201_v59, %v5002_v17 }
 0x2ff   : > { %v2442_v44 = vmul.f32 %v2440_v13, %v2420_v56  ;;  %v2211_v56 = vpop.f32.mrf.mxu3  ;;  %v2507_v13 = vadd.f32 %v3680_v24, %v4912_v41  ;;  %v2243_v15 = vadd.f32 %v2203_v4, %v5005_v37  ;;  %v2244_v41 = vadd.f32 %v2206_v1, %v5008_v31  ;;  %v2452_v31 = vld [vmem:[%s6384_s7] sm:$0x1] }
 0x300   : > { %v2246_v54 = vadd.f32 %v2211_v56, %v5014_v23  ;;  %v2514_v17 = vadd.f32 %v3680_v24, %v4972_v49  ;;  %v2381_v23 = vadd.f32 %v2338_v61, %v2241_v3  ;;  %v2385_v20 = vadd.f32 %v2348_v19, %v2245_v60 }
 0x301   : > { %v2443_v46 = vpack.c.bf16 %v2442_v44, %v2442_v44  ;;  %v2239_v44 = vadd.f32 %v2193_v57, %v4986_v0  ;;  %v2510_v0 = vadd.f32 %v3680_v24, %v4946_v45  ;;  %v2380_v57 = vadd.f32 %v2336_v38, %v2240_v25 }
 0x302   : > { %v2382_v45 = vadd.f32 %v2341_v2, %v2242_v48  ;;  %v2383_v52 = vadd.f32 %v2343_v42, %v2243_v15  ;;  %v2384_v35 = vadd.f32 %v2346_v43, %v2244_v41  ;;  %v2386_v27 = vadd.f32 %v2351_v11, %v2246_v54 }
 0x303   : > { %3608 = vmatmul.msk.bf16.vlgmr.msrb.gmra.mxu2 %vm2477_vm13, %v2443_v46  ;;  %v2353_v18 = vpop.f32.mrf.mxu0  ;;  %v2379_v37 = vadd.f32 %v2333_v10, %v2239_v44  ;;  %v2516_v4 = vadd.f32 %v3680_v24, %v4978_v50  ;;  %v2517_v49 = vadd.f32 %v3680_v24, %v4983_v6  ;;  %v2519_v38 = vadd.f32 %v3680_v24, %v4993_v14 }
 0x304   : > { %v2520_v1 = vadd.f32 %v3680_v24, %v2378_v51  ;;  %v2522_v32 = vadd.f32 %v3680_v24, %v2380_v57  ;;  %v2523_v61 = vadd.f32 %v3680_v24, %v2381_v23  ;;  %v2524_v2 = vadd.f32 %v3680_v24, %v2382_v45 }
 0x305   : > { %v2521_v62 = vadd.f32 %v3680_v24, %v2379_v37  ;;  %v2525_v42 = vadd.f32 %v3680_v24, %v2383_v52  ;;  %v2526_v19 = vadd.f32 %v3680_v24, %v2384_v35  ;;  %v2527_v56 = vadd.f32 %v3680_v24, %v2385_v20 }
 0x306   : > { %v2528_v11 = vadd.f32 %v3680_v24, %v2386_v27 }
 0x307   : > { %v2213_v63 = vpop.f32.mrf.mxu3 }
 0x308   : > { %v2247_v46 = vadd.f32 %v2213_v63, %v2091_v58 }
 0x30a   : > { %v2387_v59 = vadd.f32 %v2353_v18, %v2247_v46 }
 0x30c   : > { %v2529_v5 = vadd.f32 %v3680_v24, %v2387_v59 }
 0x386   : > { %v2490_v33 = vpop.f32.mrf.mxu2 }
 0x387   : > { %v2491_v10 = vadd.f32 %v2490_v33, %v2452_v31 }
 0x389   : > { %v2530_v43 = vperm.slane %v2491_v10, 0 }
 0x38b   : > { %v5060_v63 = vadd.f32 %v2530_v43, %v2498_v39  ;;  %v5062_v50 = vadd.f32 %v2530_v43, %v2499_v28  ;;  %v5064_v6 = vadd.f32 %v2530_v43, %v2500_v8  ;;  %v5066_v40 = vadd.f32 %v2530_v43, %v2501_v21 }
 0x38c   : > { %v5068_v14 = vadd.f32 %v2530_v43, %v2502_v9  ;;  %v5070_v55 = vadd.f32 %v2530_v43, %v2503_v16  ;;  %v5072_v44 = vadd.f32 %v2530_v43, %v2504_v53  ;;  %v5074_v25 = vadd.f32 %v2530_v43, %v2505_v7 }
 0x38d   : > { %6569 = vst [vmem:[#allocation20_spill] sm:$0xff] %v5060_v63  ;;  %v5076_v58 = vadd.f32 %v2530_v43, %v2506_v22  ;;  %v5078_v3 = vadd.f32 %v2530_v43, %v2507_v13  ;;  %v5080_v24 = vadd.f32 %v2530_v43, %v2508_v29  ;;  %v5082_v39 = vadd.f32 %v2530_v43, %v2509_v34 }
 0x38e   : > { %6570 = vst [vmem:[#allocation3_spill] sm:$0xff] %v5062_v50  ;;  %v5084_v28 = vadd.f32 %v2530_v43, %v2510_v0  ;;  %v5086_v8 = vadd.f32 %v2530_v43, %v2511_v30  ;;  %v5088_v21 = vadd.f32 %v2530_v43, %v2512_v12  ;;  %v5090_v9 = vadd.f32 %v2530_v43, %v2513_v47  ;;  %v2492_v16 = vpop.f32.mrf.mxu2 }
 0x38f   : > { %6571 = vst [vmem:[#allocation22_spill] sm:$0xff] %v5064_v6  ;;  %v5092_v53 = vadd.f32 %v2530_v43, %v2514_v17  ;;  %v5094_v7 = vadd.f32 %v2530_v43, %v2515_v26  ;;  %v5096_v22 = vadd.f32 %v2530_v43, %v2516_v4  ;;  %v5098_v13 = vadd.f32 %v2530_v43, %v2517_v49 }
 0x390   : > { %6572 = vst [vmem:[#allocation25_spill] sm:$0xff] %v5066_v40  ;;  %v5100_v29 = vadd.f32 %v2530_v43, %v2518_v36  ;;  %v5102_v34 = vadd.f32 %v2530_v43, %v2519_v38  ;;  %v5104_v48 = vadd.f32 %v2530_v43, %v2520_v1  ;;  %v5106_v15 = vadd.f32 %v2530_v43, %v2521_v62 }
 0x391   : > { %6573 = vst [vmem:[#allocation23_spill] sm:$0xff] %v5068_v14  ;;  %v5108_v41 = vadd.f32 %v2530_v43, %v2522_v32  ;;  %v5110_v60 = vadd.f32 %v2530_v43, %v2523_v61  ;;  %v5112_v54 = vadd.f32 %v2530_v43, %v2524_v2  ;;  %v5114_v46 = vadd.f32 %v2530_v43, %v2525_v42 }
 0x392   : > { %6574 = vst [vmem:[#allocation21_spill] sm:$0xff] %v5070_v55  ;;  %v5116_v0 = vadd.f32 %v2530_v43, %v2526_v19  ;;  %v5118_v30 = vadd.f32 %v2530_v43, %v2527_v56  ;;  %v5120_v12 = vadd.f32 %v2530_v43, %v2528_v11  ;;  %v5122_v47 = vadd.f32 %v2530_v43, %v2529_v5 }
 0x393   : > { %6575 = vst [vmem:[#allocation8_spill] sm:$0xff] %v5072_v44  ;;  %v3609_v18 = vmul.f32 -1.442695, %v5060_v63  ;;  %v3610_v17 = vmul.f32 -1.442695, %v5062_v50 }
 0x394   : > { %6576 = vst [vmem:[#allocation26_spill] sm:$0xff] %v5074_v25  ;;  %v3611_v51 = vmul.f32 -1.442695, %v5064_v6  ;;  %v3612_v37 = vmul.f32 -1.442695, %v5066_v40 }
 0x395   : > { %6577 = vst [vmem:[#allocation29_spill] sm:$0xff] %v5076_v58  ;;  %3685 = vpow2.f32 %v3609_v18  ;;  %v3613_v57 = vmul.f32 -1.442695, %v5068_v14  ;;  %v3614_v31 = vmul.f32 -1.442695, %v5070_v55 }
 0x396   : > { %6578 = vst [vmem:[#allocation27_spill] sm:$0xff] %v5078_v3  ;;  %3687 = vpow2.f32 %v3610_v17  ;;  %v3615_v26 = vmul.f32 -1.442695, %v5072_v44  ;;  %v3616_v23 = vmul.f32 -1.442695, %v5074_v25 }
 0x397   : > { %6579 = vst [vmem:[#allocation24_spill] sm:$0xff] %v5080_v24  ;;  %3689 = vpow2.f32 %v3611_v51  ;;  %v3617_v45 = vmul.f32 -1.442695, %v5076_v58  ;;  %v3618_v52 = vmul.f32 -1.442695, %v5078_v3 }
 0x398   : > { %6580 = vst [vmem:[#allocation14_spill] sm:$0xff] %v5082_v39  ;;  %3691 = vpow2.f32 %v3612_v37  ;;  %v3619_v20 = vmul.f32 -1.442695, %v5080_v24  ;;  %v3620_v59 = vmul.f32 -1.442695, %v5082_v39 }
 0x399   : > { %6581 = vst [vmem:[#allocation30_spill] sm:$0xff] %v5084_v28  ;;  %3693 = vpow2.f32 %v3613_v57  ;;  %v3621_v4 = vmul.f32 -1.442695, %v5084_v28  ;;  %v3622_v36 = vmul.f32 -1.442695, %v5086_v8 }
 0x39a   : > { %6582 = vst [vmem:[#allocation28_spill] sm:$0xff] %v5086_v8  ;;  %3695 = vpow2.f32 %v3614_v31  ;;  %v3623_v38 = vmul.f32 -1.442695, %v5088_v21  ;;  %v3624_v62 = vmul.f32 -1.442695, %v5090_v9 }
 0x39b   : > { %6583 = vst [vmem:[#allocation7_spill] sm:$0xff] %v5088_v21  ;;  %v3686_v35 = vpop.eup %3685  ;;  %3697 = vpow2.f32 %v3615_v26  ;;  %v3625_v61 = vmul.f32 -1.442695, %v5092_v53  ;;  %v3626_v42 = vmul.f32 -1.442695, %v5094_v7 }
 0x39c   : > { %6584 = vst [vmem:[#allocation31_spill] sm:$0xff] %v5090_v9  ;;  %v3688_v27 = vpop.eup %3687  ;;  %3699 = vpow2.f32 %v3616_v23  ;;  %v3627_v19 = vmul.f32 -1.442695, %v5096_v22  ;;  %v3628_v11 = vmul.f32 -1.442695, %v5098_v13 }
 0x39d   : > { %6585 = vst [vmem:[#allocation13_spill] sm:$0xff] %v5092_v53  ;;  %v3690_v33 = vpop.eup %3689  ;;  %3701 = vpow2.f32 %v3617_v45  ;;  %v3629_v16 = vmul.f32 -1.442695, %v5100_v29  ;;  %v3630_v17 = vmul.f32 -1.442695, %v5102_v34  ;;  %v5153_v45 = vadd.f32 1.0, %v3686_v35 }
 0x39e   : > { %6586 = vst [vmem:[#allocation34_spill] sm:$0xff] %v5094_v7  ;;  %v3692_v49 = vpop.eup %3691  ;;  %3703 = vpow2.f32 %v3618_v52  ;;  %v3631_v37 = vmul.f32 -1.442695, %v5104_v48  ;;  %v3632_v31 = vmul.f32 -1.442695, %v5106_v15 }
 0x39f   : > { %6587 = vst [vmem:[#allocation32_spill] sm:$0xff] %v5096_v22  ;;  %v3694_v10 = vpop.eup %3693  ;;  %3705 = vpow2.f32 %v3619_v20  ;;  %v3633_v23 = vmul.f32 -1.442695, %v5108_v41  ;;  %v3634_v20 = vmul.f32 -1.442695, %v5110_v60  ;;  %vm2696_vm14 = vweird.f32 %v5153_v45 }
 0x3a0   : > { %6588 = vst [vmem:[#allocation2_spill] sm:$0xff] %v5098_v13  ;;  %v3696_v1 = vpop.eup %3695  ;;  %3707 = vpow2.f32 %v3620_v59  ;;  %v5156_v59 = vadd.f32 1.0, %v3688_v27  ;;  %v3638_v35 = vmul.f32 -1.442695, %v5118_v30  ;;  %v2702_v27 = vand.u32 2147483648, %v5153_v45 }
 0x3a1   : > { %6589 = vst [vmem:[#allocation5_spill] sm:$0xff] %v5100_v29  ;;  %v3698_v32 = vpop.eup %3697  ;;  %3709 = vpow2.f32 %v3621_v4 }
 0x3a2   : > { %6590 = vst [vmem:[#allocation33_spill] sm:$0xff] %v5102_v34  ;;  %v3700_v2 = vpop.eup %3699  ;;  %3711 = vpow2.f32 %v3622_v36  ;;  %v3635_v36 = vmul.f32 -1.442695, %v5112_v54  ;;  %vm2711_vm15 = vweird.f32 %v5156_v59 }
 0x3a3   : > { %6591 = vst [vmem:[#allocation4_spill] sm:$0xff] %v5104_v48  ;;  %v3702_v43 = vpop.eup %3701  ;;  %3713 = vpow2.f32 %v3623_v38 }
 0x3a4   : > { %6592 = vst [vmem:[#allocation6_spill] sm:$0xff] %v5106_v15  ;;  %v3704_v56 = vpop.eup %3703  ;;  %3715 = vpow2.f32 %v3624_v62  ;;  %v3636_v62 = vmul.f32 -1.442695, %v5114_v46 }
 0x3a5   : > { %6593 = vst [vmem:[#allocation9_spill] sm:$0xff] %v5108_v41  ;;  %v3706_v5 = vpop.eup %3705  ;;  %3717 = vpow2.f32 %v3625_v61  ;;  %v3637_v61 = vmul.f32 -1.442695, %v5116_v0 }
 0x3a6   : > { %6594 = vst [vmem:[#allocation12_spill] sm:$0xff] %v5110_v60  ;;  %v3708_v18 = vpop.eup %3707  ;;  %3719 = vpow2.f32 %v3626_v42  ;;  %v5186_v60 = vadd.f32 1.0, %v3702_v43 }
 0x3a7   : > { %6595 = vst [vmem:[#allocation16_spill] sm:$0xff] %v5112_v54  ;;  %v3710_v51 = vpop.eup %3709  ;;  %3721 = vpow2.f32 %v3627_v19  ;;  %v5164_v19 = vadd.f32 1.0, %v3690_v33  ;;  %v5177_v54 = vadd.f32 1.0, %v3698_v32  ;;  %v5197_v41 = vadd.f32 1.0, %v3708_v18 }
 0x3a8   : > { %6596 = vst [vmem:[#allocation11_spill] sm:$0xff] %v5114_v46  ;;  %v5147_v57 = vpop.eup %3711  ;;  %3723 = vpow2.f32 %v3628_v11  ;;  %v5172_v46 = vadd.f32 1.0, %v3694_v10  ;;  %v5201_v48 = vadd.f32 1.0, %v3710_v51  ;;  %v2822_v8 = vand.u32 2147483648, %v5186_v60 }
 0x3a9   : > { %6597 = vst [vmem:[#allocation17_spill] sm:$0xff] %v5116_v0  ;;  %v5150_v26 = vpop.eup %3713  ;;  %3725 = vpow2.f32 %v3629_v16  ;;  %v3639_v16 = vmul.f32 -1.442695, %v5120_v12  ;;  %v3640_v0 = vmul.f32 -1.442695, %v5122_v47  ;;  %v2732_v10 = vand.u32 2147483648, %v5164_v19 }
 0x3aa   : > { %6598 = vst [vmem:[#allocation35_spill] sm:$0xff] %v5118_v30  ;;  %v3716_v52 = vpop.eup %3715  ;;  %3727 = vpow2.f32 %v3630_v17  ;;  %v5168_v17 = vadd.f32 1.0, %v3692_v49  ;;  %v5175_v30 = vadd.f32 1.0, %v3696_v1  ;;  %v2762_v15 = vand.u32 2147483648, %v5172_v46 }
 0x3ab   : > { %6599 = vst [vmem:[#allocation15_spill] sm:$0xff] %v5120_v12  ;;  %v3718_v4 = vpop.eup %3717  ;;  %3729 = vpow2.f32 %v3631_v37  ;;  %v2717_v37 = vand.u32 2147483648, %v5156_v59  ;;  %v5180_v12 = vadd.f32 1.0, %v3700_v2  ;;  %v5194_v2 = vadd.f32 1.0, %v3706_v5 }
 0x3ac   : > { %6600 = vst [vmem:[#allocation10_spill] sm:$0xff] %v5122_v47  ;;  %v5159_v38 = vpop.eup %3719  ;;  %3731 = vpow2.f32 %v3632_v31  ;;  %v2747_v32 = vand.u32 2147483648, %v5168_v17  ;;  %v5217_v51 = vadd.f32 1.0, %v5150_v26  ;;  %v5219_v34 = vadd.f32 1.0, %v3716_v52 }
 0x3ad   : > { %v3722_v42 = vpop.eup %3721  ;;  %3733 = vpow2.f32 %v3633_v23  ;;  %v5189_v1 = vor.u32 1.1754944e-38, %v2717_v37  ;;  %v5227_v13 = vor.u32 1.1754944e-38, %v2762_v15  ;;  %v5232_v26 = vadd.f32 1.0, %v5159_v38 }
 0x3ae   : > { %v3724_v11 = vpop.eup %3723  ;;  %3735 = vpow2.f32 %v3634_v20  ;;  %v5192_v20 = vadd.f32 1.0, %v3704_v56  ;;  %v2777_v56 = vand.u32 2147483648, %v5175_v30  ;;  %v5211_v18 = vor.u32 1.1754944e-38, %v2747_v32 }
 0x3af   : > { %v3726_v31 = vpop.eup %3725  ;;  %3737 = vpow2.f32 %v3635_v36  ;;  %v5183_v36 = vor.u32 1.1754944e-38, %v2702_v27  ;;  %v5208_v27 = vadd.f32 1.0, %v5147_v57  ;;  %v5225_v57 = vadd.f32 1.0, %v3718_v4 }
 0x3b0   : > { %v3728_v33 = vpop.eup %3727  ;;  %3739 = vpow2.f32 %v3636_v62  ;;  %v2792_v32 = vand.u32 2147483648, %v5177_v54  ;;  %v5234_v52 = vadd.f32 1.0, %v3722_v42  ;;  %v5236_v22 = vor.u32 1.1754944e-38, %v2777_v56 }
 0x3b1   : > { %v3730_v49 = vpop.eup %3729  ;;  %3741 = vrcp.f32 %v5153_v45  ;;  %v5238_v7 = vadd.f32 1.0, %v3724_v11  ;;  %v2807_v4 = vand.u32 2147483648, %v5180_v12  ;;  %v5244_v9 = vadd.f32 1.0, %v3726_v31 }
 0x3b2   : > { %v3732_v47 = vpop.eup %3731  ;;  %3743 = vrcp.f32 %v5156_v59  ;;  %v5255_v11 = vor.u32 1.1754944e-38, %v2792_v32  ;;  %v5261_v15 = vadd.f32 1.0, %v3730_v49  ;;  %v2837_v56 = vand.u32 2147483648, %v5192_v20 }
 0x3b3   : > { %v3734_v62 = vpop.eup %3733  ;;  %3745 = vpow2.f32 %v3637_v61  ;;  %v5204_v61 = vor.u32 1.1754944e-38, %v2732_v10  ;;  %6601 = vst [vmem:[#allocation19_spill] sm:$0xff] %v5244_v9  ;;  %v5263_v21 = vadd.f32 1.0, %v3732_v47  ;;  %v5271_v32 = vor.u32 1.1754944e-38, %v2807_v4 }
 0x3b4   : > { %v3736_v23 = vpop.eup %3735  ;;  %3747 = vpow2.f32 %v3638_v35  ;;  %6603 = vst [vmem:[#allocation36_spill] sm:$0xff] %v5261_v15  ;;  %v5301_v39 = vor.u32 1.1754944e-38, %v2837_v56  ;;  %vm2726_vm0 = vweird.f32 %v5164_v19  ;;  %vm2741_vm1 = vweird.f32 %v5168_v17 }
 0x3b5   : > { %v3738_v37 = vpop.eup %3737  ;;  %3749 = vrcp.f32 %v5164_v19  ;;  %6604 = vst [vmem:[#allocation37_spill] sm:$0xff] %v5263_v21  ;;  %v5275_v3 = vadd.f32 1.0, %v3736_v23  ;;  %vm2756_vm5 = vweird.f32 %v5172_v46  ;;  %vm2771_vm7 = vweird.f32 %v5175_v30 }
 0x3b6   : > { %v3740_v5 = vpop.eup %3739  ;;  %3751 = vrcp.f32 %v5168_v17  ;;  %v5279_v44 = vadd.f32 1.0, %v3738_v37  ;;  %v6626_v21 = vand.u32 2147483647, %v5168_v17 }
 0x3b7   : > { %v5214_v43 = vpop.eup %3741  ;;  %3753 = vrcp.f32 %v5172_v46  ;;  %6606 = vst [vmem:[#allocation39_spill] sm:$0xff] %v5275_v3  ;;  %v5288_v23 = vadd.f32 1.0, %v3740_v5  ;;  %v6644_v5 = vand.u32 2147483647, %v5180_v12 }
 0x3b8   : > { %v5223_v29 = vpop.eup %3743  ;;  %3755 = vrcp.f32 %v5175_v30  ;;  %v2692_v38 = vmul.f32 %v5214_v43, %v5153_v45  ;;  %6607 = vst [vmem:[#allocation40_spill] sm:$0xff] %v5279_v44  ;;  %vm2697_vm2 = vweird.f32 %v5214_v43 }
 0x3b9   : > { %v3746_v35 = vpop.eup %3745  ;;  %3757 = vpow2.f32 %v3639_v16  ;;  %v2707_v42 = vmul.f32 %v5223_v29, %v5156_v59  ;;  %6608 = vst [vmem:[#allocation41_spill] sm:$0xff] %v5288_v23  ;;  %v2852_v23 = vand.u32 2147483648, %v5194_v2  ;;  %vm2712_vm6 = vweird.f32 %v5223_v29  ;;  %vm5359_vm9 = vmor %vm2696_vm14, %vm2697_vm2 }
 0x3ba   : > { %v3748_v10 = vpop.eup %3747  ;;  %3759 = vpow2.f32 %v3640_v0  ;;  %v5253_v0 = vadd.f32 1.0, %v3728_v33  ;;  %v5269_v33 = vadd.f32 1.0, %v3734_v62  ;;  %v2693_v49 = vsub.f32 1.0, %v2692_v38  ;;  %vm5375_vm12 = vmor %vm2711_vm15, %vm2712_vm6 }
 0x3bb   : > { %v5242_v53 = vpop.eup %3749  ;;  %3761 = vrcp.f32 %v5177_v54  ;;  %v2708_v47 = vsub.f32 1.0, %v2707_v42  ;;  %v5293_v42 = vor.u32 1.1754944e-38, %v2822_v8  ;;  %v5298_v14 = vadd.f32 1.0, %v3746_v35 }
 0x3bc   : > { %v5251_v16 = vpop.eup %3751  ;;  %6602 = vst [vmem:[#allocation18_spill] sm:$0xff] %v5253_v0  ;;  %3763 = vrcp.f32 %v5180_v12  ;;  %v2722_v58 = vmul.f32 %v5242_v53, %v5164_v19  ;;  %v5307_v6 = vadd.f32 1.0, %v3748_v10  ;;  %v2694_v8 = vmul.f32 %v5214_v43, %v2693_v49 }
 0x3bd   : > { %v5259_v31 = vpop.eup %3753  ;;  %3765 = vrcp.f32 %v5186_v60  ;;  %6605 = vst [vmem:[#allocation38_spill] sm:$0xff] %v5269_v33  ;;  %v2737_v62 = vmul.f32 %v5251_v16, %v5168_v17  ;;  %v2709_v50 = vmul.f32 %v5223_v29, %v2708_v47  ;;  %vm2727_vm8 = vweird.f32 %v5242_v53 }
 0x3be   : > { %v5267_v28 = vpop.eup %3755  ;;  %v2752_v4 = vmul.f32 %v5259_v31, %v5172_v46  ;;  %3767 = vrcp.f32 %v5192_v20  ;;  %6609 = vst [vmem:[#allocation42_spill] sm:$0xff] %v5298_v14  ;;  %v2723_v63 = vsub.f32 1.0, %v2722_v58  ;;  %vm2742_vm10 = vweird.f32 %v5251_v16  ;;  %vm5418_vm11 = vmor %vm2726_vm0, %vm2727_vm8 }
 0x3bf   : > { %v3758_v24 = vpop.eup %3757  ;;  %v2767_v38 = vmul.f32 %v5267_v28, %v5175_v30  ;;  %3769 = vrcp.f32 %v5194_v2  ;;  %6610 = vst [vmem:[#allocation43_spill] sm:$0xff] %v5307_v6  ;;  %v2738_v35 = vsub.f32 1.0, %v2737_v62  ;;  %v6613_v62 = vand.u32 2147483647, %v5153_v45  ;;  %vm5433_vm0 = vmor %vm2741_vm1, %vm2742_vm10 }
 0x3c0   : > { %v3760_v25 = vpop.eup %3759  ;;  %v2753_v14 = vsub.f32 1.0, %v2752_v4  ;;  %v5315_v44 = vadd.f32 1.0, %v3758_v24  ;;  %v6616_v24 = vand.u32 2147483647, %v5156_v59  ;;  %3771 = vrcp.f32 %v5197_v41 }
 0x3c1   : > { %v5286_v55 = vpop.eup %3761  ;;  %v2768_v10 = vsub.f32 1.0, %v2767_v38  ;;  %v5321_v58 = vadd.f32 1.0, %v3760_v25  ;;  %vm5326_vm3 = vcmp.eq.f32.partialorder %v6613_v62, 8.507059e+37  ;;  %v2867_v38 = vand.u32 2147483648, %v5197_v41 }
 0x3c2   : > { %v5296_v37 = vpop.eup %3763  ;;  %v2782_v56 = vmul.f32 %v5286_v55, %v5177_v54  ;;  %6611 = vst [vmem:[#allocation44_spill] sm:$0xff] %v5315_v44  ;;  %vm5332_vm4 = vcmp.eq.f32.partialorder %v6616_v24, 8.507059e+37  ;;  %v2695_v62 = vadd.f32 %v5214_v43, %v2694_v8  ;;  %v2724_v24 = vmul.f32 %v5242_v53, %v2723_v63 }
 0x3c3   : > { %v5305_v40 = vpop.eup %3765  ;;  %v2797_v49 = vmul.f32 %v5296_v37, %v5180_v12  ;;  %6612 = vst [vmem:[#allocation45_spill] sm:$0xff] %v5321_v58  ;;  %v2710_v58 = vadd.f32 %v5223_v29, %v2709_v50  ;;  %v2739_v6 = vmul.f32 %v5251_v16, %v2738_v35  ;;  %v2754_v3 = vmul.f32 %v5259_v31, %v2753_v14 }
 0x3c4   : > { %v2812_v25 = vmul.f32 %v5305_v40, %v5186_v60  ;;  %v5340_v47 = vpop.eup %3767  ;;  %v2783_v33 = vsub.f32 1.0, %v2782_v56  ;;  %v2769_v8 = vmul.f32 %v5267_v28, %v2768_v10  ;;  %3773 = vrcp.f32 %v5201_v48 }
 0x3c5   : > { %v5347_v44 = vpop.eup %3769  ;;  %v2798_v50 = vsub.f32 1.0, %v2797_v49  ;;  %v2827_v35 = vmul.f32 %v5340_v47, %v5192_v20  ;;  %3775 = vrcp.f32 %v5208_v27  ;;  %v2699_v56 = vsel %vm5359_vm9, %v5214_v43, %v2695_v62 }
 0x3c6   : > { %v2813_v14 = vsub.f32 1.0, %v2812_v25  ;;  %v2725_v10 = vadd.f32 %v5242_v53, %v2724_v24  ;;  %v6623_v49 = vand.u32 2147483647, %v5164_v19  ;;  %vm5388_vm14 = vcmp.eq.f32.partialorder %v6626_v21, 8.507059e+37 }
 0x3c7   : > { %vm2757_vm2 = vweird.f32 %v5259_v31  ;;  %v6629_v59 = vand.u32 2147483647, %v5172_v46  ;;  %v6632_v24 = vand.u32 2147483647, %v5175_v30  ;;  %v2842_v21 = vmul.f32 %v5347_v44, %v5194_v2 }
 0x3c8   : > { %vm5382_vm13 = vcmp.eq.f32.partialorder %v6623_v49, 8.507059e+37  ;;  %v2714_v49 = vsel %vm5375_vm12, %v5223_v29, %v2710_v58  ;;  %v2755_v15 = vadd.f32 %v5259_v31, %v2754_v3  ;;  %v2784_v0 = vmul.f32 %v5286_v55, %v2783_v33  ;;  %vm5458_vm1 = vmor %vm2756_vm5, %vm2757_vm2 }
 0x3c9   : > { %vm5395_vm15 = vcmp.eq.f32.partialorder %v6629_v59, 8.507059e+37  ;;  %vm5401_vm6 = vcmp.eq.f32.partialorder %v6632_v24, 8.507059e+37  ;;  %v2740_v59 = vadd.f32 %v5251_v16, %v2739_v6  ;;  %v2770_v9 = vadd.f32 %v5267_v28, %v2769_v8  ;;  %v5427_v6 = vpop.eup %3771 }
 0x3ca   : > { %vm2772_vm9 = vweird.f32 %v5267_v28  ;;  %v2799_v29 = vmul.f32 %v5296_v37, %v2798_v50  ;;  %vm2816_vm12 = vweird.f32 %v5186_v60  ;;  %3777 = vrcp.f32 %v5217_v51  ;;  %v5442_v50 = vpop.eup %3773 }
 0x3cb   : > { %v2814_v19 = vmul.f32 %v5305_v40, %v2813_v14  ;;  %v2828_v33 = vsub.f32 1.0, %v2827_v35  ;;  %v5438_v58 = vor.u32 1.1754944e-38, %v2852_v23  ;;  %v5440_v8 = vor.u32 1.1754944e-38, %v2867_v38  ;;  %v5475_v46 = vpop.eup %3775 }
 0x3cc   : > { %v5447_v45 = vsel %vm5326_vm3, %v5183_v36, %v2699_v56  ;;  %v5452_v17 = vsel %vm5332_vm4, %v5189_v1, %v2714_v49  ;;  %vm2787_vm8 = vweird.f32 %v5286_v55  ;;  %v6641_v38 = vand.u32 2147483647, %v5177_v54  ;;  %vm5490_vm4 = vmor %vm2771_vm7, %vm2772_vm9 }
 0x3cd   : > { %vm5471_vm3 = vcmp.eq.f32.partialorder %v6644_v5, 8.507059e+37  ;;  %v2843_v4 = vsub.f32 1.0, %v2842_v21  ;;  %v2729_v14 = vsel %vm5418_vm11, %v5242_v53, %v2725_v10  ;;  %v2744_v35 = vsel %vm5433_vm0, %v5251_v16, %v2740_v59 }
 0x3ce   : > { %vm5465_vm10 = vcmp.eq.f32.partialorder %v6641_v38, 8.507059e+37  ;;  %v2759_v56 = vsel %vm5458_vm1, %v5259_v31, %v2755_v15  ;;  %v2785_v49 = vadd.f32 %v5286_v55, %v2784_v0  ;;  %vm2831_vm5 = vweird.f32 %v5192_v20 }
 0x3cf   : > { %v2774_v53 = vsel %vm5490_vm4, %v5267_v28, %v2770_v9  ;;  %v2800_v16 = vadd.f32 %v5296_v37, %v2799_v29  ;;  %vm2802_vm11 = vweird.f32 %v5296_v37  ;;  %vm2817_vm2 = vweird.f32 %v5305_v40 }
 0x3d0   : > { %v6649_v30 = vand.u32 2147483647, %v5186_v60  ;;  %vm2846_vm9 = vweird.f32 %v5194_v2  ;;  %v2815_v0 = vadd.f32 %v5305_v40, %v2814_v19  ;;  %v2829_v31 = vmul.f32 %v5340_v47, %v2828_v33  ;;  %v5514_v9 = vpop.eup %3777 }
 0x3d1   : > { %v2857_v28 = vmul.f32 %v5427_v6, %v5197_v41  ;;  %3779 = vrcp.f32 %v5219_v34  ;;  %vm6652_vm0 = vweird.f32 %v5177_v54  ;;  %v2844_v59 = vmul.f32 %v5347_v44, %v2843_v4 }
 0x3d2   : > { %vm5504_vm7 = vcmp.eq.f32.partialorder %v6649_v30, 8.507059e+37  ;;  %vm5520_vm1 = vmor %vm6652_vm0, %vm2787_vm8  ;;  %v2872_v24 = vmul.f32 %v5442_v50, %v5201_v48  ;;  %v2887_v29 = vmul.f32 %v5475_v46, %v5208_v27  ;;  %3781 = vrcp.f32 %v5225_v57 }
 0x3d3   : > { %v5533_v3 = vsel %vm5382_vm13, %v5204_v61, %v2729_v14  ;;  %v5538_v54 = vsel %vm5388_vm14, %v5211_v18, %v2744_v35  ;;  %v5543_v19 = vsel %vm5395_vm15, %v5227_v13, %v2759_v56  ;;  %v5548_v33 = vsel %vm5401_vm6, %v5236_v22, %v2774_v53  ;;  %vm5576_vm6 = vmor %vm2816_vm12, %vm2817_vm2 }
 0x3d4   : > { %vm6655_vm13 = vweird.f32 %v5180_v12  ;;  %v6658_v18 = vand.u32 2147483647, %v5192_v20  ;;  %v2789_v13 = vsel %vm5520_vm1, %v5286_v55, %v2785_v49  ;;  %vm2832_vm15 = vweird.f32 %v5340_v47 }
 0x3d5   : > { %vm5554_vm8 = vmor %vm6655_vm13, %vm2802_vm11  ;;  %v2882_v12 = vand.u32 2147483648, %v5201_v48  ;;  %v2830_v62 = vadd.f32 %v5340_v47, %v2829_v31  ;;  %vm2847_vm4 = vweird.f32 %v5347_v44  ;;  %v6663_v55 = vand.u32 2147483647, %v5194_v2 }
 0x3d6   : > { %vm5560_vm14 = vcmp.eq.f32.partialorder %v6658_v18, 8.507059e+37  ;;  %v2804_v22 = vsel %vm5554_vm8, %v5296_v37, %v2800_v16  ;;  %v2858_v63 = vsub.f32 1.0, %v2857_v28  ;;  %v2902_v23 = vmul.f32 %v5514_v9, %v5217_v51  ;;  %vm5615_vm0 = vmor %vm2831_vm5, %vm2832_vm15 }
 0x3d7   : > { %vm5584_vm11 = vcmp.eq.f32.partialorder %v6663_v55, 8.507059e+37  ;;  %v2819_v60 = vsel %vm5576_vm6, %v5305_v40, %v2815_v0  ;;  %v2845_v38 = vadd.f32 %v5347_v44, %v2844_v59  ;;  %vm2861_vm12 = vweird.f32 %v5197_v41  ;;  %v5595_v14 = vpop.eup %3779 }
 0x3d8   : > { %v2873_v5 = vsub.f32 1.0, %v2872_v24  ;;  %v2888_v4 = vsub.f32 1.0, %v2887_v29  ;;  %v5600_v35 = vsel %vm5465_vm10, %v5255_v11, %v2789_v13  ;;  %v5605_v56 = vsel %vm5471_vm3, %v5271_v32, %v2804_v22  ;;  %v5609_v21 = vpop.eup %3781  ;;  %vm5637_vm3 = vmor %vm2846_vm9, %vm2847_vm4 }
 0x3d9   : > { %vm2876_vm2 = vweird.f32 %v5201_v48  ;;  %v2880_v40 = vand.u32 2147483647, %v5201_v48  ;;  %v5619_v11 = vor.u32 1.1754944e-38, %v2882_v12  ;;  %vm2891_vm10 = vweird.f32 %v5208_v27 }
 0x3da   : > { %v2895_v32 = vand.u32 2147483647, %v5208_v27  ;;  %v2897_v36 = vand.u32 2147483648, %v5208_v27  ;;  %3783 = vrcp.f32 %v5232_v26  ;;  %v5628_v1 = vsel %vm5504_vm7, %v5293_v42, %v2819_v60 }
 0x3db   : > { %v2834_v20 = vsel %vm5615_vm0, %v5340_v47, %v2830_v62  ;;  %v2859_v16 = vmul.f32 %v5427_v6, %v2858_v63  ;;  %v2903_v30 = vsub.f32 1.0, %v2902_v23  ;;  %v2849_v42 = vsel %vm5637_vm3, %v5347_v44, %v2845_v38  ;;  %v6683_v38 = vld [vmem:[#allocation19_spill] sm:$0xff] }
 0x3dc   : > { %v2874_v15 = vmul.f32 %v5442_v50, %v2873_v5  ;;  %v2889_v0 = vmul.f32 %v5475_v46, %v2888_v4  ;;  %3785 = vrcp.f32 %v5234_v52  ;;  %v6670_v47 = vand.u32 2147483647, %v5197_v41  ;;  %v6697_v41 = vld [vmem:[#allocation38_spill] sm:$0xff] }
 0x3dd   : > { %v2910_v31 = vand.u32 2147483647, %v5217_v51  ;;  %v2917_v28 = vmul.f32 %v5595_v14, %v5219_v34  ;;  %v2932_v44 = vmul.f32 %v5609_v21, %v5225_v57  ;;  %3787 = vrcp.f32 %v5238_v7 }
 0x3de   : > { %vm5650_vm5 = vcmp.eq.f32.partialorder %v6670_v47, 8.507059e+37  ;;  %v5663_v10 = vsel %vm5560_vm14, %v5301_v39, %v2834_v20  ;;  %vm2862_vm7 = vweird.f32 %v5427_v6  ;;  %vm2877_vm9 = vweird.f32 %v5442_v50 }
 0x3df   : > { %vm5667_vm1 = vcmp.eq.f32.partialorder %v2880_v40, 8.507059e+37  ;;  %v2912_v24 = vand.u32 2147483648, %v5217_v51  ;;  %v2860_v29 = vadd.f32 %v5427_v6, %v2859_v16  ;;  %vm5673_vm13 = vcmp.eq.f32.partialorder %v2895_v32, 8.507059e+37  ;;  %vm5691_vm14 = vmor %vm2861_vm12, %vm2862_vm7 }
 0x3e0   : > { %v2898_v18 = vor.u32 1.1754944e-38, %v2897_v36  ;;  %v2904_v39 = vmul.f32 %v5514_v9, %v2903_v30  ;;  %v2927_v25 = vand.u32 2147483648, %v5219_v34  ;;  %v5679_v13 = vpop.eup %3783  ;;  %v5684_v22 = vsel %vm5584_vm11, %v5438_v58, %v2849_v42  ;;  %vm5706_vm4 = vmor %vm2876_vm2, %vm2877_vm9  ;;  %v6686_v42 = vld [vmem:[#allocation18_spill] sm:$0xff] }
 0x3e1   : > { %v2875_v12 = vadd.f32 %v5442_v50, %v2874_v15  ;;  %v2890_v43 = vadd.f32 %v5475_v46, %v2889_v0  ;;  %vm2892_vm8 = vweird.f32 %v5475_v46  ;;  %vm2906_vm15 = vweird.f32 %v5217_v51  ;;  %v6689_v0 = vld [vmem:[#allocation36_spill] sm:$0xff] }
 0x3e2   : > { %vm5696_vm6 = vcmp.eq.f32.partialorder %v2910_v31, 8.507059e+37  ;;  %v2918_v58 = vsub.f32 1.0, %v2917_v28  ;;  %v2933_v37 = vsub.f32 1.0, %v2932_v44  ;;  %v5700_v63 = vpop.eup %3785  ;;  %vm2907_vm11 = vweird.f32 %v5514_v9  ;;  %vm5723_vm2 = vmor %vm2891_vm10, %vm2892_vm8 }
 0x3e3   : > { %v2913_v23 = vor.u32 1.1754944e-38, %v2912_v24  ;;  %vm2921_vm12 = vweird.f32 %v5219_v34  ;;  %v2925_v60 = vand.u32 2147483647, %v5219_v34  ;;  %3789 = vrcp.f32 %v6683_v38  ;;  %v5714_v5 = vpop.eup %3787  ;;  %vm5754_vm0 = vmor %vm2906_vm15, %vm2907_vm11 }
 0x3e4   : > { %v2864_v4 = vsel %vm5691_vm14, %v5427_v6, %v2860_v29  ;;  %v2905_v40 = vadd.f32 %v5514_v9, %v2904_v39  ;;  %v5728_v49 = vor.u32 1.1754944e-38, %v2927_v25  ;;  %v2947_v32 = vmul.f32 %v5679_v13, %v5232_v26 }
 0x3e5   : > { %v2879_v36 = vsel %vm5706_vm4, %v5442_v50, %v2875_v12  ;;  %v2894_v6 = vsel %vm5723_vm2, %v5475_v46, %v2890_v43  ;;  %v2940_v27 = vand.u32 2147483647, %v5225_v57  ;;  %v2942_v20 = vand.u32 2147483648, %v5225_v57  ;;  %v6694_v12 = vld [vmem:[#allocation37_spill] sm:$0xff] }
 0x3e6   : > { %v2919_v53 = vmul.f32 %v5595_v14, %v2918_v58  ;;  %v2934_v16 = vmul.f32 %v5609_v21, %v2933_v37  ;;  %v2962_v30 = vmul.f32 %v5700_v63, %v5234_v52  ;;  %3791 = vrcp.f32 %v6686_v42 }
 0x3e7   : > { %v5748_v50 = vsel %vm5650_vm5, %v5440_v8, %v2864_v4  ;;  %vm2936_vm10 = vweird.f32 %v5225_v57  ;;  %v2977_v15 = vmul.f32 %v5714_v5, %v5238_v7  ;;  %3793 = vrcp.f32 %v6689_v0 }
 0x3e8   : > { %v5765_v8 = vsel %vm5667_vm1, %v5619_v11, %v2879_v36  ;;  %v2909_v51 = vsel %vm5754_vm0, %v5514_v9, %v2905_v40  ;;  %vm2922_vm3 = vweird.f32 %v5595_v14  ;;  %vm5771_vm5 = vcmp.eq.f32.partialorder %v2925_v60, 8.507059e+37 }
 0x3e9   : > { %v2948_v2 = vsub.f32 1.0, %v2947_v32  ;;  %v5775_v31 = vpop.eup %3789  ;;  %v5779_v28 = vsel %vm5673_vm13, %v2898_v18, %v2894_v6  ;;  %vm5781_vm7 = vcmp.eq.f32.partialorder %v2940_v27, 8.507059e+37  ;;  %v2943_v44 = vor.u32 1.1754944e-38, %v2942_v20  ;;  %vm5803_vm13 = vmor %vm2921_vm12, %vm2922_vm3 }
 0x3ea   : > { %v2955_v9 = vand.u32 2147483647, %v5232_v26  ;;  %v2957_v59 = vand.u32 2147483648, %v5232_v26  ;;  %v2920_v24 = vadd.f32 %v5595_v14, %v2919_v53  ;;  %v2935_v29 = vadd.f32 %v5609_v21, %v2934_v16 }
 0x3eb   : > { %vm2937_vm9 = vweird.f32 %v5609_v21  ;;  %vm2951_vm1 = vweird.f32 %v5232_v26  ;;  %v2963_v61 = vsub.f32 1.0, %v2962_v30  ;;  %v5793_v18 = vsel %vm5696_vm6, %v2913_v23, %v2909_v51 }
 0x3ec   : > { %v2970_v39 = vand.u32 2147483647, %v5234_v52  ;;  %v2978_v25 = vsub.f32 1.0, %v2977_v15  ;;  %3795 = vrcp.f32 %v6694_v12  ;;  %v5797_v43 = vpop.eup %3791  ;;  %v2949_v58 = vmul.f32 %v5679_v13, %v2948_v2  ;;  %vm5819_vm14 = vmor %vm2936_vm10, %vm2937_vm9 }
 0x3ed   : > { %vm2966_vm8 = vweird.f32 %v5234_v52  ;;  %v2972_v55 = vand.u32 2147483648, %v5234_v52  ;;  %v2992_v37 = vmul.f32 %v5775_v31, %v6683_v38  ;;  %3797 = vrcp.f32 %v6697_v41  ;;  %v5813_v23 = vpop.eup %3793 }
 0x3ee   : > { %vm2952_vm15 = vweird.f32 %v5679_v13  ;;  %v2958_v60 = vor.u32 1.1754944e-38, %v2957_v59  ;;  %v2985_v4 = vand.u32 2147483647, %v5238_v7  ;;  %v2987_v48 = vand.u32 2147483648, %v5238_v7 }
 0x3ef   : > { %v2924_v40 = vsel %vm5803_vm13, %v5595_v14, %v2920_v24  ;;  %v2939_v32 = vsel %vm5819_vm14, %v5609_v21, %v2935_v29  ;;  %vm5832_vm6 = vcmp.eq.f32.partialorder %v2955_v9, 8.507059e+37  ;;  %v2964_v36 = vmul.f32 %v5700_v63, %v2963_v61  ;;  %v6702_v14 = vld [vmem:[#allocation39_spill] sm:$0xff]  ;;  %vm5875_vm10 = vmor %vm2951_vm1, %vm2952_vm15 }
 0x3f0   : > { %vm2981_vm4 = vweird.f32 %v5238_v7  ;;  %v2979_v6 = vmul.f32 %v5714_v5, %v2978_v25  ;;  %v3002_v27 = vand.u32 2147483648, %v6683_v38  ;;  %v3007_v20 = vmul.f32 %v5797_v43, %v6686_v42 }
 0x3f1   : > { %3799 = vrcp.f32 %v6702_v14  ;;  %v2950_v53 = vadd.f32 %v5679_v13, %v2949_v58  ;;  %vm5844_vm11 = vcmp.eq.f32.partialorder %v2970_v39, 8.507059e+37  ;;  %v2973_v16 = vor.u32 1.1754944e-38, %v2972_v55 }
 0x3f2   : > { %v2993_v30 = vsub.f32 1.0, %v2992_v37  ;;  %v3022_v46 = vmul.f32 %v5813_v23, %v6689_v0  ;;  %v5850_v15 = vpop.eup %3795  ;;  %v5855_v51 = vsel %vm5771_vm5, %v5728_v49, %v2924_v40  ;;  %vm2967_vm12 = vweird.f32 %v5700_v63 }
 0x3f3   : > { %vm5858_vm2 = vcmp.eq.f32.partialorder %v2985_v4, 8.507059e+37  ;;  %v2988_v9 = vor.u32 1.1754944e-38, %v2987_v48  ;;  %v5862_v59 = vpop.eup %3797  ;;  %v5866_v24 = vsel %vm5781_vm7, %v2943_v44, %v2939_v32  ;;  %v2965_v29 = vadd.f32 %v5700_v63, %v2964_v36  ;;  %vm5892_vm5 = vmor %vm2966_vm8, %vm2967_vm12  ;;  %v6711_v4 = vld [vmem:[#allocation40_spill] sm:$0xff] }
 0x3f4   : > { %vm2996_vm0 = vweird.f32 %v6683_v38  ;;  %v3000_v49 = vand.u32 2147483647, %v6683_v38  ;;  %v2980_v61 = vadd.f32 %v5714_v5, %v2979_v6  ;;  %vm2982_vm3 = vweird.f32 %v5714_v5 }
 0x3f5   : > { %v3003_v11 = vor.u32 1.1754944e-38, %v3002_v27  ;;  %v3008_v44 = vsub.f32 1.0, %v3007_v20  ;;  %v2954_v39 = vsel %vm5875_vm10, %v5679_v13, %v2950_v53  ;;  %v2994_v25 = vmul.f32 %v5775_v31, %v2993_v30  ;;  %vm5907_vm7 = vmor %vm2981_vm4, %vm2982_vm3 }
 0x3f6   : > { %v3015_v62 = vand.u32 2147483647, %v6686_v42  ;;  %v3023_v58 = vsub.f32 1.0, %v3022_v46  ;;  %v3017_v37 = vand.u32 2147483648, %v6686_v42  ;;  %v3037_v13 = vmul.f32 %v5850_v15, %v6694_v12 }
 0x3f7   : > { %v5886_v26 = vpop.eup %3799  ;;  %v3052_v34 = vmul.f32 %v5862_v59, %v6697_v41  ;;  %3801 = vrcp.f32 %v6711_v4  ;;  %v2969_v48 = vsel %vm5892_vm5, %v5700_v63, %v2965_v29  ;;  %vm5911_vm9 = vcmp.eq.f32.partialorder %v3000_v49, 8.507059e+37 }
 0x3f8   : > { %vm3011_vm1 = vweird.f32 %v6686_v42  ;;  %v3030_v32 = vand.u32 2147483647, %v6689_v0  ;;  %v3032_v36 = vand.u32 2147483648, %v6689_v0  ;;  %v5920_v6 = vsel %vm5832_vm6, %v2958_v60, %v2954_v39 }
 0x3f9   : > { %v2984_v7 = vsel %vm5907_vm7, %v5714_v5, %v2980_v61  ;;  %vm2997_vm13 = vweird.f32 %v5775_v31  ;;  %v3009_v63 = vmul.f32 %v5797_v43, %v3008_v44  ;;  %v2995_v27 = vadd.f32 %v5775_v31, %v2994_v25 }
 0x3fa   : > { %v3024_v20 = vmul.f32 %v5813_v23, %v3023_v58  ;;  %vm3026_vm8 = vweird.f32 %v6689_v0  ;;  %v3067_v53 = vmul.f32 %v5886_v26, %v6702_v14  ;;  %v5934_v60 = vsel %vm5844_vm11, %v2973_v16, %v2969_v48  ;;  %vm5956_vm11 = vmor %vm2996_vm0, %vm2997_vm13 }
 0x3fb   : > { %vm5936_vm14 = vcmp.eq.f32.partialorder %v3015_v62, 8.507059e+37  ;;  %v3018_v5 = vor.u32 1.1754944e-38, %v3017_v37  ;;  %v3038_v30 = vsub.f32 1.0, %v3037_v13  ;;  %v3053_v46 = vsub.f32 1.0, %v3052_v34  ;;  %v6722_v37 = vld [vmem:[#allocation41_spill] sm:$0xff] }
 0x3fc   : > { %v5942_v29 = vsel %vm5858_vm2, %v2988_v9, %v2984_v7  ;;  %vm3012_vm15 = vweird.f32 %v5797_v43  ;;  %vm5945_vm6 = vcmp.eq.f32.partialorder %v3030_v32, 8.507059e+37  ;;  %v3033_v21 = vor.u32 1.1754944e-38, %v3032_v36 }
 0x3fd   : > { %vm3041_vm4 = vweird.f32 %v6694_v12  ;;  %v5950_v16 = vpop.eup %3801  ;;  %v3010_v2 = vadd.f32 %v5797_v43, %v3009_v63  ;;  %v3045_v9 = vand.u32 2147483647, %v6694_v12  ;;  %v3047_v61 = vand.u32 2147483648, %v6694_v12  ;;  %vm5977_vm2 = vmor %vm3011_vm1, %vm3012_vm15 }
 0x3fe   : > { %v3060_v44 = vand.u32 2147483647, %v6697_v41  ;;  %v2999_v39 = vsel %vm5956_vm11, %v5775_v31, %v2995_v27  ;;  %v3025_v25 = vadd.f32 %v5813_v23, %v3024_v20  ;;  %vm3027_vm12 = vweird.f32 %v5813_v23 }
 0x3ff   : > { %v3068_v38 = vsub.f32 1.0, %v3067_v53  ;;  %v3039_v62 = vmul.f32 %v5850_v15, %v3038_v30  ;;  %v3054_v58 = vmul.f32 %v5862_v59, %v3053_v46  ;;  %v3062_v55 = vand.u32 2147483648, %v6697_v41  ;;  %vm5995_vm10 = vmor %vm3026_vm8, %vm3027_vm12 }
 0x400   : > { %3803 = vrcp.f32 %v6722_v37  ;;  %vm3056_vm0 = vweird.f32 %v6697_v41  ;;  %v3075_v31 = vand.u32 2147483647, %v6702_v14  ;;  %v3077_v34 = vand.u32 2147483648, %v6702_v14 }
 0x401   : > { %v3082_v48 = vmul.f32 %v5950_v16, %v6711_v4  ;;  %v5988_v52 = vsel %vm5911_vm9, %v3003_v11, %v2999_v39  ;;  %v3014_v42 = vsel %vm5977_vm2, %v5797_v43, %v3010_v2  ;;  %vm5999_vm3 = vcmp.eq.f32.partialorder %v3045_v9, 8.507059e+37  ;;  %v6735_v9 = vld [vmem:[#allocation42_spill] sm:$0xff] }
 0x402   : > { %v3048_v7 = vor.u32 1.1754944e-38, %v3047_v61  ;;  %v3029_v11 = vsel %vm5995_vm10, %v5813_v23, %v3025_v25  ;;  %vm3042_vm5 = vweird.f32 %v5850_v15  ;;  %vm6007_vm7 = vcmp.eq.f32.partialorder %v3060_v44, 8.507059e+37  ;;  %v6739_v25 = vld [vmem:[#allocation44_spill] sm:$0xff] }
 0x403   : > { %v3069_v0 = vmul.f32 %v5886_v26, %v3068_v38  ;;  %vm3071_vm9 = vweird.f32 %v6702_v14  ;;  %v3040_v43 = vadd.f32 %v5850_v15, %v3039_v62  ;;  %v3055_v63 = vadd.f32 %v5862_v59, %v3054_v58  ;;  %vm6032_vm8 = vmor %vm3041_vm4, %vm3042_vm5  ;;  %v6740_v58 = vld [vmem:[#allocation45_spill] sm:$0xff] }
 0x404   : > { %vm3057_vm1 = vweird.f32 %v5862_v59  ;;  %v3063_v27 = vor.u32 1.1754944e-38, %v3062_v55  ;;  %v6018_v23 = vsel %vm5936_vm14, %v3018_v5, %v3014_v42  ;;  %vm6020_vm13 = vcmp.eq.f32.partialorder %v3075_v31, 8.507059e+37  ;;  %v6741_v55 = vld [vmem:[#allocation20_spill] sm:$0xff] }
 0x405   : > { %v3078_v53 = vor.u32 1.1754944e-38, %v3077_v34  ;;  %v3083_v30 = vsub.f32 1.0, %v3082_v48  ;;  %v6028_v47 = vsel %vm5945_vm6, %v3033_v21, %v3029_v11  ;;  %v3090_v57 = vand.u32 2147483647, %v6711_v4  ;;  %vm6041_vm14 = vmor %vm3056_vm0, %vm3057_vm1  ;;  %v6738_v21 = vld [vmem:[#allocation43_spill] sm:$0xff]  ;;  %v6747_v11 = vld [vmem:[#allocation22_spill] sm:$0xff] }
 0x406   : > { %v6024_v46 = vpop.eup %3803  ;;  %v3092_v5 = vand.u32 2147483648, %v6711_v4  ;;  %3805 = vrcp.f32 %v6735_v9  ;;  %v3070_v49 = vadd.f32 %v5886_v26, %v3069_v0  ;;  %vm3072_vm15 = vweird.f32 %v5886_v26  ;;  %v6744_v34 = vld [vmem:[#allocation3_spill] sm:$0xff] }
 0x407   : > { %vm3086_vm6 = vweird.f32 %v6711_v4  ;;  %v3107_v12 = vand.u32 2147483648, %v6722_v37  ;;  %3807 = vrcp.f32 %v6738_v21  ;;  %v3044_v44 = vsel %vm6032_vm8, %v5850_v15, %v3040_v43  ;;  %vm6066_vm4 = vmor %vm3071_vm9, %vm3072_vm15 }
 0x408   : > { %v3059_v41 = vsel %vm6041_vm14, %v5862_v59, %v3055_v63  ;;  %v3122_v39 = vand.u32 2147483648, %v6735_v9  ;;  %3809 = vrcp.f32 %v6739_v25  ;;  %v3084_v38 = vmul.f32 %v5950_v16, %v3083_v30 }
 0x409   : > { %v3097_v62 = vmul.f32 %v6024_v46, %v6722_v37  ;;  %3811 = vrcp.f32 %v6740_v58  ;;  %v3171_v13 = vmul.f32 %v5447_v45, %v6741_v55  ;;  %vm3087_vm11 = vweird.f32 %v5950_v16  ;;  %v6754_v55 = vld [vmem:[#allocation26_spill] sm:$0xff] }
 0x40a   : > { %v3093_v59 = vor.u32 1.1754944e-38, %v3092_v5  ;;  %v3105_v31 = vand.u32 2147483647, %v6722_v37  ;;  %v3172_v48 = vmul.f32 %v5452_v17, %v6744_v34  ;;  %v6077_v42 = vsel %vm5999_vm3, %v3048_v7, %v3044_v44  ;;  %v6749_v5 = vld [vmem:[#allocation23_spill] sm:$0xff]  ;;  %vm6132_vm0 = vmor %vm3086_vm6, %vm3087_vm11  ;;  %v6755_v34 = vld [vmem:[#allocation29_spill] sm:$0xff] }
 0x40b   : > { %v3074_v45 = vsel %vm6066_vm4, %v5886_v26, %v3070_v49  ;;  %vm6082_vm12 = vcmp.eq.f32.partialorder %v3090_v57, 8.507059e+37  ;;  %v6086_v32 = vor.u32 1.1754944e-38, %v3107_v12  ;;  %v3173_v0 = vmul.f32 %v5533_v3, %v6747_v11  ;;  %v6748_v26 = vld [vmem:[#allocation25_spill] sm:$0xff] }
 0x40c   : > { %v6090_v43 = vpop.eup %3805  ;;  %v6094_v17 = vsel %vm6007_vm7, %v3063_v27, %v3059_v41  ;;  %v3120_v36 = vand.u32 2147483647, %v6735_v9  ;;  %v6097_v7 = vor.u32 1.1754944e-38, %v3122_v39  ;;  %v3174_v63 = vmul.f32 %v5538_v54, %v6748_v26  ;;  %v6750_v27 = vld [vmem:[#allocation21_spill] sm:$0xff] }
 0x40d   : > { %v6101_v30 = vpop.eup %3807  ;;  %v3085_v2 = vadd.f32 %v5950_v16, %v3084_v38  ;;  %v3098_v57 = vsub.f32 1.0, %v3097_v62  ;;  %v3175_v3 = vmul.f32 %v5543_v19, %v6749_v5  ;;  %v3203_v61 = vpack.c.bf16 %v3171_v13, %v3171_v13  ;;  %v6751_v38 = vld [vmem:[#allocation8_spill] sm:$0xff] }
 0x40e   : > { %v6106_v49 = vpop.eup %3809  ;;  %v6115_v40 = vsel %vm6020_vm13, %v3078_v53, %v3074_v45  ;;  %v3135_v54 = vand.u32 2147483647, %v6738_v21  ;;  %v3176_v12 = vmul.f32 %v5548_v33, %v6750_v27  ;;  %v3204_v44 = vpack.c.bf16 %v3172_v48, %v3172_v48 }
 0x40f   : > { %v6120_v41 = vpop.eup %3811  ;;  %vm3102_vm2 = vweird.f32 %v6024_v46  ;;  %v3112_v19 = vmul.f32 %v6090_v43, %v6735_v9  ;;  %v3137_v39 = vand.u32 2147483648, %v6738_v21  ;;  %v3177_v20 = vmul.f32 %v5600_v35, %v6751_v38  ;;  %v6760_v38 = vld [vmem:[#allocation28_spill] sm:$0xff] }
 0x410   : > { %v3205_v53 = vpack.c.bf16 %v3173_v0, %v3173_v0  ;;  %v3127_v62 = vmul.f32 %v6101_v30, %v6738_v21  ;;  %v3178_v13 = vmul.f32 %v5605_v56, %v6754_v55  ;;  %v3206_v15 = vpack.c.bf16 %v3174_v63, %v3174_v63  ;;  %v6756_v0 = vld [vmem:[#allocation27_spill] sm:$0xff] }
 0x411   : > { %vm3235_vm10 = vcmask 60416   ;;  %v3089_v35 = vsel %vm6132_vm0, %v5950_v16, %v3085_v2  ;;  %vm3101_vm3 = vweird.f32 %v6722_v37  ;;  %v3142_v4 = vmul.f32 %v6106_v49, %v6739_v25 }
 0x412   : > { %v3179_v48 = vmul.f32 %v5628_v1, %v6755_v34  ;;  %v3207_v45 = vpack.c.bf16 %v3175_v3, %v3175_v3  ;;  %3236 = vst.msk [vmem:[%s6111_s12] sm:$0xf] %vm3235_vm10, %v3203_v61  ;;  %v3099_v56 = vmul.f32 %v6024_v46, %v3098_v57  ;;  %v3157_v11 = vmul.f32 %v6120_v41, %v6740_v58  ;;  %v6757_v1 = vld [vmem:[#allocation24_spill] sm:$0xff]  ;;  %vm6220_vm15 = vmor %vm3101_vm3, %vm3102_vm2 }
 0x413   : > { %v3180_v16 = vmul.f32 %v5663_v10, %v6756_v0  ;;  %v3208_v26 = vpack.c.bf16 %v3176_v12, %v3176_v12  ;;  %3237 = vst.msk [vmem:[%s6111_s12 + $0x4] sm:$0xf] %vm3235_vm10, %v3204_v44  ;;  %v3113_v63 = vsub.f32 1.0, %v3112_v19  ;;  %v3150_v2 = vand.u32 2147483647, %v6739_v25  ;;  %v6758_v10 = vld [vmem:[#allocation14_spill] sm:$0xff] }
 0x414   : > { %v3181_v5 = vmul.f32 %v5684_v22, %v6757_v1  ;;  %v3209_v3 = vpack.c.bf16 %v3177_v20, %v3177_v20  ;;  %3238 = vst.msk [vmem:[%s6111_s12 + $0x8] sm:$0xf] %vm3235_vm10, %v3205_v53  ;;  %v6164_v57 = vsel %vm6082_vm12, %v3093_v59, %v3089_v35  ;;  %v3128_v61 = vsub.f32 1.0, %v3127_v62  ;;  %v6759_v44 = vld [vmem:[#allocation30_spill] sm:$0xff]  ;;  %v6764_v35 = vld [vmem:[#allocation31_spill] sm:$0xff]  ;;  %v6775_v1 = vld [vmem:[#allocation32_spill] sm:$0xff] }
 0x415   : > { %v3182_v27 = vmul.f32 %v5748_v50, %v6758_v10  ;;  %v3210_v12 = vpack.c.bf16 %v3178_v13, %v3178_v13  ;;  %3239 = vst.msk [vmem:[%s6111_s12 + $0xc] sm:$0xf] %vm3235_vm10, %v3206_v15  ;;  %vm3116_vm5 = vweird.f32 %v6735_v9  ;;  %vm3117_vm7 = vweird.f32 %v6090_v43  ;;  %v6772_v0 = vld [vmem:[#allocation34_spill] sm:$0xff] }
 0x416   : > { %v3143_v22 = vsub.f32 1.0, %v3142_v4  ;;  %v3183_v19 = vmul.f32 %v5765_v8, %v6759_v44  ;;  %v3211_v14 = vpack.c.bf16 %v3179_v48, %v3179_v48  ;;  %3240 = vst.msk [vmem:[%s6111_s12 + $0x10] sm:$0xf] %vm3235_vm10, %v3207_v45  ;;  %v6177_v59 = vadd.f32 %v6024_v46, %v3099_v56  ;;  %v6761_v8 = vld [vmem:[#allocation7_spill] sm:$0xff]  ;;  %v6767_v48 = vld [vmem:[#allocation13_spill] sm:$0xff]  ;;  %vm6265_vm2 = vmor %vm3116_vm5, %vm3117_vm7 }
 0x417   : > { %vm3131_vm9 = vweird.f32 %v6738_v21  ;;  %v3158_v50 = vsub.f32 1.0, %v3157_v11  ;;  %v3184_v20 = vmul.f32 %v5779_v28, %v6760_v38  ;;  %v3212_v53 = vpack.c.bf16 %v3180_v16, %v3180_v16  ;;  %3241 = vst.msk [vmem:[%s6111_s12 + $0x14] sm:$0xf] %vm3235_vm10, %v3208_v26  ;;  %v6780_v44 = vld [vmem:[#allocation33_spill] sm:$0xff] }
 0x418   : > { %v3114_v33 = vmul.f32 %v6090_v43, %v3113_v63  ;;  %v6185_v62 = vor.u32 1.1754944e-38, %v3137_v39  ;;  %vm3146_vm1 = vweird.f32 %v6739_v25  ;;  %v3185_v55 = vmul.f32 %v5793_v18, %v6761_v8  ;;  %3242 = vst.msk [vmem:[%s6111_s12 + $0x18] sm:$0xf] %vm3235_vm10, %v3209_v3 }
 0x419   : > { %v3213_v13 = vpack.c.bf16 %v3181_v5, %v3181_v5  ;;  %vm6194_vm13 = vcmp.eq.f32.partialorder %v3105_v31, 8.507059e+37  ;;  %v3129_v15 = vmul.f32 %v6101_v30, %v3128_v61  ;;  %v3152_v39 = vand.u32 2147483648, %v6739_v25  ;;  %3243 = vst.msk [vmem:[%s6111_s12 + $0x1c] sm:$0xf] %vm3235_vm10, %v3210_v12  ;;  %v6776_v61 = vld [vmem:[#allocation2_spill] sm:$0xff] }
 0x41a   : > { %v3186_v4 = vmul.f32 %v5855_v51, %v6764_v35  ;;  %v3214_v34 = vpack.c.bf16 %v3182_v27, %v3182_v27  ;;  %vm6206_vm8 = vcmp.eq.f32.partialorder %v3120_v36, 8.507059e+37  ;;  %v3144_v31 = vmul.f32 %v6106_v49, %v3143_v22  ;;  %3244 = vst.msk [vmem:[%s6111_s12 + $0x20] sm:$0xf] %vm3235_vm10, %v3211_v14  ;;  %v6791_v35 = vld [vmem:[#allocation16_spill] sm:$0xff]  ;;  %v6795_v36 = vld [vmem:[#allocation15_spill] sm:$0xff] }
 0x41b   : > { %vm3161_vm14 = vweird.f32 %v6740_v58  ;;  %v3187_v45 = vmul.f32 %v5866_v24, %v6767_v48  ;;  %v3215_v56 = vpack.c.bf16 %v3183_v19, %v3183_v19  ;;  %vm6226_vm6 = vcmp.eq.f32.partialorder %v3135_v54, 8.507059e+37  ;;  %3245 = vst.msk [vmem:[%s6111_s12 + $0x24] sm:$0xf] %vm3235_vm10, %v3212_v53  ;;  %v6786_v53 = vld [vmem:[#allocation6_spill] sm:$0xff] }
 0x41c   : > { %v3159_v24 = vmul.f32 %v6120_v41, %v3158_v50  ;;  %v3165_v11 = vand.u32 2147483647, %v6740_v58  ;;  %v3188_v16 = vmul.f32 %v5920_v6, %v6772_v0  ;;  %v3216_v26 = vpack.c.bf16 %v3184_v20, %v3184_v20  ;;  %3246 = vst.msk [vmem:[%s6111_s12 + $0x28] sm:$0xf] %vm3235_vm10, %v3213_v13  ;;  %v6783_v50 = vld [vmem:[#allocation4_spill] sm:$0xff]  ;;  %v6796_v0 = vld [vmem:[#allocation10_spill] sm:$0xff] }
 0x41d   : > { %v3104_v37 = vsel %vm6220_vm15, %v6024_v46, %v6177_v59  ;;  %v3115_v54 = vadd.f32 %v6090_v43, %v3114_v33  ;;  %vm6241_vm4 = vcmp.eq.f32.partialorder %v3150_v2, 8.507059e+37  ;;  %v3189_v5 = vmul.f32 %v5934_v60, %v6775_v1  ;;  %3247 = vst.msk [vmem:[%s6111_s12 + $0x2c] sm:$0xf] %vm3235_vm10, %v3214_v34  ;;  %v6777_v60 = vld [vmem:[#allocation5_spill] sm:$0xff] }
 0x41e   : > { %v3217_v3 = vpack.c.bf16 %v3185_v55, %v3185_v55  ;;  %v3130_v6 = vadd.f32 %v6101_v30, %v3129_v15  ;;  %vm3132_vm11 = vweird.f32 %v6101_v30  ;;  %v3190_v46 = vmul.f32 %v5942_v29, %v6776_v61  ;;  %3248 = vst.msk [vmem:[%s6111_s12 + $0x30] sm:$0xf] %vm3235_vm10, %v3215_v56 }
 0x41f   : > { %v3218_v10 = vpack.c.bf16 %v3186_v4, %v3186_v4  ;;  %v3145_v2 = vadd.f32 %v6106_v49, %v3144_v31  ;;  %vm3147_vm12 = vweird.f32 %v6106_v49  ;;  %v3191_v27 = vmul.f32 %v5988_v52, %v6777_v60  ;;  %3249 = vst.msk [vmem:[%s6111_s12 + $0x34] sm:$0xf] %vm3235_vm10, %v3216_v26  ;;  %vm6282_vm3 = vmor %vm3131_vm9, %vm3132_vm11  ;;  %v6793_v31 = vld [vmem:[#allocation17_spill] sm:$0xff] }
 0x420   : > { %v3219_v12 = vpack.c.bf16 %v3187_v45, %v3187_v45  ;;  %v3160_v22 = vadd.f32 %v6120_v41, %v3159_v24  ;;  %vm3162_vm0 = vweird.f32 %v6120_v41  ;;  %v3192_v19 = vmul.f32 %v6018_v23, %v6780_v44  ;;  %3250 = vst.msk [vmem:[%s6111_s12 + $0x38] sm:$0xf] %vm3235_vm10, %v3217_v3  ;;  %vm6298_vm5 = vmor %vm3146_vm1, %vm3147_vm12  ;;  %v6794_v45 = vld [vmem:[#allocation35_spill] sm:$0xff] }
 0x421   : > { %v3220_v52 = vpack.c.bf16 %v3188_v16, %v3188_v16  ;;  %v3119_v14 = vsel %vm6265_vm2, %v6090_v43, %v3115_v54  ;;  %v3167_v59 = vand.u32 2147483648, %v6740_v58  ;;  %v3193_v23 = vmul.f32 %v6028_v47, %v6783_v50  ;;  %3251 = vst.msk [vmem:[%s6111_s12 + $0x3c] sm:$0xf] %vm3235_vm10, %v3218_v10  ;;  %vm6316_vm7 = vmor %vm3161_vm14, %vm3162_vm0  ;;  %v6790_v58 = vld [vmem:[#allocation12_spill] sm:$0xff] }
 0x422   : > { %v3221_v38 = vpack.c.bf16 %v3189_v5, %v3189_v5  ;;  %v3134_v43 = vsel %vm6282_vm3, %v6101_v30, %v3130_v6  ;;  %v3153_v20 = vor.u32 1.1754944e-38, %v3152_v39  ;;  %v3194_v47 = vmul.f32 %v6077_v42, %v6786_v53  ;;  %v6789_v42 = vld [vmem:[#allocation9_spill] sm:$0xff]  ;;  %3252 = vst.msk [vmem:[%s6111_s12 + $0x40] sm:$0xf] %vm3235_vm10, %v3219_v12 }
 0x423   : > { %v3222_v33 = vpack.c.bf16 %v3190_v46, %v3190_v46  ;;  %v3109_v30 = vsel %vm6194_vm13, %v6086_v32, %v3104_v37  ;;  %v3149_v25 = vsel %vm6298_vm5, %v6106_v49, %v3145_v2  ;;  %v3195_v55 = vmul.f32 %v6094_v17, %v6789_v42  ;;  %3253 = vst.msk [vmem:[%s6111_s12 + $0x44] sm:$0xf] %vm3235_vm10, %v3220_v52 }
 0x424   : > { %v3223_v13 = vpack.c.bf16 %v3191_v27, %v3191_v27  ;;  %v3124_v32 = vsel %vm6206_vm8, %v6097_v7, %v3119_v14  ;;  %v3164_v49 = vsel %vm6316_vm7, %v6120_v41, %v3160_v22  ;;  %v3196_v28 = vmul.f32 %v6115_v40, %v6790_v58  ;;  %3254 = vst.msk [vmem:[%s6111_s12 + $0x48] sm:$0xf] %vm3235_vm10, %v3221_v38  ;;  %v6792_v41 = vld [vmem:[#allocation11_spill] sm:$0xff] }
 0x425   : > { %v3224_v15 = vpack.c.bf16 %v3192_v19, %v3192_v19  ;;  %v3139_v17 = vsel %vm6226_vm6, %v6185_v62, %v3134_v43  ;;  %v3168_v39 = vor.u32 1.1754944e-38, %v3167_v59  ;;  %v3197_v7 = vmul.f32 %v6164_v57, %v6791_v35  ;;  %3255 = vst.msk [vmem:[%s6111_s12 + $0x4c] sm:$0xf] %vm3235_vm10, %v3222_v33 }
 0x426   : > { %v3225_v4 = vpack.c.bf16 %v3193_v23, %v3193_v23  ;;  %v3154_v40 = vsel %vm6241_vm4, %v3153_v20, %v3149_v25  ;;  %vm3166_vm9 = vcmp.eq.f32.partialorder %v3165_v11, 8.507059e+37  ;;  %v3198_v34 = vmul.f32 %v3109_v30, %v6792_v41  ;;  %3256 = vst.msk [vmem:[%s6111_s12 + $0x50] sm:$0xf] %vm3235_vm10, %v3223_v13 }
 0x427   : > { %v3226_v18 = vpack.c.bf16 %v3194_v47, %v3194_v47  ;;  %v3169_v62 = vsel %vm3166_vm9, %v3168_v39, %v3164_v49  ;;  %v3199_v48 = vmul.f32 %v3124_v32, %v6793_v31  ;;  %v3227_v57 = vpack.c.bf16 %v3195_v55, %v3195_v55  ;;  %3257 = vst.msk [vmem:[%s6111_s12 + $0x54] sm:$0xf] %vm3235_vm10, %v3224_v15 }
 0x428   : > { %v3200_v56 = vmul.f32 %v3139_v17, %v6794_v45  ;;  %v3228_v51 = vpack.c.bf16 %v3196_v28, %v3196_v28  ;;  %v3201_v24 = vmul.f32 %v3154_v40, %v6795_v36  ;;  %v3229_v11 = vpack.c.bf16 %v3197_v7, %v3197_v7  ;;  %3258 = vst.msk [vmem:[%s6111_s12 + $0x58] sm:$0xf] %vm3235_vm10, %v3225_v4 }
 0x429   : > { %v3202_v16 = vmul.f32 %v3169_v62, %v6796_v0  ;;  %v3230_v26 = vpack.c.bf16 %v3198_v34, %v3198_v34  ;;  %3259 = vst.msk [vmem:[%s6111_s12 + $0x5c] sm:$0xf] %vm3235_vm10, %v3226_v18  ;;  %v3231_v37 = vpack.c.bf16 %v3199_v48, %v3199_v48 }
 0x42a   : > { %3260 = vst.msk [vmem:[%s6111_s12 + $0x60] sm:$0xf] %vm3235_vm10, %v3227_v57  ;;  %v3232_v54 = vpack.c.bf16 %v3200_v56, %v3200_v56  ;;  %v3233_v63 = vpack.c.bf16 %v3201_v24, %v3201_v24 }
 0x42b   : > { %3261 = vst.msk [vmem:[%s6111_s12 + $0x64] sm:$0xf] %vm3235_vm10, %v3228_v51  ;;  %v3234_v1 = vpack.c.bf16 %v3202_v16, %v3202_v16 }
 0x42c   : > { %3262 = vst.msk [vmem:[%s6111_s12 + $0x68] sm:$0xf] %vm3235_vm10, %v3229_v11 }
 0x42d   : > { %3263 = vst.msk [vmem:[%s6111_s12 + $0x6c] sm:$0xf] %vm3235_vm10, %v3230_v26 }
 0x42e   : > { %3264 = vst.msk [vmem:[%s6111_s12 + $0x70] sm:$0xf] %vm3235_vm10, %v3231_v37 }
 0x42f   : > { %3265 = vst.msk [vmem:[%s6111_s12 + $0x74] sm:$0xf] %vm3235_vm10, %v3232_v54 }
 0x430   : > { %3266 = vst.msk [vmem:[%s6111_s12 + $0x78] sm:$0xf] %vm3235_vm10, %v3233_v63 }
 0x431   : > { %3267 = vst.msk [vmem:[%s6111_s12 + $0x7c] sm:$0xf] %vm3235_vm10, %v3234_v1 }
 0x432 PF: > { %s18_s27 = sadd.s32 1, %s3825_s27  }
 0x433   : > { %p15_p4 = scmp.ge.s32.totalorder %s18_s27, 4  }
 0x435   :  { %17 = sbr.rel (!%p15_p4) target bundleno = 1 (0x1), region = 93 }

</bundles_post_ra>
